<compile_context>
chip_gen: v7x
topology: tpu7x:2x2x1
jax: 0.10.0
libtpu: 0.0.40
codegen_flags: <defaults>
</compile_context>

<pallas_src>
import functools
import math

import numpy as np
import jax
import jax.numpy as jnp
from jax.experimental import pallas as pl
from jax.experimental.pallas import tpu as pltpu


NEG_INF = -1e9
_VMEM_LIMIT = 48 * 1024 * 1024   # fits v7x (64 MiB physical) with headroom; fine on v5e/v6e


def _cparams(*dims):
    return pltpu.CompilerParams(dimension_semantics=tuple(dims),
                                vmem_limit_bytes=_VMEM_LIMIT)


def _tile_and_pad(dim, max_tile):
    """Tile choice with a bounded VMEM footprint.

    dim <= max_tile  -> single full-extent block (always a legal block shape).
    dim >  max_tile  -> tile = max_tile (multiple of 128) and dim padded up so the
                        grid divides evenly; never falls back to a huge full-dim block.
    """
    if dim <= max_tile:
        return dim, dim
    tile = max_tile
    padded = ((dim + tile - 1) // tile) * tile
    return tile, padded


def _pad_axis(x, axis, target, value=0.0):
    if x.shape[axis] == target:
        return x
    pads = [(0, 0)] * x.ndim
    pads[axis] = (0, target - x.shape[axis])
    return jnp.pad(x, pads, constant_values=value)


# ----------------------------------------------------------------------------
# Kernel: tiled GEMM (+ optional bias / ReLU)
# ----------------------------------------------------------------------------
def _matmul_kernel(x_ref, w_ref, b_ref, o_ref, acc_ref, *, activation):
    @pl.when(pl.program_id(2) == 0)
    def _():
        acc_ref[...] = jnp.zeros_like(acc_ref)

    acc_ref[...] += jnp.dot(x_ref[...], w_ref[...],
                            preferred_element_type=jnp.float32)

    @pl.when(pl.program_id(2) == pl.num_programs(2) - 1)
    def _():
        y = acc_ref[...] + b_ref[...]
        if activation == "relu":
            y = jnp.maximum(y, 0.0)
        o_ref[...] = y.astype(o_ref.dtype)


def matmul(x, w, b=None, activation=None, out_dtype=jnp.bfloat16):
    """x: (M, K), w: (K, N) -> (M, N).  bf16 MXU, f32 accumulation."""
    M, K = x.shape
    N = w.shape[1]
    tm, Mp = _tile_and_pad(M, 512)
    tn, Np = _tile_and_pad(N, 512)
    tk, Kp = _tile_and_pad(K, 512)

    x = _pad_axis(_pad_axis(x.astype(jnp.bfloat16), 0, Mp), 1, Kp)
    w = _pad_axis(_pad_axis(w.astype(jnp.bfloat16), 0, Kp), 1, Np)
    if b is None:
        bb = jnp.zeros((1, Np), jnp.float32)
    else:
        bb = _pad_axis(b.reshape(1, N).astype(jnp.float32), 1, Np)

    # 3-deep buffering on the streamed weight tile hides exposed DMA when the GEMM is
    # weight-stream bound (only when there are enough K blocks to pipeline).
    if Kp // tk >= 3:
        w_spec = pl.BlockSpec((tk, tn), lambda i, j, k: (k, j),
                              pipeline_mode=pl.Buffered(3))
    else:
        w_spec = pl.BlockSpec((tk, tn), lambda i, j, k: (k, j))

    out = pl.pallas_call(
        functools.partial(_matmul_kernel, activation=activation),
        out_shape=jax.ShapeDtypeStruct((Mp, Np), out_dtype),
        grid=(Mp // tm, Np // tn, Kp // tk),
        in_specs=[
            pl.BlockSpec((tm, tk), lambda i, j, k: (i, k)),
            w_spec,
            pl.BlockSpec((1, tn), lambda i, j, k: (0, j)),
        ],
        out_specs=pl.BlockSpec((tm, tn), lambda i, j, k: (i, j)),
        scratch_shapes=[pltpu.VMEM((tm, tn), jnp.float32)],
        compiler_params=_cparams("parallel", "parallel", "arbitrary"),
    )(x, w, bb)
    if (Mp, Np) != (M, N):
        out = out[:M, :N]
    return out


# ----------------------------------------------------------------------------
# Kernel: tiled GEMM fused with bias + residual add + LayerNorm
# ----------------------------------------------------------------------------
def _linear_res_ln_kernel(x_ref, w_ref, b_ref, res_ref, g_ref, beta_ref,
                          o_ref, acc_ref, *, eps):
    @pl.when(pl.program_id(1) == 0)
    def _():
        acc_ref[...] = jnp.zeros_like(acc_ref)

    acc_ref[...] += jnp.dot(x_ref[...], w_ref[...],
                            preferred_element_type=jnp.float32)

    @pl.when(pl.program_id(1) == pl.num_programs(1) - 1)
    def _():
        y = acc_ref[...] + b_ref[...] + res_ref[...].astype(jnp.float32)
        mu = jnp.mean(y, axis=-1, keepdims=True)
        yc = y - mu
        var = jnp.mean(yc * yc, axis=-1, keepdims=True)
        o_ref[...] = (yc * jax.lax.rsqrt(var + eps) * g_ref[...]
                      + beta_ref[...]).astype(o_ref.dtype)


def linear_residual_layernorm(x, w, b, residual, gamma, beta,
                              eps=1e-6, out_dtype=jnp.bfloat16):
    """(x @ w + b + residual) -> LayerNorm over last dim.  D (=d_model) never padded."""
    M, K = x.shape
    D = w.shape[1]
    tm, Mp = _tile_and_pad(M, 256)
    tk, Kp = _tile_and_pad(K, 512)

    x = _pad_axis(_pad_axis(x.astype(jnp.bfloat16), 0, Mp), 1, Kp)
    w = _pad_axis(w.astype(jnp.bfloat16), 0, Kp)
    residual = _pad_axis(residual.astype(jnp.bfloat16), 0, Mp)
    if b is None:
        bb = jnp.zeros((1, D), jnp.float32)
    else:
        bb = b.reshape(1, D).astype(jnp.float32)

    if Kp // tk >= 3:
        w_spec = pl.BlockSpec((tk, D), lambda i, k: (k, 0),
                              pipeline_mode=pl.Buffered(3))
    else:
        w_spec = pl.BlockSpec((tk, D), lambda i, k: (k, 0))

    out = pl.pallas_call(
        functools.partial(_linear_res_ln_kernel, eps=float(eps)),
        out_shape=jax.ShapeDtypeStruct((Mp, D), out_dtype),
        grid=(Mp // tm, Kp // tk),
        in_specs=[
            pl.BlockSpec((tm, tk), lambda i, k: (i, k)),
            w_spec,
            pl.BlockSpec((1, D), lambda i, k: (0, 0)),
            pl.BlockSpec((tm, D), lambda i, k: (i, 0)),
            pl.BlockSpec((1, D), lambda i, k: (0, 0)),
            pl.BlockSpec((1, D), lambda i, k: (0, 0)),
        ],
        out_specs=pl.BlockSpec((tm, D), lambda i, k: (i, 0)),
        scratch_shapes=[pltpu.VMEM((tm, D), jnp.float32)],
        compiler_params=_cparams("parallel", "arbitrary"),
    )(x, w, bb, residual,
      gamma.reshape(1, D).astype(jnp.float32),
      beta.reshape(1, D).astype(jnp.float32))
    if Mp != M:
        out = out[:M]
    return out


# ----------------------------------------------------------------------------
# Kernel: flash attention (lane-dense (B, L, H*d) layout, online softmax over Lk tiles)
# ----------------------------------------------------------------------------
def _flash_attn_kernel(kb_ref, q_ref, k_ref, v_ref, o_ref,
                       m_scr, l_scr, acc_scr,
                       *, n_head, d_k, d_v, tq, tk, causal):
    qi = pl.program_id(1)
    ki = pl.program_id(2)

    @pl.when(ki == 0)
    def _():
        m_scr[...] = jnp.full(m_scr.shape, -jnp.inf, jnp.float32)
        l_scr[...] = jnp.zeros(l_scr.shape, jnp.float32)
        acc_scr[...] = jnp.zeros(acc_scr.shape, jnp.float32)

    def compute():
        bias = kb_ref[0]                                       # (1, tk) f32: 0 / -1e9 (pad)
        if causal:
            q_pos = qi * tq + jax.lax.broadcasted_iota(jnp.int32, (tq, tk), 0)
            k_pos = ki * tk + jax.lax.broadcasted_iota(jnp.int32, (tq, tk), 1)
            bias = bias + jnp.where(k_pos <= q_pos,
                                    jnp.float32(0.0), jnp.float32(NEG_INF))
        for h in range(n_head):
            qh = q_ref[0, :, h * d_k:(h + 1) * d_k]            # (tq, d_k) bf16
            kh = k_ref[0, :, h * d_k:(h + 1) * d_k]            # (tk, d_k) bf16
            vh = v_ref[0, :, h * d_v:(h + 1) * d_v]            # (tk, d_v) bf16
            s = jax.lax.dot_general(qh, kh, (((1,), (1,)), ((), ())),
                                    preferred_element_type=jnp.float32) + bias
            m_prev = m_scr[h]                                  # (tq, 1)
            m_new = jnp.maximum(m_prev, jnp.max(s, axis=-1, keepdims=True))
            alpha = jnp.exp(m_prev - m_new)
            p = jnp.exp(s - m_new)                             # (tq, tk) f32
            l_scr[h] = alpha * l_scr[h] + jnp.sum(p, axis=-1, keepdims=True)
            pv = jax.lax.dot_general(p.astype(vh.dtype), vh,
                                     (((1,), (0,)), ((), ())),
                                     preferred_element_type=jnp.float32)
            acc_scr[h] = alpha * acc_scr[h] + pv
            m_scr[h] = m_new

    if causal:
        # skip k tiles that lie entirely in the future of every query in this q tile
        pl.when(ki * tk <= qi * tq + (tq - 1))(compute)
    else:
        compute()

    @pl.when(ki == pl.num_programs(2) - 1)
    def _():
        parts = []
        for h in range(n_head):
            inv = pl.reciprocal(l_scr[h], approx=True)         # (tq, 1)
            parts.append(acc_scr[h] * inv)                     # (tq, d_v) f32
        # single lane-dense store of all heads
        o_ref[0] = jnp.concatenate(parts, axis=-1).astype(o_ref.dtype)


def flash_attention(q, k, v, key_bias, *, n_head, d_k, d_v, causal):
    """q: (B, Lq, H*dk), k: (B, Lk, H*dk), v: (B, Lk, H*dv), key_bias: (B, Lk) f32."""
    B, Lq, _ = q.shape
    Lk = k.shape[1]
    tq, Lqp = _tile_and_pad(Lq, 256)
    tk, Lkp = _tile_and_pad(Lk, 256)

    q = _pad_axis(q.astype(jnp.bfloat16), 1, Lqp)
    k = _pad_axis(k.astype(jnp.bfloat16), 1, Lkp)
    v = _pad_axis(v.astype(jnp.bfloat16), 1, Lkp)
    kb = _pad_axis(key_bias.astype(jnp.float32), 1, Lkp,
                   value=NEG_INF).reshape(B, 1, Lkp)

    out = pl.pallas_call(
        functools.partial(_flash_attn_kernel, n_head=n_head, d_k=d_k, d_v=d_v,
                          tq=tq, tk=tk, causal=causal),
        out_shape=jax.ShapeDtypeStruct((B, Lqp, n_head * d_v), jnp.bfloat16),
        grid=(B, Lqp // tq, Lkp // tk),
        in_specs=[
            pl.BlockSpec((1, 1, tk), lambda b, i, j: (b, 0, j)),
            pl.BlockSpec((1, tq, n_head * d_k), lambda b, i, j: (b, i, 0)),
            pl.BlockSpec((1, tk, n_head * d_k), lambda b, i, j: (b, j, 0)),
            pl.BlockSpec((1, tk, n_head * d_v), lambda b, i, j: (b, j, 0)),
        ],
        out_specs=pl.BlockSpec((1, tq, n_head * d_v), lambda b, i, j: (b, i, 0)),
        scratch_shapes=[pltpu.VMEM((n_head, tq, 1), jnp.float32),   # running max
                        pltpu.VMEM((n_head, tq, 1), jnp.float32),   # running denom
                        pltpu.VMEM((n_head, tq, d_v), jnp.float32)],
        compiler_params=_cparams("parallel", "parallel", "arbitrary"),
    )(kb, q, k, v)
    if Lqp != Lq:
        out = out[:, :Lq]
    return out


# ----------------------------------------------------------------------------
# Kernel: fused (embedding + positional encoding) add + LayerNorm
# ----------------------------------------------------------------------------
def _emb_pos_ln_kernel(x_ref, pos_ref, g_ref, b_ref, o_ref, *, eps):
    x = x_ref[0].astype(jnp.float32) + pos_ref[0]
    mu = jnp.mean(x, axis=-1, keepdims=True)
    xc = x - mu
    var = jnp.mean(xc * xc, axis=-1, keepdims=True)
    o_ref[0] = (xc * jax.lax.rsqrt(var + eps) * g_ref[0]
                + b_ref[0]).astype(o_ref.dtype)


def embed_pos_layernorm(x, pos, gamma, beta, eps=1e-6, out_dtype=jnp.bfloat16):
    """x: (B, L, D) gathered embeddings; pos: (1, L, D) f32 table slice."""
    B, L, D = x.shape
    return pl.pallas_call(
        functools.partial(_emb_pos_ln_kernel, eps=float(eps)),
        out_shape=jax.ShapeDtypeStruct((B, L, D), out_dtype),
        grid=(B,),
        in_specs=[
            pl.BlockSpec((1, L, D), lambda b: (b, 0, 0)),
            pl.BlockSpec((1, L, D), lambda b: (0, 0, 0)),
            pl.BlockSpec((1, 1, D), lambda b: (0, 0, 0)),
            pl.BlockSpec((1, 1, D), lambda b: (0, 0, 0)),
        ],
        out_specs=pl.BlockSpec((1, L, D), lambda b: (b, 0, 0)),
        compiler_params=_cparams("parallel"),
    )(x.astype(jnp.bfloat16), pos.astype(jnp.float32),
      gamma.reshape(1, 1, D).astype(jnp.float32),
      beta.reshape(1, 1, D).astype(jnp.float32))


# ----------------------------------------------------------------------------
# Kernel: output projection (logits = scale * x @ emb^T, bf16 HBM writeback)
# ----------------------------------------------------------------------------
def _outproj_kernel(x_ref, e_ref, o_ref, *, scale):
    y = jax.lax.dot_general(x_ref[...], e_ref[...],
                            dimension_numbers=(((1,), (1,)), ((), ())),
                            preferred_element_type=jnp.float32)
    o_ref[...] = (y * scale).astype(o_ref.dtype)


def output_projection(x, emb, scale, out_dtype=jnp.bfloat16):
    """x: (M, D), emb: (V, D) -> (M, V) bf16, scaled by scale_prj."""
    M, D = x.shape
    V = emb.shape[0]
    tm, Mp = _tile_and_pad(M, 512)   # big row tile -> fewer full (V, D) weight streams
    tv, Vp = _tile_and_pad(V, 512)
    x = _pad_axis(x.astype(jnp.bfloat16), 0, Mp)
    emb = _pad_axis(emb.astype(jnp.bfloat16), 0, Vp)
    out = pl.pallas_call(
        functools.partial(_outproj_kernel, scale=float(scale)),
        out_shape=jax.ShapeDtypeStruct((Mp, Vp), out_dtype),
        grid=(Mp // tm, Vp // tv),
        in_specs=[
            pl.BlockSpec((tm, D), lambda i, j: (i, 0)),
            pl.BlockSpec((tv, D), lambda i, j: (j, 0)),
        ],
        out_specs=pl.BlockSpec((tm, tv), lambda i, j: (i, j)),
        compiler_params=_cparams("parallel", "parallel"),
    )(x, emb)
    if (Mp, Vp) != (M, V):
        out = out[:M, :V]
    return out


# ----------------------------------------------------------------------------
# Model glue (plain JAX): masks-as-biases, embeddings, layer wiring
# ----------------------------------------------------------------------------
def make_key_bias(seq, pad_idx):
    """Additive key bias: 0 where token != pad, -1e9 where pad.  Shape (B, L) f32.
    Replaces the (B, Lq, Lk) boolean mask of the reference (causal part is in-kernel)."""
    return jnp.where(seq != pad_idx, 0.0, NEG_INF).astype(jnp.float32)


def sinusoid_table(n_position, d_hid):
    pos = np.arange(n_position)[:, None]
    hid = np.arange(d_hid)[None, :]
    angle = pos / np.power(10000.0, 2.0 * (hid // 2) / d_hid)
    table = np.zeros((n_position, d_hid), dtype=np.float32)
    table[:, 0::2] = np.sin(angle[:, 0::2])
    table[:, 1::2] = np.cos(angle[:, 1::2])
    return jnp.asarray(table)[None]                          # (1, n_position, d_hid)


def multi_head_attention(p, q_in, kv_in, key_bias, n_head, d_k, d_v,
                         self_attn, causal):
    B, Lq, D = q_in.shape
    Lk = kv_in.shape[1]
    n_q = n_head * d_k
    n_k = n_head * d_k
    residual = q_in.reshape(B * Lq, D)

    if self_attn:
        # fused Q/K/V projection: one activation read, one wide MXU matmul
        qkv = matmul(q_in.reshape(B * Lq, D), p["w_qkv"])
        q = qkv[:, :n_q].reshape(B, Lq, n_q)
        k = qkv[:, n_q:n_q + n_k].reshape(B, Lq, n_k)
        v = qkv[:, n_q + n_k:].reshape(B, Lq, n_head * d_v)
    else:
        q = matmul(q_in.reshape(B * Lq, D), p["w_qkv"][:, :n_q]).reshape(B, Lq, n_q)
        kv = matmul(kv_in.reshape(B * Lk, D), p["w_qkv"][:, n_q:])
        k = kv[:, :n_k].reshape(B, Lk, n_k)
        v = kv[:, n_k:].reshape(B, Lk, n_head * d_v)

    # lane-dense (B, L, H*d) layout straight into the attention kernel; no transposes
    o = flash_attention(q, k, v, key_bias,
                        n_head=n_head, d_k=d_k, d_v=d_v, causal=causal)
    o = o.reshape(B * Lq, n_head * d_v)

    # output projection fused with residual add + LayerNorm (fc has no bias)
    out = linear_residual_layernorm(o, p["fc"], None, residual,
                                    p["ln_g"], p["ln_b"])
    return out.reshape(B, Lq, D)


def positionwise_ffn(p, x):
    B, L, D = x.shape
    x2 = x.reshape(B * L, D)
    h = matmul(x2, p["w1"], p["b1"], activation="relu")
    out = linear_residual_layernorm(h, p["w2"], p["b2"], x2,
                                    p["ln_g"], p["ln_b"])
    return out.reshape(B, L, D)


def encoder_fwd(params, src_seq, src_kb, pos_table, cfg):
    x = params["emb"][src_seq]                               # (B, Ls, D) bf16 gather
    # scale_emb is False for default scale_emb_or_prj='prj'; dropout -> identity
    x = embed_pos_layernorm(x, pos_table[:, :x.shape[1]],
                            params["enc_ln_g"], params["enc_ln_b"])
    for lp in params["enc_layers"]:
        x = multi_head_attention(lp["slf"], x, x, src_kb,
                                 cfg["n_head"], cfg["d_k"], cfg["d_v"],
                                 self_attn=True, causal=False)
        x = positionwise_ffn(lp["ffn"], x)
    return x


def decoder_fwd(params, trg_seq, trg_kb, enc_output, src_kb, pos_table, cfg):
    x = params["emb"][trg_seq]
    x = embed_pos_layernorm(x, pos_table[:, :x.shape[1]],
                            params["dec_ln_g"], params["dec_ln_b"])
    for lp in params["dec_layers"]:
        x = multi_head_attention(lp["slf"], x, x, trg_kb,
                                 cfg["n_head"], cfg["d_k"], cfg["d_v"],
                                 self_attn=True, causal=True)
        x = multi_head_attention(lp["enc"], x, enc_output, src_kb,
                                 cfg["n_head"], cfg["d_k"], cfg["d_v"],
                                 self_attn=False, causal=False)
        x = positionwise_ffn(lp["ffn"], x)
    return x


def transformer_fwd(params, src_seq, trg_seq, cfg):
    src_kb = make_key_bias(src_seq, cfg["src_pad_idx"])      # pad mask over source keys
    trg_kb = make_key_bias(trg_seq, cfg["trg_pad_idx"])      # pad part; causal added in-kernel
    pos_table = params["pos_table"]
    enc_output = encoder_fwd(params, src_seq, src_kb, pos_table, cfg)
    dec_output = decoder_fwd(params, trg_seq, trg_kb, enc_output, src_kb,
                             pos_table, cfg)
    B, Lt, D = dec_output.shape
    # trg_word_prj shares the embedding weight: logits = scale_prj * x @ E^T  (bf16 out)
    logits = output_projection(dec_output.reshape(B * Lt, D),
                               params["emb"], cfg["d_model"] ** -0.5)
    return logits                                            # (B*Lt, n_trg_vocab) bf16


# ----------------------------------------------------------------------------
# Deterministic parameter initialization (xavier-uniform like the PyTorch init)
# ----------------------------------------------------------------------------
def _xavier(key, shape):
    bound = math.sqrt(6.0 / (shape[0] + shape[1]))
    return jax.random.uniform(key, shape, jnp.float32, -bound, bound)


def init_params(key, cfg):
    D, H, dk, dv, dff = cfg["d_model"], cfg["n_head"], cfg["d_k"], cfg["d_v"], cfg["d_inner"]
    V = cfg["n_vocab"]
    temperature = dk ** 0.5
    keys = iter(jax.random.split(key, 256))

    def attn_block():
        w_qs = _xavier(next(keys), (D, H * dk)) / temperature   # fold 1/sqrt(d_k) into W_q
        w_ks = _xavier(next(keys), (D, H * dk))
        w_vs = _xavier(next(keys), (D, H * dv))
        return {
            "w_qkv": jnp.concatenate([w_qs, w_ks, w_vs], axis=1).astype(jnp.bfloat16),
            "fc": _xavier(next(keys), (H * dv, D)).astype(jnp.bfloat16),
            "ln_g": jnp.ones((D,), jnp.float32),
            "ln_b": jnp.zeros((D,), jnp.float32),
        }

    def ffn_block():
        return {
            "w1": _xavier(next(keys), (D, dff)).astype(jnp.bfloat16),
            "b1": jax.random.uniform(next(keys), (dff,), jnp.float32,
                                     -1.0 / math.sqrt(D), 1.0 / math.sqrt(D)),
            "w2": _xavier(next(keys), (dff, D)).astype(jnp.bfloat16),
            "b2": jax.random.uniform(next(keys), (D,), jnp.float32,
                                     -1.0 / math.sqrt(dff), 1.0 / math.sqrt(dff)),
            "ln_g": jnp.ones((D,), jnp.float32),
            "ln_b": jnp.zeros((D,), jnp.float32),
        }

    # single shared bf16 embedding table: src emb == trg emb == output projection weight
    emb = _xavier(next(keys), (V, D)).astype(jnp.bfloat16)
    params = {
        "emb": emb,
        "pos_table": sinusoid_table(cfg["n_position"], D),
        "enc_ln_g": jnp.ones((D,), jnp.float32),
        "enc_ln_b": jnp.zeros((D,), jnp.float32),
        "dec_ln_g": jnp.ones((D,), jnp.float32),
        "dec_ln_b": jnp.zeros((D,), jnp.float32),
        "enc_layers": [{"slf": attn_block(), "ffn": ffn_block()}
                       for _ in range(cfg["n_layers"])],
        "dec_layers": [{"slf": attn_block(), "enc": attn_block(), "ffn": ffn_block()}
                       for _ in range(cfg["n_layers"])],
    }
    # TODO(synk): nn.Embedding padding_idx only affects gradients; no forward-pass effect, skipped.
    return params


# ----------------------------------------------------------------------------
if __name__ == "__main__":
    cfg = dict(
        n_vocab=32,          # shared src/trg vocab (weight sharing enabled by default)
        d_model=32, d_inner=64, n_layers=2, n_head=4, d_k=8, d_v=8,
        n_position=200, src_pad_idx=0, trg_pad_idx=0,
    )
    B, Ls, Lt = 2, 8, 8

    key = jax.random.PRNGKey(0)
    k_param, k_src, k_trg = jax.random.split(key, 3)
    params = init_params(k_param, cfg)

    src_seq = jax.random.randint(k_src, (B, Ls), 1, cfg["n_vocab"], dtype=jnp.int32)
    trg_seq = jax.random.randint(k_trg, (B, Lt), 1, cfg["n_vocab"], dtype=jnp.int32)
    # introduce some padding to exercise the pad masks
    src_seq = src_seq.at[1, -2:].set(cfg["src_pad_idx"])
    trg_seq = trg_seq.at[1, -1:].set(cfg["trg_pad_idx"])

    fwd = jax.jit(functools.partial(transformer_fwd, cfg=cfg))
    logits = jax.block_until_ready(fwd(params, src_seq, trg_seq))
    assert logits.shape == (B * Lt, cfg["n_vocab"]), logits.shape
    assert bool(jnp.all(jnp.isfinite(logits.astype(jnp.float32))))
    print("KERNEL_OK")
</pallas_src>

<mosaic_0001>
module attributes {stable_mosaic.version = 11 : i64} {
  func.func @_matmul_kernel(%arg0: i32, %arg1: i32, %arg2: i32, %arg3: memref<16x32xbf16, #tpu.memory_space<vmem>>, %arg4: memref<32x96xbf16, #tpu.memory_space<vmem>>, %arg5: memref<1x96xf32, #tpu.memory_space<vmem>>, %arg6: memref<16x96xbf16, #tpu.memory_space<vmem>>, %arg7: memref<16x96xf32, #tpu.memory_space<vmem>>) attributes {dimension_semantics = [#tpu.dimension_semantics<parallel>, #tpu.dimension_semantics<parallel>, #tpu.dimension_semantics<arbitrary>], iteration_bounds = array<i64: 1, 1, 1>, scalar_prefetch = 0 : i64, scratch_operands = 1 : i64, tpu.core_type = #tpu.core_type<tc>, window_params = [{transform_indices = @transform_0, window_bounds = array<i64: 16, 32>}, {transform_indices = @transform_1, window_bounds = array<i64: 32, 96>}, {transform_indices = @transform_2, window_bounds = array<i64: 1, 96>}, {transform_indices = @transform_3, window_bounds = array<i64: 16, 96>}]} {
    %c0_i32 = arith.constant 0 : i32
    %0 = arith.cmpi eq, %arg2, %c0_i32 : i32
    %1 = arith.extui %0 : i1 to i32
    %c0_i32_0 = arith.constant 0 : i32
    %2 = arith.cmpi ne, %1, %c0_i32_0 : i32
    scf.if %2 {
      %cst_10 = arith.constant 0.000000e+00 : f32
      %12 = vector.broadcast %cst_10 : f32 to vector<16x96xf32>
      %c0_11 = arith.constant 0 : index
      %c0_12 = arith.constant 0 : index
      %13 = vector.load %arg7[%c0_11, %c0_12] : memref<16x96xf32, #tpu.memory_space<vmem>>, vector<16x96xf32>
      tpu.vector_store %arg7[%c0_11, %c0_12], %12 {strides = array<i32>} : memref<16x96xf32, #tpu.memory_space<vmem>>, vector<16x96xf32>,
    } else {
    }
    %c0 = arith.constant 0 : index
    %c0_1 = arith.constant 0 : index
    %3 = vector.load %arg7[%c0, %c0_1] : memref<16x96xf32, #tpu.memory_space<vmem>>, vector<16x96xf32>
    %c0_2 = arith.constant 0 : index
    %c0_3 = arith.constant 0 : index
    %4 = vector.load %arg3[%c0_2, %c0_3] : memref<16x32xbf16, #tpu.memory_space<vmem>>, vector<16x32xbf16>
    %c0_4 = arith.constant 0 : index
    %c0_5 = arith.constant 0 : index
    %5 = vector.load %arg4[%c0_4, %c0_5] : memref<32x96xbf16, #tpu.memory_space<vmem>>, vector<32x96xbf16>
    %cst = arith.constant dense<0.000000e+00> : vector<16x96xf32>
    %6 = tpu.matmul %4, %5, %cst {dimension_numbers = #tpu.dot_dimension_numbers<[1], [0], [0], [1], [0, 0, 1, 1], [], []>} : vector<16x32xbf16>, vector<32x96xbf16>, vector<16x96xf32> -> vector<16x96xf32>
    %7 = arith.addf %3, %6 : vector<16x96xf32>
    %c0_6 = arith.constant 0 : index
    %c0_7 = arith.constant 0 : index
    %8 = vector.load %arg7[%c0_6, %c0_7] : memref<16x96xf32, #tpu.memory_space<vmem>>, vector<16x96xf32>
    tpu.vector_store %arg7[%c0_6, %c0_7], %7 {strides = array<i32>} : memref<16x96xf32, #tpu.memory_space<vmem>>, vector<16x96xf32>,
    %c0_i32_8 = arith.constant 0 : i32
    %9 = arith.cmpi eq, %arg2, %c0_i32_8 : i32
    %10 = arith.extui %9 : i1 to i32
    %c0_i32_9 = arith.constant 0 : i32
    %11 = arith.cmpi ne, %10, %c0_i32_9 : i32
    scf.if %11 {
      %c0_10 = arith.constant 0 : index
      %c0_11 = arith.constant 0 : index
      %12 = vector.load %arg7[%c0_10, %c0_11] : memref<16x96xf32, #tpu.memory_space<vmem>>, vector<16x96xf32>
      %c0_12 = arith.constant 0 : index
      %c0_13 = arith.constant 0 : index
      %13 = vector.load %arg5[%c0_12, %c0_13] : memref<1x96xf32, #tpu.memory_space<vmem>>, vector<1x96xf32>
      %14 = vector.broadcast %13 : vector<1x96xf32> to vector<16x96xf32>
      %15 = arith.addf %12, %14 : vector<16x96xf32>
      %16 = arith.truncf %15 : vector<16x96xf32> to vector<16x96xbf16>
      %c0_14 = arith.constant 0 : index
      %c0_15 = arith.constant 0 : index
      %17 = vector.load %arg6[%c0_14, %c0_15] : memref<16x96xbf16, #tpu.memory_space<vmem>>, vector<16x96xbf16>
      tpu.vector_store %arg6[%c0_14, %c0_15], %16 {strides = array<i32>} : memref<16x96xbf16, #tpu.memory_space<vmem>>, vector<16x96xbf16>,
    } else {
    }
    return
  }
  func.func @transform_0(%arg0: i32, %arg1: i32, %arg2: i32) -> (i32, i32) {
    %c0_i32 = arith.constant 0 : i32
    return %arg0, %arg2 : i32, i32
  }
  func.func @transform_1(%arg0: i32, %arg1: i32, %arg2: i32) -> (i32, i32) {
    %c0_i32 = arith.constant 0 : i32
    return %arg2, %arg1 : i32, i32
  }
  func.func @transform_2(%arg0: i32, %arg1: i32, %arg2: i32) -> (i32, i32) {
    %c0_i32 = arith.constant 0 : i32
    %c0_i32_0 = arith.constant 0 : i32
    return %c0_i32, %arg1 : i32, i32
  }
  func.func @transform_3(%arg0: i32, %arg1: i32, %arg2: i32) -> (i32, i32) {
    %c0_i32 = arith.constant 0 : i32
    return %arg0, %arg1 : i32, i32
  }
}

module attributes {stable_mosaic.version = 11 : i64} {
  func.func @_emb_pos_ln_kernel(%arg0: i32, %arg1: memref<1x8x32xbf16, #tpu.memory_space<vmem>>, %arg2: memref<1x8x32xf32, #tpu.memory_space<vmem>>, %arg3: memref<1x1x32xf32, #tpu.memory_space<vmem>>, %arg4: memref<1x1x32xf32, #tpu.memory_space<vmem>>, %arg5: memref<1x8x32xbf16, #tpu.memory_space<vmem>>) attributes {dimension_semantics = [#tpu.dimension_semantics<parallel>], iteration_bounds = array<i64: 2>, scalar_prefetch = 0 : i64, scratch_operands = 0 : i64, tpu.core_type = #tpu.core_type<tc>, window_params = [{transform_indices = @transform_0, window_bounds = array<i64: 1, 8, 32>}, {pipeline_mode = #tpu.pipeline_mode<synchronous>, transform_indices = @transform_1, window_bounds = array<i64: 1, 8, 32>}, {pipeline_mode = #tpu.pipeline_mode<synchronous>, transform_indices = @transform_2, window_bounds = array<i64: 1, 1, 32>}, {pipeline_mode = #tpu.pipeline_mode<synchronous>, transform_indices = @transform_3, window_bounds = array<i64: 1, 1, 32>}, {transform_indices = @transform_4, window_bounds = array<i64: 1, 8, 32>}]} {
    %c0 = arith.constant 0 : index
    %c0_0 = arith.constant 0 : index
    %c0_1 = arith.constant 0 : index
    %0 = vector.load %arg1[%c0, %c0_0, %c0_1] : memref<1x8x32xbf16, #tpu.memory_space<vmem>>, vector<1x8x32xbf16>
    %1 = vector.shape_cast %0 : vector<1x8x32xbf16> to vector<8x32xbf16>
    %2 = arith.extf %1 : vector<8x32xbf16> to vector<8x32xf32>
    %c0_2 = arith.constant 0 : index
    %c0_3 = arith.constant 0 : index
    %c0_4 = arith.constant 0 : index
    %3 = vector.load %arg2[%c0_2, %c0_3, %c0_4] : memref<1x8x32xf32, #tpu.memory_space<vmem>>, vector<1x8x32xf32>
    %4 = vector.shape_cast %3 : vector<1x8x32xf32> to vector<8x32xf32>
    %5 = arith.addf %2, %4 : vector<8x32xf32>
    %cst = arith.constant dense<0.000000e+00> : vector<8xf32>
    %6 = vector.multi_reduction <add>, %5, %cst [1] : vector<8x32xf32> to vector<8xf32>
    %7 = vector.shape_cast %6 : vector<8xf32> to vector<8x1xf32>
    %cst_5 = arith.constant 3.200000e+01 : f32
    %8 = vector.broadcast %cst_5 : f32 to vector<8x1xf32>
    %9 = arith.divf %7, %8 : vector<8x1xf32>
    %10 = vector.broadcast %9 : vector<8x1xf32> to vector<8x32xf32>
    %11 = arith.subf %5, %10 : vector<8x32xf32>
    %12 = arith.mulf %11, %11 : vector<8x32xf32>
    %cst_6 = arith.constant dense<0.000000e+00> : vector<8xf32>
    %13 = vector.multi_reduction <add>, %12, %cst_6 [1] : vector<8x32xf32> to vector<8xf32>
    %14 = vector.shape_cast %13 : vector<8xf32> to vector<8x1xf32>
    %cst_7 = arith.constant 3.200000e+01 : f32
    %15 = vector.broadcast %cst_7 : f32 to vector<8x1xf32>
    %16 = arith.divf %14, %15 : vector<8x1xf32>
    %cst_8 = arith.constant 9.99999997E-7 : f32
    %17 = vector.broadcast %cst_8 : f32 to vector<8x1xf32>
    %18 = arith.addf %16, %17 : vector<8x1xf32>
    %19 = math.rsqrt %18 : vector<8x1xf32>
    %20 = vector.broadcast %19 : vector<8x1xf32> to vector<8x32xf32>
    %21 = arith.mulf %11, %20 : vector<8x32xf32>
    %c0_9 = arith.constant 0 : index
    %c0_10 = arith.constant 0 : index
    %c0_11 = arith.constant 0 : index
    %22 = vector.load %arg3[%c0_9, %c0_10, %c0_11] : memref<1x1x32xf32, #tpu.memory_space<vmem>>, vector<1x1x32xf32>
    %23 = vector.shape_cast %22 : vector<1x1x32xf32> to vector<1x32xf32>
    %24 = vector.broadcast %23 : vector<1x32xf32> to vector<8x32xf32>
    %25 = arith.mulf %21, %24 : vector<8x32xf32>
    %c0_12 = arith.constant 0 : index
    %c0_13 = arith.constant 0 : index
    %c0_14 = arith.constant 0 : index
    %26 = vector.load %arg4[%c0_12, %c0_13, %c0_14] : memref<1x1x32xf32, #tpu.memory_space<vmem>>, vector<1x1x32xf32>
    %27 = vector.shape_cast %26 : vector<1x1x32xf32> to vector<1x32xf32>
    %28 = vector.broadcast %27 : vector<1x32xf32> to vector<8x32xf32>
    %29 = arith.addf %25, %28 : vector<8x32xf32>
    %30 = arith.truncf %29 : vector<8x32xf32> to vector<8x32xbf16>
    %c0_15 = arith.constant 0 : index
    %c0_16 = arith.constant 0 : index
    %c0_17 = arith.constant 0 : index
    %31 = vector.load %arg5[%c0_15, %c0_16, %c0_17] : memref<1x8x32xbf16, #tpu.memory_space<vmem>>, vector<1x8x32xbf16>
    %32 = vector.shape_cast %31 : vector<1x8x32xbf16> to vector<8x32xbf16>
    %33 = vector.shape_cast %30 : vector<8x32xbf16> to vector<1x8x32xbf16>
    tpu.vector_store %arg5[%c0_15, %c0_16, %c0_17], %33 {strides = array<i32>} : memref<1x8x32xbf16, #tpu.memory_space<vmem>>, vector<1x8x32xbf16>,
    return
  }
  func.func @transform_0(%arg0: i32) -> (i32, i32, i32) {
    %c0_i32 = arith.constant 0 : i32
    %c0_i32_0 = arith.constant 0 : i32
    %c0_i32_1 = arith.constant 0 : i32
    return %arg0, %c0_i32, %c0_i32_0 : i32, i32, i32
  }
  func.func @transform_1(%arg0: i32) -> (i32, i32, i32) {
    %c0_i32 = arith.constant 0 : i32
    %c0_i32_0 = arith.constant 0 : i32
    %c0_i32_1 = arith.constant 0 : i32
    %c0_i32_2 = arith.constant 0 : i32
    return %c0_i32, %c0_i32_0, %c0_i32_1 : i32, i32, i32
  }
  func.func @transform_2(%arg0: i32) -> (i32, i32, i32) {
    %c0_i32 = arith.constant 0 : i32
    %c0_i32_0 = arith.constant 0 : i32
    %c0_i32_1 = arith.constant 0 : i32
    %c0_i32_2 = arith.constant 0 : i32
    return %c0_i32, %c0_i32_0, %c0_i32_1 : i32, i32, i32
  }
  func.func @transform_3(%arg0: i32) -> (i32, i32, i32) {
    %c0_i32 = arith.constant 0 : i32
    %c0_i32_0 = arith.constant 0 : i32
    %c0_i32_1 = arith.constant 0 : i32
    %c0_i32_2 = arith.constant 0 : i32
    return %c0_i32, %c0_i32_0, %c0_i32_1 : i32, i32, i32
  }
  func.func @transform_4(%arg0: i32) -> (i32, i32, i32) {
    %c0_i32 = arith.constant 0 : i32
    %c0_i32_0 = arith.constant 0 : i32
    %c0_i32_1 = arith.constant 0 : i32
    return %arg0, %c0_i32, %c0_i32_0 : i32, i32, i32
  }
}

module attributes {stable_mosaic.version = 11 : i64} {
  func.func @_linear_res_ln_kernel(%arg0: i32, %arg1: i32, %arg2: memref<16x32xbf16, #tpu.memory_space<vmem>>, %arg3: memref<32x32xbf16, #tpu.memory_space<vmem>>, %arg4: memref<1x32xf32, #tpu.memory_space<vmem>>, %arg5: memref<16x32xbf16, #tpu.memory_space<vmem>>, %arg6: memref<1x32xf32, #tpu.memory_space<vmem>>, %arg7: memref<1x32xf32, #tpu.memory_space<vmem>>, %arg8: memref<16x32xbf16, #tpu.memory_space<vmem>>, %arg9: memref<16x32xf32, #tpu.memory_space<vmem>>) attributes {dimension_semantics = [#tpu.dimension_semantics<parallel>, #tpu.dimension_semantics<arbitrary>], iteration_bounds = array<i64: 1, 1>, scalar_prefetch = 0 : i64, scratch_operands = 1 : i64, tpu.core_type = #tpu.core_type<tc>, window_params = [{transform_indices = @transform_0, window_bounds = array<i64: 16, 32>}, {transform_indices = @transform_1, window_bounds = array<i64: 32, 32>}, {pipeline_mode = #tpu.pipeline_mode<synchronous>, transform_indices = @transform_2, window_bounds = array<i64: 1, 32>}, {transform_indices = @transform_3, window_bounds = array<i64: 16, 32>}, {pipeline_mode = #tpu.pipeline_mode<synchronous>, transform_indices = @transform_4, window_bounds = array<i64: 1, 32>}, {pipeline_mode = #tpu.pipeline_mode<synchronous>, transform_indices = @transform_5, window_bounds = array<i64: 1, 32>}, {transform_indices = @transform_6, window_bounds = array<i64: 16, 32>}]} {
    %c0_i32 = arith.constant 0 : i32
    %0 = arith.cmpi eq, %arg1, %c0_i32 : i32
    %1 = arith.extui %0 : i1 to i32
    %c0_i32_0 = arith.constant 0 : i32
    %2 = arith.cmpi ne, %1, %c0_i32_0 : i32
    scf.if %2 {
      %cst_10 = arith.constant 0.000000e+00 : f32
      %12 = vector.broadcast %cst_10 : f32 to vector<16x32xf32>
      %c0_11 = arith.constant 0 : index
      %c0_12 = arith.constant 0 : index
      %13 = vector.load %arg9[%c0_11, %c0_12] : memref<16x32xf32, #tpu.memory_space<vmem>>, vector<16x32xf32>
      tpu.vector_store %arg9[%c0_11, %c0_12], %12 {strides = array<i32>} : memref<16x32xf32, #tpu.memory_space<vmem>>, vector<16x32xf32>,
    } else {
    }
    %c0 = arith.constant 0 : index
    %c0_1 = arith.constant 0 : index
    %3 = vector.load %arg9[%c0, %c0_1] : memref<16x32xf32, #tpu.memory_space<vmem>>, vector<16x32xf32>
    %c0_2 = arith.constant 0 : index
    %c0_3 = arith.constant 0 : index
    %4 = vector.load %arg2[%c0_2, %c0_3] : memref<16x32xbf16, #tpu.memory_space<vmem>>, vector<16x32xbf16>
    %c0_4 = arith.constant 0 : index
    %c0_5 = arith.constant 0 : index
    %5 = vector.load %arg3[%c0_4, %c0_5] : memref<32x32xbf16, #tpu.memory_space<vmem>>, vector<32x32xbf16>
    %cst = arith.constant dense<0.000000e+00> : vector<16x32xf32>
    %6 = tpu.matmul %4, %5, %cst {dimension_numbers = #tpu.dot_dimension_numbers<[1], [0], [0], [1], [0, 0, 1, 1], [], []>} : vector<16x32xbf16>, vector<32x32xbf16>, vector<16x32xf32> -> vector<16x32xf32>
    %7 = arith.addf %3, %6 : vector<16x32xf32>
    %c0_6 = arith.constant 0 : index
    %c0_7 = arith.constant 0 : index
    %8 = vector.load %arg9[%c0_6, %c0_7] : memref<16x32xf32, #tpu.memory_space<vmem>>, vector<16x32xf32>
    tpu.vector_store %arg9[%c0_6, %c0_7], %7 {strides = array<i32>} : memref<16x32xf32, #tpu.memory_space<vmem>>, vector<16x32xf32>,
    %c0_i32_8 = arith.constant 0 : i32
    %9 = arith.cmpi eq, %arg1, %c0_i32_8 : i32
    %10 = arith.extui %9 : i1 to i32
    %c0_i32_9 = arith.constant 0 : i32
    %11 = arith.cmpi ne, %10, %c0_i32_9 : i32
    scf.if %11 {
      %c0_10 = arith.constant 0 : index
      %c0_11 = arith.constant 0 : index
      %12 = vector.load %arg9[%c0_10, %c0_11] : memref<16x32xf32, #tpu.memory_space<vmem>>, vector<16x32xf32>
      %c0_12 = arith.constant 0 : index
      %c0_13 = arith.constant 0 : index
      %13 = vector.load %arg4[%c0_12, %c0_13] : memref<1x32xf32, #tpu.memory_space<vmem>>, vector<1x32xf32>
      %14 = vector.broadcast %13 : vector<1x32xf32> to vector<16x32xf32>
      %15 = arith.addf %12, %14 : vector<16x32xf32>
      %c0_14 = arith.constant 0 : index
      %c0_15 = arith.constant 0 : index
      %16 = vector.load %arg5[%c0_14, %c0_15] : memref<16x32xbf16, #tpu.memory_space<vmem>>, vector<16x32xbf16>
      %17 = arith.extf %16 : vector<16x32xbf16> to vector<16x32xf32>
      %18 = arith.addf %15, %17 : vector<16x32xf32>
      %cst_16 = arith.constant dense<0.000000e+00> : vector<16xf32>
      %19 = vector.multi_reduction <add>, %18, %cst_16 [1] : vector<16x32xf32> to vector<16xf32>
      %20 = vector.shape_cast %19 : vector<16xf32> to vector<16x1xf32>
      %cst_17 = arith.constant 3.200000e+01 : f32
      %21 = vector.broadcast %cst_17 : f32 to vector<16x1xf32>
      %22 = arith.divf %20, %21 : vector<16x1xf32>
      %23 = vector.broadcast %22 : vector<16x1xf32> to vector<16x32xf32>
      %24 = arith.subf %18, %23 : vector<16x32xf32>
      %25 = arith.mulf %24, %24 : vector<16x32xf32>
      %cst_18 = arith.constant dense<0.000000e+00> : vector<16xf32>
      %26 = vector.multi_reduction <add>, %25, %cst_18 [1] : vector<16x32xf32> to vector<16xf32>
      %27 = vector.shape_cast %26 : vector<16xf32> to vector<16x1xf32>
      %cst_19 = arith.constant 3.200000e+01 : f32
      %28 = vector.broadcast %cst_19 : f32 to vector<16x1xf32>
      %29 = arith.divf %27, %28 : vector<16x1xf32>
      %cst_20 = arith.constant 9.99999997E-7 : f32
      %30 = vector.broadcast %cst_20 : f32 to vector<16x1xf32>
      %31 = arith.addf %29, %30 : vector<16x1xf32>
      %32 = math.rsqrt %31 : vector<16x1xf32>
      %33 = vector.broadcast %32 : vector<16x1xf32> to vector<16x32xf32>
      %34 = arith.mulf %24, %33 : vector<16x32xf32>
      %c0_21 = arith.constant 0 : index
      %c0_22 = arith.constant 0 : index
      %35 = vector.load %arg6[%c0_21, %c0_22] : memref<1x32xf32, #tpu.memory_space<vmem>>, vector<1x32xf32>
      %36 = vector.broadcast %35 : vector<1x32xf32> to vector<16x32xf32>
      %37 = arith.mulf %34, %36 : vector<16x32xf32>
      %c0_23 = arith.constant 0 : index
      %c0_24 = arith.constant 0 : index
      %38 = vector.load %arg7[%c0_23, %c0_24] : memref<1x32xf32, #tpu.memory_space<vmem>>, vector<1x32xf32>
      %39 = vector.broadcast %38 : vector<1x32xf32> to vector<16x32xf32>
      %40 = arith.addf %37, %39 : vector<16x32xf32>
      %41 = arith.truncf %40 : vector<16x32xf32> to vector<16x32xbf16>
      %c0_25 = arith.constant 0 : index
      %c0_26 = arith.constant 0 : index
      %42 = vector.load %arg8[%c0_25, %c0_26] : memref<16x32xbf16, #tpu.memory_space<vmem>>, vector<16x32xbf16>
      tpu.vector_store %arg8[%c0_25, %c0_26], %41 {strides = array<i32>} : memref<16x32xbf16, #tpu.memory_space<vmem>>, vector<16x32xbf16>,
    } else {
    }
    return
  }
  func.func @transform_0(%arg0: i32, %arg1: i32) -> (i32, i32) {
    %c0_i32 = arith.constant 0 : i32
    return %arg0, %arg1 : i32, i32
  }
  func.func @transform_1(%arg0: i32, %arg1: i32) -> (i32, i32) {
    %c0_i32 = arith.constant 0 : i32
    %c0_i32_0 = arith.constant 0 : i32
    return %arg1, %c0_i32 : i32, i32
  }
  func.func @transform_2(%arg0: i32, %arg1: i32) -> (i32, i32) {
    %c0_i32 = arith.constant 0 : i32
    %c0_i32_0 = arith.constant 0 : i32
    %c0_i32_1 = arith.constant 0 : i32
    return %c0_i32, %c0_i32_0 : i32, i32
  }
  func.func @transform_3(%arg0: i32, %arg1: i32) -> (i32, i32) {
    %c0_i32 = arith.constant 0 : i32
    %c0_i32_0 = arith.constant 0 : i32
    return %arg0, %c0_i32 : i32, i32
  }
  func.func @transform_4(%arg0: i32, %arg1: i32) -> (i32, i32) {
    %c0_i32 = arith.constant 0 : i32
    %c0_i32_0 = arith.constant 0 : i32
    %c0_i32_1 = arith.constant 0 : i32
    return %c0_i32, %c0_i32_0 : i32, i32
  }
  func.func @transform_5(%arg0: i32, %arg1: i32) -> (i32, i32) {
    %c0_i32 = arith.constant 0 : i32
    %c0_i32_0 = arith.constant 0 : i32
    %c0_i32_1 = arith.constant 0 : i32
    return %c0_i32, %c0_i32_0 : i32, i32
  }
  func.func @transform_6(%arg0: i32, %arg1: i32) -> (i32, i32) {
    %c0_i32 = arith.constant 0 : i32
    %c0_i32_0 = arith.constant 0 : i32
    return %arg0, %c0_i32 : i32, i32
  }
}

module attributes {stable_mosaic.version = 11 : i64} {
  func.func @_flash_attn_kernel(%arg0: i32, %arg1: i32, %arg2: i32, %arg3: memref<1x1x8xf32, #tpu.memory_space<vmem>>, %arg4: memref<1x8x32xbf16, #tpu.memory_space<vmem>>, %arg5: memref<1x8x32xbf16, #tpu.memory_space<vmem>>, %arg6: memref<1x8x32xbf16, #tpu.memory_space<vmem>>, %arg7: memref<1x8x32xbf16, #tpu.memory_space<vmem>>, %arg8: memref<4x8x1xf32, #tpu.memory_space<vmem>>, %arg9: memref<4x8x1xf32, #tpu.memory_space<vmem>>, %arg10: memref<4x8x8xf32, #tpu.memory_space<vmem>>) attributes {dimension_semantics = [#tpu.dimension_semantics<parallel>, #tpu.dimension_semantics<parallel>, #tpu.dimension_semantics<arbitrary>], iteration_bounds = array<i64: 2, 1, 1>, scalar_prefetch = 0 : i64, scratch_operands = 3 : i64, tpu.core_type = #tpu.core_type<tc>, window_params = [{transform_indices = @transform_0, window_bounds = array<i64: 1, 1, 8>}, {transform_indices = @transform_1, window_bounds = array<i64: 1, 8, 32>}, {transform_indices = @transform_2, window_bounds = array<i64: 1, 8, 32>}, {transform_indices = @transform_3, window_bounds = array<i64: 1, 8, 32>}, {transform_indices = @transform_4, window_bounds = array<i64: 1, 8, 32>}]} {
    %c0_i32 = arith.constant 0 : i32
    %0 = arith.cmpi eq, %arg2, %c0_i32 : i32
    %1 = arith.extui %0 : i1 to i32
    %c0_i32_0 = arith.constant 0 : i32
    %2 = arith.cmpi ne, %1, %c0_i32_0 : i32
    scf.if %2 {
      %cst_122 = arith.constant 0xFF800000 : f32
      %172 = vector.broadcast %cst_122 : f32 to vector<4x8x1xf32>
      %c0_123 = arith.constant 0 : index
      %c0_124 = arith.constant 0 : index
      %c0_125 = arith.constant 0 : index
      %173 = vector.load %arg8[%c0_123, %c0_124, %c0_125] : memref<4x8x1xf32, #tpu.memory_space<vmem>>, vector<4x8x1xf32>
      tpu.vector_store %arg8[%c0_123, %c0_124, %c0_125], %172 {strides = array<i32>} : memref<4x8x1xf32, #tpu.memory_space<vmem>>, vector<4x8x1xf32>,
      %cst_126 = arith.constant 0.000000e+00 : f32
      %174 = vector.broadcast %cst_126 : f32 to vector<4x8x1xf32>
      %c0_127 = arith.constant 0 : index
      %c0_128 = arith.constant 0 : index
      %c0_129 = arith.constant 0 : index
      %175 = vector.load %arg9[%c0_127, %c0_128, %c0_129] : memref<4x8x1xf32, #tpu.memory_space<vmem>>, vector<4x8x1xf32>
      tpu.vector_store %arg9[%c0_127, %c0_128, %c0_129], %174 {strides = array<i32>} : memref<4x8x1xf32, #tpu.memory_space<vmem>>, vector<4x8x1xf32>,
      %cst_130 = arith.constant 0.000000e+00 : f32
      %176 = vector.broadcast %cst_130 : f32 to vector<4x8x8xf32>
      %c0_131 = arith.constant 0 : index
      %c0_132 = arith.constant 0 : index
      %c0_133 = arith.constant 0 : index
      %177 = vector.load %arg10[%c0_131, %c0_132, %c0_133] : memref<4x8x8xf32, #tpu.memory_space<vmem>>, vector<4x8x8xf32>
      tpu.vector_store %arg10[%c0_131, %c0_132, %c0_133], %176 {strides = array<i32>} : memref<4x8x8xf32, #tpu.memory_space<vmem>>, vector<4x8x8xf32>,
    } else {
    }
    %c0 = arith.constant 0 : index
    %c0_1 = arith.constant 0 : index
    %c0_2 = arith.constant 0 : index
    %3 = vector.load %arg3[%c0, %c0_1, %c0_2] : memref<1x1x8xf32, #tpu.memory_space<vmem>>, vector<1x1x8xf32>
    %4 = vector.shape_cast %3 : vector<1x1x8xf32> to vector<1x8xf32>
    %c0_3 = arith.constant 0 : index
    %c0_4 = arith.constant 0 : index
    %c0_5 = arith.constant 0 : index
    %5 = vector.load %arg4[%c0_3, %c0_4, %c0_5] : memref<1x8x32xbf16, #tpu.memory_space<vmem>>, vector<1x8x8xbf16>
    %6 = vector.shape_cast %5 : vector<1x8x8xbf16> to vector<8x8xbf16>
    %c0_6 = arith.constant 0 : index
    %c0_7 = arith.constant 0 : index
    %c0_8 = arith.constant 0 : index
    %7 = vector.load %arg5[%c0_6, %c0_7, %c0_8] : memref<1x8x32xbf16, #tpu.memory_space<vmem>>, vector<1x8x8xbf16>
    %8 = vector.shape_cast %7 : vector<1x8x8xbf16> to vector<8x8xbf16>
    %c0_9 = arith.constant 0 : index
    %c0_10 = arith.constant 0 : index
    %c0_11 = arith.constant 0 : index
    %9 = vector.load %arg6[%c0_9, %c0_10, %c0_11] : memref<1x8x32xbf16, #tpu.memory_space<vmem>>, vector<1x8x8xbf16>
    %10 = vector.shape_cast %9 : vector<1x8x8xbf16> to vector<8x8xbf16>
    %cst = arith.constant dense<0.000000e+00> : vector<8x8xf32>
    %11 = tpu.matmul %6, %8, %cst {dimension_numbers = #tpu.dot_dimension_numbers<[1], [1], [0], [0], [0, 0, 1, 0], [], []>} : vector<8x8xbf16>, vector<8x8xbf16>, vector<8x8xf32> -> vector<8x8xf32>
    %12 = vector.broadcast %4 : vector<1x8xf32> to vector<8x8xf32>
    %13 = arith.addf %11, %12 : vector<8x8xf32>
    %c0_12 = arith.constant 0 : index
    %c0_13 = arith.constant 0 : index
    %c0_14 = arith.constant 0 : index
    %14 = vector.load %arg8[%c0_12, %c0_13, %c0_14] : memref<4x8x1xf32, #tpu.memory_space<vmem>>, vector<1x8x1xf32>
    %15 = vector.shape_cast %14 : vector<1x8x1xf32> to vector<8x1xf32>
    %cst_15 = arith.constant dense<0xFF800000> : vector<8xf32>
    %16 = vector.multi_reduction <maximumf>, %13, %cst_15 [1] : vector<8x8xf32> to vector<8xf32>
    %17 = vector.shape_cast %16 : vector<8xf32> to vector<8x1xf32>
    %18 = arith.maximumf %15, %17 : vector<8x1xf32>
    %19 = arith.subf %15, %18 : vector<8x1xf32>
    %20 = math.exp %19 : vector<8x1xf32>
    %21 = vector.broadcast %18 : vector<8x1xf32> to vector<8x8xf32>
    %22 = arith.subf %13, %21 : vector<8x8xf32>
    %23 = math.exp %22 : vector<8x8xf32>
    %c0_16 = arith.constant 0 : index
    %c0_17 = arith.constant 0 : index
    %c0_18 = arith.constant 0 : index
    %24 = vector.load %arg9[%c0_16, %c0_17, %c0_18] : memref<4x8x1xf32, #tpu.memory_space<vmem>>, vector<1x8x1xf32>
    %25 = vector.shape_cast %24 : vector<1x8x1xf32> to vector<8x1xf32>
    %26 = arith.mulf %20, %25 : vector<8x1xf32>
    %cst_19 = arith.constant dense<0.000000e+00> : vector<8xf32>
    %27 = vector.multi_reduction <add>, %23, %cst_19 [1] : vector<8x8xf32> to vector<8xf32>
    %28 = vector.shape_cast %27 : vector<8xf32> to vector<8x1xf32>
    %29 = arith.addf %26, %28 : vector<8x1xf32>
    %c0_20 = arith.constant 0 : index
    %c0_21 = arith.constant 0 : index
    %c0_22 = arith.constant 0 : index
    %30 = vector.load %arg9[%c0_20, %c0_21, %c0_22] : memref<4x8x1xf32, #tpu.memory_space<vmem>>, vector<1x8x1xf32>
    %31 = vector.shape_cast %30 : vector<1x8x1xf32> to vector<8x1xf32>
    %32 = vector.shape_cast %29 : vector<8x1xf32> to vector<1x8x1xf32>
    tpu.vector_store %arg9[%c0_20, %c0_21, %c0_22], %32 {strides = array<i32>} : memref<4x8x1xf32, #tpu.memory_space<vmem>>, vector<1x8x1xf32>,
    %33 = arith.truncf %23 : vector<8x8xf32> to vector<8x8xbf16>
    %cst_23 = arith.constant dense<0.000000e+00> : vector<8x8xf32>
    %34 = tpu.matmul %33, %10, %cst_23 {dimension_numbers = #tpu.dot_dimension_numbers<[1], [0], [0], [1], [0, 0, 1, 1], [], []>} : vector<8x8xbf16>, vector<8x8xbf16>, vector<8x8xf32> -> vector<8x8xf32>
    %c0_24 = arith.constant 0 : index
    %c0_25 = arith.constant 0 : index
    %c0_26 = arith.constant 0 : index
    %35 = vector.load %arg10[%c0_24, %c0_25, %c0_26] : memref<4x8x8xf32, #tpu.memory_space<vmem>>, vector<1x8x8xf32>
    %36 = vector.shape_cast %35 : vector<1x8x8xf32> to vector<8x8xf32>
    %37 = vector.broadcast %20 : vector<8x1xf32> to vector<8x8xf32>
    %38 = arith.mulf %37, %36 : vector<8x8xf32>
    %39 = arith.addf %38, %34 : vector<8x8xf32>
    %c0_27 = arith.constant 0 : index
    %c0_28 = arith.constant 0 : index
    %c0_29 = arith.constant 0 : index
    %40 = vector.load %arg10[%c0_27, %c0_28, %c0_29] : memref<4x8x8xf32, #tpu.memory_space<vmem>>, vector<1x8x8xf32>
    %41 = vector.shape_cast %40 : vector<1x8x8xf32> to vector<8x8xf32>
    %42 = vector.shape_cast %39 : vector<8x8xf32> to vector<1x8x8xf32>
    tpu.vector_store %arg10[%c0_27, %c0_28, %c0_29], %42 {strides = array<i32>} : memref<4x8x8xf32, #tpu.memory_space<vmem>>, vector<1x8x8xf32>,
    %c0_30 = arith.constant 0 : index
    %c0_31 = arith.constant 0 : index
    %c0_32 = arith.constant 0 : index
    %43 = vector.load %arg8[%c0_30, %c0_31, %c0_32] : memref<4x8x1xf32, #tpu.memory_space<vmem>>, vector<1x8x1xf32>
    %44 = vector.shape_cast %43 : vector<1x8x1xf32> to vector<8x1xf32>
    %45 = vector.shape_cast %18 : vector<8x1xf32> to vector<1x8x1xf32>
    tpu.vector_store %arg8[%c0_30, %c0_31, %c0_32], %45 {strides = array<i32>} : memref<4x8x1xf32, #tpu.memory_space<vmem>>, vector<1x8x1xf32>,
    %c0_33 = arith.constant 0 : index
    %c0_34 = arith.constant 0 : index
    %c8 = arith.constant 8 : index
    %46 = vector.load %arg4[%c0_33, %c0_34, %c8] : memref<1x8x32xbf16, #tpu.memory_space<vmem>>, vector<1x8x8xbf16>
    %47 = vector.shape_cast %46 : vector<1x8x8xbf16> to vector<8x8xbf16>
    %c0_35 = arith.constant 0 : index
    %c0_36 = arith.constant 0 : index
    %c8_37 = arith.constant 8 : index
    %48 = vector.load %arg5[%c0_35, %c0_36, %c8_37] : memref<1x8x32xbf16, #tpu.memory_space<vmem>>, vector<1x8x8xbf16>
    %49 = vector.shape_cast %48 : vector<1x8x8xbf16> to vector<8x8xbf16>
    %c0_38 = arith.constant 0 : index
    %c0_39 = arith.constant 0 : index
    %c8_40 = arith.constant 8 : index
    %50 = vector.load %arg6[%c0_38, %c0_39, %c8_40] : memref<1x8x32xbf16, #tpu.memory_space<vmem>>, vector<1x8x8xbf16>
    %51 = vector.shape_cast %50 : vector<1x8x8xbf16> to vector<8x8xbf16>
    %cst_41 = arith.constant dense<0.000000e+00> : vector<8x8xf32>
    %52 = tpu.matmul %47, %49, %cst_41 {dimension_numbers = #tpu.dot_dimension_numbers<[1], [1], [0], [0], [0, 0, 1, 0], [], []>} : vector<8x8xbf16>, vector<8x8xbf16>, vector<8x8xf32> -> vector<8x8xf32>
    %53 = vector.broadcast %4 : vector<1x8xf32> to vector<8x8xf32>
    %54 = arith.addf %52, %53 : vector<8x8xf32>
    %c1 = arith.constant 1 : index
    %c0_42 = arith.constant 0 : index
    %c0_43 = arith.constant 0 : index
    %55 = vector.load %arg8[%c1, %c0_42, %c0_43] : memref<4x8x1xf32, #tpu.memory_space<vmem>>, vector<1x8x1xf32>
    %56 = vector.shape_cast %55 : vector<1x8x1xf32> to vector<8x1xf32>
    %cst_44 = arith.constant dense<0xFF800000> : vector<8xf32>
    %57 = vector.multi_reduction <maximumf>, %54, %cst_44 [1] : vector<8x8xf32> to vector<8xf32>
    %58 = vector.shape_cast %57 : vector<8xf32> to vector<8x1xf32>
    %59 = arith.maximumf %56, %58 : vector<8x1xf32>
    %60 = arith.subf %56, %59 : vector<8x1xf32>
    %61 = math.exp %60 : vector<8x1xf32>
    %62 = vector.broadcast %59 : vector<8x1xf32> to vector<8x8xf32>
    %63 = arith.subf %54, %62 : vector<8x8xf32>
    %64 = math.exp %63 : vector<8x8xf32>
    %c1_45 = arith.constant 1 : index
    %c0_46 = arith.constant 0 : index
    %c0_47 = arith.constant 0 : index
    %65 = vector.load %arg9[%c1_45, %c0_46, %c0_47] : memref<4x8x1xf32, #tpu.memory_space<vmem>>, vector<1x8x1xf32>
    %66 = vector.shape_cast %65 : vector<1x8x1xf32> to vector<8x1xf32>
    %67 = arith.mulf %61, %66 : vector<8x1xf32>
    %cst_48 = arith.constant dense<0.000000e+00> : vector<8xf32>
    %68 = vector.multi_reduction <add>, %64, %cst_48 [1] : vector<8x8xf32> to vector<8xf32>
    %69 = vector.shape_cast %68 : vector<8xf32> to vector<8x1xf32>
    %70 = arith.addf %67, %69 : vector<8x1xf32>
    %c1_49 = arith.constant 1 : index
    %c0_50 = arith.constant 0 : index
    %c0_51 = arith.constant 0 : index
    %71 = vector.load %arg9[%c1_49, %c0_50, %c0_51] : memref<4x8x1xf32, #tpu.memory_space<vmem>>, vector<1x8x1xf32>
    %72 = vector.shape_cast %71 : vector<1x8x1xf32> to vector<8x1xf32>
    %73 = vector.shape_cast %70 : vector<8x1xf32> to vector<1x8x1xf32>
    tpu.vector_store %arg9[%c1_49, %c0_50, %c0_51], %73 {strides = array<i32>} : memref<4x8x1xf32, #tpu.memory_space<vmem>>, vector<1x8x1xf32>,
    %74 = arith.truncf %64 : vector<8x8xf32> to vector<8x8xbf16>
    %cst_52 = arith.constant dense<0.000000e+00> : vector<8x8xf32>
    %75 = tpu.matmul %74, %51, %cst_52 {dimension_numbers = #tpu.dot_dimension_numbers<[1], [0], [0], [1], [0, 0, 1, 1], [], []>} : vector<8x8xbf16>, vector<8x8xbf16>, vector<8x8xf32> -> vector<8x8xf32>
    %c1_53 = arith.constant 1 : index
    %c0_54 = arith.constant 0 : index
    %c0_55 = arith.constant 0 : index
    %76 = vector.load %arg10[%c1_53, %c0_54, %c0_55] : memref<4x8x8xf32, #tpu.memory_space<vmem>>, vector<1x8x8xf32>
    %77 = vector.shape_cast %76 : vector<1x8x8xf32> to vector<8x8xf32>
    %78 = vector.broadcast %61 : vector<8x1xf32> to vector<8x8xf32>
    %79 = arith.mulf %78, %77 : vector<8x8xf32>
    %80 = arith.addf %79, %75 : vector<8x8xf32>
    %c1_56 = arith.constant 1 : index
    %c0_57 = arith.constant 0 : index
    %c0_58 = arith.constant 0 : index
    %81 = vector.load %arg10[%c1_56, %c0_57, %c0_58] : memref<4x8x8xf32, #tpu.memory_space<vmem>>, vector<1x8x8xf32>
    %82 = vector.shape_cast %81 : vector<1x8x8xf32> to vector<8x8xf32>
    %83 = vector.shape_cast %80 : vector<8x8xf32> to vector<1x8x8xf32>
    tpu.vector_store %arg10[%c1_56, %c0_57, %c0_58], %83 {strides = array<i32>} : memref<4x8x8xf32, #tpu.memory_space<vmem>>, vector<1x8x8xf32>,
    %c1_59 = arith.constant 1 : index
    %c0_60 = arith.constant 0 : index
    %c0_61 = arith.constant 0 : index
    %84 = vector.load %arg8[%c1_59, %c0_60, %c0_61] : memref<4x8x1xf32, #tpu.memory_space<vmem>>, vector<1x8x1xf32>
    %85 = vector.shape_cast %84 : vector<1x8x1xf32> to vector<8x1xf32>
    %86 = vector.shape_cast %59 : vector<8x1xf32> to vector<1x8x1xf32>
    tpu.vector_store %arg8[%c1_59, %c0_60, %c0_61], %86 {strides = array<i32>} : memref<4x8x1xf32, #tpu.memory_space<vmem>>, vector<1x8x1xf32>,
    %c0_62 = arith.constant 0 : index
    %c0_63 = arith.constant 0 : index
    %c16 = arith.constant 16 : index
    %87 = vector.load %arg4[%c0_62, %c0_63, %c16] : memref<1x8x32xbf16, #tpu.memory_space<vmem>>, vector<1x8x8xbf16>
    %88 = vector.shape_cast %87 : vector<1x8x8xbf16> to vector<8x8xbf16>
    %c0_64 = arith.constant 0 : index
    %c0_65 = arith.constant 0 : index
    %c16_66 = arith.constant 16 : index
    %89 = vector.load %arg5[%c0_64, %c0_65, %c16_66] : memref<1x8x32xbf16, #tpu.memory_space<vmem>>, vector<1x8x8xbf16>
    %90 = vector.shape_cast %89 : vector<1x8x8xbf16> to vector<8x8xbf16>
    %c0_67 = arith.constant 0 : index
    %c0_68 = arith.constant 0 : index
    %c16_69 = arith.constant 16 : index
    %91 = vector.load %arg6[%c0_67, %c0_68, %c16_69] : memref<1x8x32xbf16, #tpu.memory_space<vmem>>, vector<1x8x8xbf16>
    %92 = vector.shape_cast %91 : vector<1x8x8xbf16> to vector<8x8xbf16>
    %cst_70 = arith.constant dense<0.000000e+00> : vector<8x8xf32>
    %93 = tpu.matmul %88, %90, %cst_70 {dimension_numbers = #tpu.dot_dimension_numbers<[1], [1], [0], [0], [0, 0, 1, 0], [], []>} : vector<8x8xbf16>, vector<8x8xbf16>, vector<8x8xf32> -> vector<8x8xf32>
    %94 = vector.broadcast %4 : vector<1x8xf32> to vector<8x8xf32>
    %95 = arith.addf %93, %94 : vector<8x8xf32>
    %c2 = arith.constant 2 : index
    %c0_71 = arith.constant 0 : index
    %c0_72 = arith.constant 0 : index
    %96 = vector.load %arg8[%c2, %c0_71, %c0_72] : memref<4x8x1xf32, #tpu.memory_space<vmem>>, vector<1x8x1xf32>
    %97 = vector.shape_cast %96 : vector<1x8x1xf32> to vector<8x1xf32>
    %cst_73 = arith.constant dense<0xFF800000> : vector<8xf32>
    %98 = vector.multi_reduction <maximumf>, %95, %cst_73 [1] : vector<8x8xf32> to vector<8xf32>
    %99 = vector.shape_cast %98 : vector<8xf32> to vector<8x1xf32>
    %100 = arith.maximumf %97, %99 : vector<8x1xf32>
    %101 = arith.subf %97, %100 : vector<8x1xf32>
    %102 = math.exp %101 : vector<8x1xf32>
    %103 = vector.broadcast %100 : vector<8x1xf32> to vector<8x8xf32>
    %104 = arith.subf %95, %103 : vector<8x8xf32>
    %105 = math.exp %104 : vector<8x8xf32>
    %c2_74 = arith.constant 2 : index
    %c0_75 = arith.constant 0 : index
    %c0_76 = arith.constant 0 : index
    %106 = vector.load %arg9[%c2_74, %c0_75, %c0_76] : memref<4x8x1xf32, #tpu.memory_space<vmem>>, vector<1x8x1xf32>
    %107 = vector.shape_cast %106 : vector<1x8x1xf32> to vector<8x1xf32>
    %108 = arith.mulf %102, %107 : vector<8x1xf32>
    %cst_77 = arith.constant dense<0.000000e+00> : vector<8xf32>
    %109 = vector.multi_reduction <add>, %105, %cst_77 [1] : vector<8x8xf32> to vector<8xf32>
    %110 = vector.shape_cast %109 : vector<8xf32> to vector<8x1xf32>
    %111 = arith.addf %108, %110 : vector<8x1xf32>
    %c2_78 = arith.constant 2 : index
    %c0_79 = arith.constant 0 : index
    %c0_80 = arith.constant 0 : index
    %112 = vector.load %arg9[%c2_78, %c0_79, %c0_80] : memref<4x8x1xf32, #tpu.memory_space<vmem>>, vector<1x8x1xf32>
    %113 = vector.shape_cast %112 : vector<1x8x1xf32> to vector<8x1xf32>
    %114 = vector.shape_cast %111 : vector<8x1xf32> to vector<1x8x1xf32>
    tpu.vector_store %arg9[%c2_78, %c0_79, %c0_80], %114 {strides = array<i32>} : memref<4x8x1xf32, #tpu.memory_space<vmem>>, vector<1x8x1xf32>,
    %115 = arith.truncf %105 : vector<8x8xf32> to vector<8x8xbf16>
    %cst_81 = arith.constant dense<0.000000e+00> : vector<8x8xf32>
    %116 = tpu.matmul %115, %92, %cst_81 {dimension_numbers = #tpu.dot_dimension_numbers<[1], [0], [0], [1], [0, 0, 1, 1], [], []>} : vector<8x8xbf16>, vector<8x8xbf16>, vector<8x8xf32> -> vector<8x8xf32>
    %c2_82 = arith.constant 2 : index
    %c0_83 = arith.constant 0 : index
    %c0_84 = arith.constant 0 : index
    %117 = vector.load %arg10[%c2_82, %c0_83, %c0_84] : memref<4x8x8xf32, #tpu.memory_space<vmem>>, vector<1x8x8xf32>
    %118 = vector.shape_cast %117 : vector<1x8x8xf32> to vector<8x8xf32>
    %119 = vector.broadcast %102 : vector<8x1xf32> to vector<8x8xf32>
    %120 = arith.mulf %119, %118 : vector<8x8xf32>
    %121 = arith.addf %120, %116 : vector<8x8xf32>
    %c2_85 = arith.constant 2 : index
    %c0_86 = arith.constant 0 : index
    %c0_87 = arith.constant 0 : index
    %122 = vector.load %arg10[%c2_85, %c0_86, %c0_87] : memref<4x8x8xf32, #tpu.memory_space<vmem>>, vector<1x8x8xf32>
    %123 = vector.shape_cast %122 : vector<1x8x8xf32> to vector<8x8xf32>
    %124 = vector.shape_cast %121 : vector<8x8xf32> to vector<1x8x8xf32>
    tpu.vector_store %arg10[%c2_85, %c0_86, %c0_87], %124 {strides = array<i32>} : memref<4x8x8xf32, #tpu.memory_space<vmem>>, vector<1x8x8xf32>,
    %c2_88 = arith.constant 2 : index
    %c0_89 = arith.constant 0 : index
    %c0_90 = arith.constant 0 : index
    %125 = vector.load %arg8[%c2_88, %c0_89, %c0_90] : memref<4x8x1xf32, #tpu.memory_space<vmem>>, vector<1x8x1xf32>
    %126 = vector.shape_cast %125 : vector<1x8x1xf32> to vector<8x1xf32>
    %127 = vector.shape_cast %100 : vector<8x1xf32> to vector<1x8x1xf32>
    tpu.vector_store %arg8[%c2_88, %c0_89, %c0_90], %127 {strides = array<i32>} : memref<4x8x1xf32, #tpu.memory_space<vmem>>, vector<1x8x1xf32>,
    %c0_91 = arith.constant 0 : index
    %c0_92 = arith.constant 0 : index
    %c24 = arith.constant 24 : index
    %128 = vector.load %arg4[%c0_91, %c0_92, %c24] : memref<1x8x32xbf16, #tpu.memory_space<vmem>>, vector<1x8x8xbf16>
    %129 = vector.shape_cast %128 : vector<1x8x8xbf16> to vector<8x8xbf16>
    %c0_93 = arith.constant 0 : index
    %c0_94 = arith.constant 0 : index
    %c24_95 = arith.constant 24 : index
    %130 = vector.load %arg5[%c0_93, %c0_94, %c24_95] : memref<1x8x32xbf16, #tpu.memory_space<vmem>>, vector<1x8x8xbf16>
    %131 = vector.shape_cast %130 : vector<1x8x8xbf16> to vector<8x8xbf16>
    %c0_96 = arith.constant 0 : index
    %c0_97 = arith.constant 0 : index
    %c24_98 = arith.constant 24 : index
    %132 = vector.load %arg6[%c0_96, %c0_97, %c24_98] : memref<1x8x32xbf16, #tpu.memory_space<vmem>>, vector<1x8x8xbf16>
    %133 = vector.shape_cast %132 : vector<1x8x8xbf16> to vector<8x8xbf16>
    %cst_99 = arith.constant dense<0.000000e+00> : vector<8x8xf32>
    %134 = tpu.matmul %129, %131, %cst_99 {dimension_numbers = #tpu.dot_dimension_numbers<[1], [1], [0], [0], [0, 0, 1, 0], [], []>} : vector<8x8xbf16>, vector<8x8xbf16>, vector<8x8xf32> -> vector<8x8xf32>
    %135 = vector.broadcast %4 : vector<1x8xf32> to vector<8x8xf32>
    %136 = arith.addf %134, %135 : vector<8x8xf32>
    %c3 = arith.constant 3 : index
    %c0_100 = arith.constant 0 : index
    %c0_101 = arith.constant 0 : index
    %137 = vector.load %arg8[%c3, %c0_100, %c0_101] : memref<4x8x1xf32, #tpu.memory_space<vmem>>, vector<1x8x1xf32>
    %138 = vector.shape_cast %137 : vector<1x8x1xf32> to vector<8x1xf32>
    %cst_102 = arith.constant dense<0xFF800000> : vector<8xf32>
    %139 = vector.multi_reduction <maximumf>, %136, %cst_102 [1] : vector<8x8xf32> to vector<8xf32>
    %140 = vector.shape_cast %139 : vector<8xf32> to vector<8x1xf32>
    %141 = arith.maximumf %138, %140 : vector<8x1xf32>
    %142 = arith.subf %138, %141 : vector<8x1xf32>
    %143 = math.exp %142 : vector<8x1xf32>
    %144 = vector.broadcast %141 : vector<8x1xf32> to vector<8x8xf32>
    %145 = arith.subf %136, %144 : vector<8x8xf32>
    %146 = math.exp %145 : vector<8x8xf32>
    %c3_103 = arith.constant 3 : index
    %c0_104 = arith.constant 0 : index
    %c0_105 = arith.constant 0 : index
    %147 = vector.load %arg9[%c3_103, %c0_104, %c0_105] : memref<4x8x1xf32, #tpu.memory_space<vmem>>, vector<1x8x1xf32>
    %148 = vector.shape_cast %147 : vector<1x8x1xf32> to vector<8x1xf32>
    %149 = arith.mulf %143, %148 : vector<8x1xf32>
    %cst_106 = arith.constant dense<0.000000e+00> : vector<8xf32>
    %150 = vector.multi_reduction <add>, %146, %cst_106 [1] : vector<8x8xf32> to vector<8xf32>
    %151 = vector.shape_cast %150 : vector<8xf32> to vector<8x1xf32>
    %152 = arith.addf %149, %151 : vector<8x1xf32>
    %c3_107 = arith.constant 3 : index
    %c0_108 = arith.constant 0 : index
    %c0_109 = arith.constant 0 : index
    %153 = vector.load %arg9[%c3_107, %c0_108, %c0_109] : memref<4x8x1xf32, #tpu.memory_space<vmem>>, vector<1x8x1xf32>
    %154 = vector.shape_cast %153 : vector<1x8x1xf32> to vector<8x1xf32>
    %155 = vector.shape_cast %152 : vector<8x1xf32> to vector<1x8x1xf32>
    tpu.vector_store %arg9[%c3_107, %c0_108, %c0_109], %155 {strides = array<i32>} : memref<4x8x1xf32, #tpu.memory_space<vmem>>, vector<1x8x1xf32>,
    %156 = arith.truncf %146 : vector<8x8xf32> to vector<8x8xbf16>
    %cst_110 = arith.constant dense<0.000000e+00> : vector<8x8xf32>
    %157 = tpu.matmul %156, %133, %cst_110 {dimension_numbers = #tpu.dot_dimension_numbers<[1], [0], [0], [1], [0, 0, 1, 1], [], []>} : vector<8x8xbf16>, vector<8x8xbf16>, vector<8x8xf32> -> vector<8x8xf32>
    %c3_111 = arith.constant 3 : index
    %c0_112 = arith.constant 0 : index
    %c0_113 = arith.constant 0 : index
    %158 = vector.load %arg10[%c3_111, %c0_112, %c0_113] : memref<4x8x8xf32, #tpu.memory_space<vmem>>, vector<1x8x8xf32>
    %159 = vector.shape_cast %158 : vector<1x8x8xf32> to vector<8x8xf32>
    %160 = vector.broadcast %143 : vector<8x1xf32> to vector<8x8xf32>
    %161 = arith.mulf %160, %159 : vector<8x8xf32>
    %162 = arith.addf %161, %157 : vector<8x8xf32>
    %c3_114 = arith.constant 3 : index
    %c0_115 = arith.constant 0 : index
    %c0_116 = arith.constant 0 : index
    %163 = vector.load %arg10[%c3_114, %c0_115, %c0_116] : memref<4x8x8xf32, #tpu.memory_space<vmem>>, vector<1x8x8xf32>
    %164 = vector.shape_cast %163 : vector<1x8x8xf32> to vector<8x8xf32>
    %165 = vector.shape_cast %162 : vector<8x8xf32> to vector<1x8x8xf32>
    tpu.vector_store %arg10[%c3_114, %c0_115, %c0_116], %165 {strides = array<i32>} : memref<4x8x8xf32, #tpu.memory_space<vmem>>, vector<1x8x8xf32>,
    %c3_117 = arith.constant 3 : index
    %c0_118 = arith.constant 0 : index
    %c0_119 = arith.constant 0 : index
    %166 = vector.load %arg8[%c3_117, %c0_118, %c0_119] : memref<4x8x1xf32, #tpu.memory_space<vmem>>, vector<1x8x1xf32>
    %167 = vector.shape_cast %166 : vector<1x8x1xf32> to vector<8x1xf32>
    %168 = vector.shape_cast %141 : vector<8x1xf32> to vector<1x8x1xf32>
    tpu.vector_store %arg8[%c3_117, %c0_118, %c0_119], %168 {strides = array<i32>} : memref<4x8x1xf32, #tpu.memory_space<vmem>>, vector<1x8x1xf32>,
    %c0_i32_120 = arith.constant 0 : i32
    %169 = arith.cmpi eq, %arg2, %c0_i32_120 : i32
    %170 = arith.extui %169 : i1 to i32
    %c0_i32_121 = arith.constant 0 : i32
    %171 = arith.cmpi ne, %170, %c0_i32_121 : i32
    scf.if %171 {
      %c0_122 = arith.constant 0 : index
      %c0_123 = arith.constant 0 : index
      %c0_124 = arith.constant 0 : index
      %172 = vector.load %arg9[%c0_122, %c0_123, %c0_124] : memref<4x8x1xf32, #tpu.memory_space<vmem>>, vector<1x8x1xf32>
      %173 = vector.shape_cast %172 : vector<1x8x1xf32> to vector<8x1xf32>
      %174 = tpu.reciprocal %173 {approx = true} : vector<8x1xf32> -> vector<8x1xf32>
      %c0_125 = arith.constant 0 : index
      %c0_126 = arith.constant 0 : index
      %c0_127 = arith.constant 0 : index
      %175 = vector.load %arg10[%c0_125, %c0_126, %c0_127] : memref<4x8x8xf32, #tpu.memory_space<vmem>>, vector<1x8x8xf32>
      %176 = vector.shape_cast %175 : vector<1x8x8xf32> to vector<8x8xf32>
      %177 = vector.broadcast %174 : vector<8x1xf32> to vector<8x8xf32>
      %178 = arith.mulf %176, %177 : vector<8x8xf32>
      %c1_128 = arith.constant 1 : index
      %c0_129 = arith.constant 0 : index
      %c0_130 = arith.constant 0 : index
      %179 = vector.load %arg9[%c1_128, %c0_129, %c0_130] : memref<4x8x1xf32, #tpu.memory_space<vmem>>, vector<1x8x1xf32>
      %180 = vector.shape_cast %179 : vector<1x8x1xf32> to vector<8x1xf32>
      %181 = tpu.reciprocal %180 {approx = true} : vector<8x1xf32> -> vector<8x1xf32>
      %c1_131 = arith.constant 1 : index
      %c0_132 = arith.constant 0 : index
      %c0_133 = arith.constant 0 : index
      %182 = vector.load %arg10[%c1_131, %c0_132, %c0_133] : memref<4x8x8xf32, #tpu.memory_space<vmem>>, vector<1x8x8xf32>
      %183 = vector.shape_cast %182 : vector<1x8x8xf32> to vector<8x8xf32>
      %184 = vector.broadcast %181 : vector<8x1xf32> to vector<8x8xf32>
      %185 = arith.mulf %183, %184 : vector<8x8xf32>
      %c2_134 = arith.constant 2 : index
      %c0_135 = arith.constant 0 : index
      %c0_136 = arith.constant 0 : index
      %186 = vector.load %arg9[%c2_134, %c0_135, %c0_136] : memref<4x8x1xf32, #tpu.memory_space<vmem>>, vector<1x8x1xf32>
      %187 = vector.shape_cast %186 : vector<1x8x1xf32> to vector<8x1xf32>
      %188 = tpu.reciprocal %187 {approx = true} : vector<8x1xf32> -> vector<8x1xf32>
      %c2_137 = arith.constant 2 : index
      %c0_138 = arith.constant 0 : index
      %c0_139 = arith.constant 0 : index
      %189 = vector.load %arg10[%c2_137, %c0_138, %c0_139] : memref<4x8x8xf32, #tpu.memory_space<vmem>>, vector<1x8x8xf32>
      %190 = vector.shape_cast %189 : vector<1x8x8xf32> to vector<8x8xf32>
      %191 = vector.broadcast %188 : vector<8x1xf32> to vector<8x8xf32>
      %192 = arith.mulf %190, %191 : vector<8x8xf32>
      %c3_140 = arith.constant 3 : index
      %c0_141 = arith.constant 0 : index
      %c0_142 = arith.constant 0 : index
      %193 = vector.load %arg9[%c3_140, %c0_141, %c0_142] : memref<4x8x1xf32, #tpu.memory_space<vmem>>, vector<1x8x1xf32>
      %194 = vector.shape_cast %193 : vector<1x8x1xf32> to vector<8x1xf32>
      %195 = tpu.reciprocal %194 {approx = true} : vector<8x1xf32> -> vector<8x1xf32>
      %c3_143 = arith.constant 3 : index
      %c0_144 = arith.constant 0 : index
      %c0_145 = arith.constant 0 : index
      %196 = vector.load %arg10[%c3_143, %c0_144, %c0_145] : memref<4x8x8xf32, #tpu.memory_space<vmem>>, vector<1x8x8xf32>
      %197 = vector.shape_cast %196 : vector<1x8x8xf32> to vector<8x8xf32>
      %198 = vector.broadcast %195 : vector<8x1xf32> to vector<8x8xf32>
      %199 = arith.mulf %197, %198 : vector<8x8xf32>
      %200 = tpu.concatenate %178, %185, %192, %199 in 1 : vector<8x8xf32>, vector<8x8xf32>, vector<8x8xf32>, vector<8x8xf32> -> vector<8x32xf32>
      %201 = arith.truncf %200 : vector<8x32xf32> to vector<8x32xbf16>
      %c0_146 = arith.constant 0 : index
      %c0_147 = arith.constant 0 : index
      %c0_148 = arith.constant 0 : index
      %202 = vector.load %arg7[%c0_146, %c0_147, %c0_148] : memref<1x8x32xbf16, #tpu.memory_space<vmem>>, vector<1x8x32xbf16>
      %203 = vector.shape_cast %202 : vector<1x8x32xbf16> to vector<8x32xbf16>
      %204 = vector.shape_cast %201 : vector<8x32xbf16> to vector<1x8x32xbf16>
      tpu.vector_store %arg7[%c0_146, %c0_147, %c0_148], %204 {strides = array<i32>} : memref<1x8x32xbf16, #tpu.memory_space<vmem>>, vector<1x8x32xbf16>,
    } else {
    }
    return
  }
  func.func @transform_0(%arg0: i32, %arg1: i32, %arg2: i32) -> (i32, i32, i32) {
    %c0_i32 = arith.constant 0 : i32
    %c0_i32_0 = arith.constant 0 : i32
    return %arg0, %c0_i32, %arg2 : i32, i32, i32
  }
  func.func @transform_1(%arg0: i32, %arg1: i32, %arg2: i32) -> (i32, i32, i32) {
    %c0_i32 = arith.constant 0 : i32
    %c0_i32_0 = arith.constant 0 : i32
    return %arg0, %arg1, %c0_i32 : i32, i32, i32
  }
  func.func @transform_2(%arg0: i32, %arg1: i32, %arg2: i32) -> (i32, i32, i32) {
    %c0_i32 = arith.constant 0 : i32
    %c0_i32_0 = arith.constant 0 : i32
    return %arg0, %arg2, %c0_i32 : i32, i32, i32
  }
  func.func @transform_3(%arg0: i32, %arg1: i32, %arg2: i32) -> (i32, i32, i32) {
    %c0_i32 = arith.constant 0 : i32
    %c0_i32_0 = arith.constant 0 : i32
    return %arg0, %arg2, %c0_i32 : i32, i32, i32
  }
  func.func @transform_4(%arg0: i32, %arg1: i32, %arg2: i32) -> (i32, i32, i32) {
    %c0_i32 = arith.constant 0 : i32
    %c0_i32_0 = arith.constant 0 : i32
    return %arg0, %arg1, %c0_i32 : i32, i32, i32
  }
}

module attributes {stable_mosaic.version = 11 : i64} {
  func.func @_linear_res_ln_kernel(%arg0: i32, %arg1: i32, %arg2: memref<16x64xbf16, #tpu.memory_space<vmem>>, %arg3: memref<64x32xbf16, #tpu.memory_space<vmem>>, %arg4: memref<1x32xf32, #tpu.memory_space<vmem>>, %arg5: memref<16x32xbf16, #tpu.memory_space<vmem>>, %arg6: memref<1x32xf32, #tpu.memory_space<vmem>>, %arg7: memref<1x32xf32, #tpu.memory_space<vmem>>, %arg8: memref<16x32xbf16, #tpu.memory_space<vmem>>, %arg9: memref<16x32xf32, #tpu.memory_space<vmem>>) attributes {dimension_semantics = [#tpu.dimension_semantics<parallel>, #tpu.dimension_semantics<arbitrary>], iteration_bounds = array<i64: 1, 1>, scalar_prefetch = 0 : i64, scratch_operands = 1 : i64, tpu.core_type = #tpu.core_type<tc>, window_params = [{transform_indices = @transform_0, window_bounds = array<i64: 16, 64>}, {transform_indices = @transform_1, window_bounds = array<i64: 64, 32>}, {pipeline_mode = #tpu.pipeline_mode<synchronous>, transform_indices = @transform_2, window_bounds = array<i64: 1, 32>}, {transform_indices = @transform_3, window_bounds = array<i64: 16, 32>}, {pipeline_mode = #tpu.pipeline_mode<synchronous>, transform_indices = @transform_4, window_bounds = array<i64: 1, 32>}, {pipeline_mode = #tpu.pipeline_mode<synchronous>, transform_indices = @transform_5, window_bounds = array<i64: 1, 32>}, {transform_indices = @transform_6, window_bounds = array<i64: 16, 32>}]} {
    %c0_i32 = arith.constant 0 : i32
    %0 = arith.cmpi eq, %arg1, %c0_i32 : i32
    %1 = arith.extui %0 : i1 to i32
    %c0_i32_0 = arith.constant 0 : i32
    %2 = arith.cmpi ne, %1, %c0_i32_0 : i32
    scf.if %2 {
      %cst_10 = arith.constant 0.000000e+00 : f32
      %12 = vector.broadcast %cst_10 : f32 to vector<16x32xf32>
      %c0_11 = arith.constant 0 : index
      %c0_12 = arith.constant 0 : index
      %13 = vector.load %arg9[%c0_11, %c0_12] : memref<16x32xf32, #tpu.memory_space<vmem>>, vector<16x32xf32>
      tpu.vector_store %arg9[%c0_11, %c0_12], %12 {strides = array<i32>} : memref<16x32xf32, #tpu.memory_space<vmem>>, vector<16x32xf32>,
    } else {
    }
    %c0 = arith.constant 0 : index
    %c0_1 = arith.constant 0 : index
    %3 = vector.load %arg9[%c0, %c0_1] : memref<16x32xf32, #tpu.memory_space<vmem>>, vector<16x32xf32>
    %c0_2 = arith.constant 0 : index
    %c0_3 = arith.constant 0 : index
    %4 = vector.load %arg2[%c0_2, %c0_3] : memref<16x64xbf16, #tpu.memory_space<vmem>>, vector<16x64xbf16>
    %c0_4 = arith.constant 0 : index
    %c0_5 = arith.constant 0 : index
    %5 = vector.load %arg3[%c0_4, %c0_5] : memref<64x32xbf16, #tpu.memory_space<vmem>>, vector<64x32xbf16>
    %cst = arith.constant dense<0.000000e+00> : vector<16x32xf32>
    %6 = tpu.matmul %4, %5, %cst {dimension_numbers = #tpu.dot_dimension_numbers<[1], [0], [0], [1], [0, 0, 1, 1], [], []>} : vector<16x64xbf16>, vector<64x32xbf16>, vector<16x32xf32> -> vector<16x32xf32>
    %7 = arith.addf %3, %6 : vector<16x32xf32>
    %c0_6 = arith.constant 0 : index
    %c0_7 = arith.constant 0 : index
    %8 = vector.load %arg9[%c0_6, %c0_7] : memref<16x32xf32, #tpu.memory_space<vmem>>, vector<16x32xf32>
    tpu.vector_store %arg9[%c0_6, %c0_7], %7 {strides = array<i32>} : memref<16x32xf32, #tpu.memory_space<vmem>>, vector<16x32xf32>,
    %c0_i32_8 = arith.constant 0 : i32
    %9 = arith.cmpi eq, %arg1, %c0_i32_8 : i32
    %10 = arith.extui %9 : i1 to i32
    %c0_i32_9 = arith.constant 0 : i32
    %11 = arith.cmpi ne, %10, %c0_i32_9 : i32
    scf.if %11 {
      %c0_10 = arith.constant 0 : index
      %c0_11 = arith.constant 0 : index
      %12 = vector.load %arg9[%c0_10, %c0_11] : memref<16x32xf32, #tpu.memory_space<vmem>>, vector<16x32xf32>
      %c0_12 = arith.constant 0 : index
      %c0_13 = arith.constant 0 : index
      %13 = vector.load %arg4[%c0_12, %c0_13] : memref<1x32xf32, #tpu.memory_space<vmem>>, vector<1x32xf32>
      %14 = vector.broadcast %13 : vector<1x32xf32> to vector<16x32xf32>
      %15 = arith.addf %12, %14 : vector<16x32xf32>
      %c0_14 = arith.constant 0 : index
      %c0_15 = arith.constant 0 : index
      %16 = vector.load %arg5[%c0_14, %c0_15] : memref<16x32xbf16, #tpu.memory_space<vmem>>, vector<16x32xbf16>
      %17 = arith.extf %16 : vector<16x32xbf16> to vector<16x32xf32>
      %18 = arith.addf %15, %17 : vector<16x32xf32>
      %cst_16 = arith.constant dense<0.000000e+00> : vector<16xf32>
      %19 = vector.multi_reduction <add>, %18, %cst_16 [1] : vector<16x32xf32> to vector<16xf32>
      %20 = vector.shape_cast %19 : vector<16xf32> to vector<16x1xf32>
      %cst_17 = arith.constant 3.200000e+01 : f32
      %21 = vector.broadcast %cst_17 : f32 to vector<16x1xf32>
      %22 = arith.divf %20, %21 : vector<16x1xf32>
      %23 = vector.broadcast %22 : vector<16x1xf32> to vector<16x32xf32>
      %24 = arith.subf %18, %23 : vector<16x32xf32>
      %25 = arith.mulf %24, %24 : vector<16x32xf32>
      %cst_18 = arith.constant dense<0.000000e+00> : vector<16xf32>
      %26 = vector.multi_reduction <add>, %25, %cst_18 [1] : vector<16x32xf32> to vector<16xf32>
      %27 = vector.shape_cast %26 : vector<16xf32> to vector<16x1xf32>
      %cst_19 = arith.constant 3.200000e+01 : f32
      %28 = vector.broadcast %cst_19 : f32 to vector<16x1xf32>
      %29 = arith.divf %27, %28 : vector<16x1xf32>
      %cst_20 = arith.constant 9.99999997E-7 : f32
      %30 = vector.broadcast %cst_20 : f32 to vector<16x1xf32>
      %31 = arith.addf %29, %30 : vector<16x1xf32>
      %32 = math.rsqrt %31 : vector<16x1xf32>
      %33 = vector.broadcast %32 : vector<16x1xf32> to vector<16x32xf32>
      %34 = arith.mulf %24, %33 : vector<16x32xf32>
      %c0_21 = arith.constant 0 : index
      %c0_22 = arith.constant 0 : index
      %35 = vector.load %arg6[%c0_21, %c0_22] : memref<1x32xf32, #tpu.memory_space<vmem>>, vector<1x32xf32>
      %36 = vector.broadcast %35 : vector<1x32xf32> to vector<16x32xf32>
      %37 = arith.mulf %34, %36 : vector<16x32xf32>
      %c0_23 = arith.constant 0 : index
      %c0_24 = arith.constant 0 : index
      %38 = vector.load %arg7[%c0_23, %c0_24] : memref<1x32xf32, #tpu.memory_space<vmem>>, vector<1x32xf32>
      %39 = vector.broadcast %38 : vector<1x32xf32> to vector<16x32xf32>
      %40 = arith.addf %37, %39 : vector<16x32xf32>
      %41 = arith.truncf %40 : vector<16x32xf32> to vector<16x32xbf16>
      %c0_25 = arith.constant 0 : index
      %c0_26 = arith.constant 0 : index
      %42 = vector.load %arg8[%c0_25, %c0_26] : memref<16x32xbf16, #tpu.memory_space<vmem>>, vector<16x32xbf16>
      tpu.vector_store %arg8[%c0_25, %c0_26], %41 {strides = array<i32>} : memref<16x32xbf16, #tpu.memory_space<vmem>>, vector<16x32xbf16>,
    } else {
    }
    return
  }
  func.func @transform_0(%arg0: i32, %arg1: i32) -> (i32, i32) {
    %c0_i32 = arith.constant 0 : i32
    return %arg0, %arg1 : i32, i32
  }
  func.func @transform_1(%arg0: i32, %arg1: i32) -> (i32, i32) {
    %c0_i32 = arith.constant 0 : i32
    %c0_i32_0 = arith.constant 0 : i32
    return %arg1, %c0_i32 : i32, i32
  }
  func.func @transform_2(%arg0: i32, %arg1: i32) -> (i32, i32) {
    %c0_i32 = arith.constant 0 : i32
    %c0_i32_0 = arith.constant 0 : i32
    %c0_i32_1 = arith.constant 0 : i32
    return %c0_i32, %c0_i32_0 : i32, i32
  }
  func.func @transform_3(%arg0: i32, %arg1: i32) -> (i32, i32) {
    %c0_i32 = arith.constant 0 : i32
    %c0_i32_0 = arith.constant 0 : i32
    return %arg0, %c0_i32 : i32, i32
  }
  func.func @transform_4(%arg0: i32, %arg1: i32) -> (i32, i32) {
    %c0_i32 = arith.constant 0 : i32
    %c0_i32_0 = arith.constant 0 : i32
    %c0_i32_1 = arith.constant 0 : i32
    return %c0_i32, %c0_i32_0 : i32, i32
  }
  func.func @transform_5(%arg0: i32, %arg1: i32) -> (i32, i32) {
    %c0_i32 = arith.constant 0 : i32
    %c0_i32_0 = arith.constant 0 : i32
    %c0_i32_1 = arith.constant 0 : i32
    return %c0_i32, %c0_i32_0 : i32, i32
  }
  func.func @transform_6(%arg0: i32, %arg1: i32) -> (i32, i32) {
    %c0_i32 = arith.constant 0 : i32
    %c0_i32_0 = arith.constant 0 : i32
    return %arg0, %c0_i32 : i32, i32
  }
}

module attributes {stable_mosaic.version = 11 : i64} {
  func.func @_matmul_kernel(%arg0: i32, %arg1: i32, %arg2: i32, %arg3: memref<16x32xbf16, #tpu.memory_space<vmem>>, %arg4: memref<32x64xbf16, #tpu.memory_space<vmem>>, %arg5: memref<1x64xf32, #tpu.memory_space<vmem>>, %arg6: memref<16x64xbf16, #tpu.memory_space<vmem>>, %arg7: memref<16x64xf32, #tpu.memory_space<vmem>>) attributes {dimension_semantics = [#tpu.dimension_semantics<parallel>, #tpu.dimension_semantics<parallel>, #tpu.dimension_semantics<arbitrary>], iteration_bounds = array<i64: 1, 1, 1>, scalar_prefetch = 0 : i64, scratch_operands = 1 : i64, tpu.core_type = #tpu.core_type<tc>, window_params = [{transform_indices = @transform_0, window_bounds = array<i64: 16, 32>}, {transform_indices = @transform_1, window_bounds = array<i64: 32, 64>}, {transform_indices = @transform_2, window_bounds = array<i64: 1, 64>}, {transform_indices = @transform_3, window_bounds = array<i64: 16, 64>}]} {
    %c0_i32 = arith.constant 0 : i32
    %0 = arith.cmpi eq, %arg2, %c0_i32 : i32
    %1 = arith.extui %0 : i1 to i32
    %c0_i32_0 = arith.constant 0 : i32
    %2 = arith.cmpi ne, %1, %c0_i32_0 : i32
    scf.if %2 {
      %cst_10 = arith.constant 0.000000e+00 : f32
      %12 = vector.broadcast %cst_10 : f32 to vector<16x64xf32>
      %c0_11 = arith.constant 0 : index
      %c0_12 = arith.constant 0 : index
      %13 = vector.load %arg7[%c0_11, %c0_12] : memref<16x64xf32, #tpu.memory_space<vmem>>, vector<16x64xf32>
      tpu.vector_store %arg7[%c0_11, %c0_12], %12 {strides = array<i32>} : memref<16x64xf32, #tpu.memory_space<vmem>>, vector<16x64xf32>,
    } else {
    }
    %c0 = arith.constant 0 : index
    %c0_1 = arith.constant 0 : index
    %3 = vector.load %arg7[%c0, %c0_1] : memref<16x64xf32, #tpu.memory_space<vmem>>, vector<16x64xf32>
    %c0_2 = arith.constant 0 : index
    %c0_3 = arith.constant 0 : index
    %4 = vector.load %arg3[%c0_2, %c0_3] : memref<16x32xbf16, #tpu.memory_space<vmem>>, vector<16x32xbf16>
    %c0_4 = arith.constant 0 : index
    %c0_5 = arith.constant 0 : index
    %5 = vector.load %arg4[%c0_4, %c0_5] : memref<32x64xbf16, #tpu.memory_space<vmem>>, vector<32x64xbf16>
    %cst = arith.constant dense<0.000000e+00> : vector<16x64xf32>
    %6 = tpu.matmul %4, %5, %cst {dimension_numbers = #tpu.dot_dimension_numbers<[1], [0], [0], [1], [0, 0, 1, 1], [], []>} : vector<16x32xbf16>, vector<32x64xbf16>, vector<16x64xf32> -> vector<16x64xf32>
    %7 = arith.addf %3, %6 : vector<16x64xf32>
    %c0_6 = arith.constant 0 : index
    %c0_7 = arith.constant 0 : index
    %8 = vector.load %arg7[%c0_6, %c0_7] : memref<16x64xf32, #tpu.memory_space<vmem>>, vector<16x64xf32>
    tpu.vector_store %arg7[%c0_6, %c0_7], %7 {strides = array<i32>} : memref<16x64xf32, #tpu.memory_space<vmem>>, vector<16x64xf32>,
    %c0_i32_8 = arith.constant 0 : i32
    %9 = arith.cmpi eq, %arg2, %c0_i32_8 : i32
    %10 = arith.extui %9 : i1 to i32
    %c0_i32_9 = arith.constant 0 : i32
    %11 = arith.cmpi ne, %10, %c0_i32_9 : i32
    scf.if %11 {
      %c0_10 = arith.constant 0 : index
      %c0_11 = arith.constant 0 : index
      %12 = vector.load %arg7[%c0_10, %c0_11] : memref<16x64xf32, #tpu.memory_space<vmem>>, vector<16x64xf32>
      %c0_12 = arith.constant 0 : index
      %c0_13 = arith.constant 0 : index
      %13 = vector.load %arg5[%c0_12, %c0_13] : memref<1x64xf32, #tpu.memory_space<vmem>>, vector<1x64xf32>
      %14 = vector.broadcast %13 : vector<1x64xf32> to vector<16x64xf32>
      %15 = arith.addf %12, %14 : vector<16x64xf32>
      %cst_14 = arith.constant 0.000000e+00 : f32
      %16 = vector.broadcast %cst_14 : f32 to vector<16x64xf32>
      %17 = arith.maximumf %15, %16 : vector<16x64xf32>
      %18 = arith.truncf %17 : vector<16x64xf32> to vector<16x64xbf16>
      %c0_15 = arith.constant 0 : index
      %c0_16 = arith.constant 0 : index
      %19 = vector.load %arg6[%c0_15, %c0_16] : memref<16x64xbf16, #tpu.memory_space<vmem>>, vector<16x64xbf16>
      tpu.vector_store %arg6[%c0_15, %c0_16], %18 {strides = array<i32>} : memref<16x64xbf16, #tpu.memory_space<vmem>>, vector<16x64xbf16>,
    } else {
    }
    return
  }
  func.func @transform_0(%arg0: i32, %arg1: i32, %arg2: i32) -> (i32, i32) {
    %c0_i32 = arith.constant 0 : i32
    return %arg0, %arg2 : i32, i32
  }
  func.func @transform_1(%arg0: i32, %arg1: i32, %arg2: i32) -> (i32, i32) {
    %c0_i32 = arith.constant 0 : i32
    return %arg2, %arg1 : i32, i32
  }
  func.func @transform_2(%arg0: i32, %arg1: i32, %arg2: i32) -> (i32, i32) {
    %c0_i32 = arith.constant 0 : i32
    %c0_i32_0 = arith.constant 0 : i32
    return %c0_i32, %arg1 : i32, i32
  }
  func.func @transform_3(%arg0: i32, %arg1: i32, %arg2: i32) -> (i32, i32) {
    %c0_i32 = arith.constant 0 : i32
    return %arg0, %arg1 : i32, i32
  }
}

module attributes {stable_mosaic.version = 11 : i64} {
  func.func @_matmul_kernel(%arg0: i32, %arg1: i32, %arg2: i32, %arg3: memref<16x32xbf16, #tpu.memory_space<vmem>>, %arg4: memref<32x64xbf16, #tpu.memory_space<vmem>>, %arg5: memref<1x64xf32, #tpu.memory_space<vmem>>, %arg6: memref<16x64xbf16, #tpu.memory_space<vmem>>, %arg7: memref<16x64xf32, #tpu.memory_space<vmem>>) attributes {dimension_semantics = [#tpu.dimension_semantics<parallel>, #tpu.dimension_semantics<parallel>, #tpu.dimension_semantics<arbitrary>], iteration_bounds = array<i64: 1, 1, 1>, scalar_prefetch = 0 : i64, scratch_operands = 1 : i64, tpu.core_type = #tpu.core_type<tc>, window_params = [{transform_indices = @transform_0, window_bounds = array<i64: 16, 32>}, {transform_indices = @transform_1, window_bounds = array<i64: 32, 64>}, {transform_indices = @transform_2, window_bounds = array<i64: 1, 64>}, {transform_indices = @transform_3, window_bounds = array<i64: 16, 64>}]} {
    %c0_i32 = arith.constant 0 : i32
    %0 = arith.cmpi eq, %arg2, %c0_i32 : i32
    %1 = arith.extui %0 : i1 to i32
    %c0_i32_0 = arith.constant 0 : i32
    %2 = arith.cmpi ne, %1, %c0_i32_0 : i32
    scf.if %2 {
      %cst_10 = arith.constant 0.000000e+00 : f32
      %12 = vector.broadcast %cst_10 : f32 to vector<16x64xf32>
      %c0_11 = arith.constant 0 : index
      %c0_12 = arith.constant 0 : index
      %13 = vector.load %arg7[%c0_11, %c0_12] : memref<16x64xf32, #tpu.memory_space<vmem>>, vector<16x64xf32>
      tpu.vector_store %arg7[%c0_11, %c0_12], %12 {strides = array<i32>} : memref<16x64xf32, #tpu.memory_space<vmem>>, vector<16x64xf32>,
    } else {
    }
    %c0 = arith.constant 0 : index
    %c0_1 = arith.constant 0 : index
    %3 = vector.load %arg7[%c0, %c0_1] : memref<16x64xf32, #tpu.memory_space<vmem>>, vector<16x64xf32>
    %c0_2 = arith.constant 0 : index
    %c0_3 = arith.constant 0 : index
    %4 = vector.load %arg3[%c0_2, %c0_3] : memref<16x32xbf16, #tpu.memory_space<vmem>>, vector<16x32xbf16>
    %c0_4 = arith.constant 0 : index
    %c0_5 = arith.constant 0 : index
    %5 = vector.load %arg4[%c0_4, %c0_5] : memref<32x64xbf16, #tpu.memory_space<vmem>>, vector<32x64xbf16>
    %cst = arith.constant dense<0.000000e+00> : vector<16x64xf32>
    %6 = tpu.matmul %4, %5, %cst {dimension_numbers = #tpu.dot_dimension_numbers<[1], [0], [0], [1], [0, 0, 1, 1], [], []>} : vector<16x32xbf16>, vector<32x64xbf16>, vector<16x64xf32> -> vector<16x64xf32>
    %7 = arith.addf %3, %6 : vector<16x64xf32>
    %c0_6 = arith.constant 0 : index
    %c0_7 = arith.constant 0 : index
    %8 = vector.load %arg7[%c0_6, %c0_7] : memref<16x64xf32, #tpu.memory_space<vmem>>, vector<16x64xf32>
    tpu.vector_store %arg7[%c0_6, %c0_7], %7 {strides = array<i32>} : memref<16x64xf32, #tpu.memory_space<vmem>>, vector<16x64xf32>,
    %c0_i32_8 = arith.constant 0 : i32
    %9 = arith.cmpi eq, %arg2, %c0_i32_8 : i32
    %10 = arith.extui %9 : i1 to i32
    %c0_i32_9 = arith.constant 0 : i32
    %11 = arith.cmpi ne, %10, %c0_i32_9 : i32
    scf.if %11 {
      %c0_10 = arith.constant 0 : index
      %c0_11 = arith.constant 0 : index
      %12 = vector.load %arg7[%c0_10, %c0_11] : memref<16x64xf32, #tpu.memory_space<vmem>>, vector<16x64xf32>
      %c0_12 = arith.constant 0 : index
      %c0_13 = arith.constant 0 : index
      %13 = vector.load %arg5[%c0_12, %c0_13] : memref<1x64xf32, #tpu.memory_space<vmem>>, vector<1x64xf32>
      %14 = vector.broadcast %13 : vector<1x64xf32> to vector<16x64xf32>
      %15 = arith.addf %12, %14 : vector<16x64xf32>
      %16 = arith.truncf %15 : vector<16x64xf32> to vector<16x64xbf16>
      %c0_14 = arith.constant 0 : index
      %c0_15 = arith.constant 0 : index
      %17 = vector.load %arg6[%c0_14, %c0_15] : memref<16x64xbf16, #tpu.memory_space<vmem>>, vector<16x64xbf16>
      tpu.vector_store %arg6[%c0_14, %c0_15], %16 {strides = array<i32>} : memref<16x64xbf16, #tpu.memory_space<vmem>>, vector<16x64xbf16>,
    } else {
    }
    return
  }
  func.func @transform_0(%arg0: i32, %arg1: i32, %arg2: i32) -> (i32, i32) {
    %c0_i32 = arith.constant 0 : i32
    return %arg0, %arg2 : i32, i32
  }
  func.func @transform_1(%arg0: i32, %arg1: i32, %arg2: i32) -> (i32, i32) {
    %c0_i32 = arith.constant 0 : i32
    return %arg2, %arg1 : i32, i32
  }
  func.func @transform_2(%arg0: i32, %arg1: i32, %arg2: i32) -> (i32, i32) {
    %c0_i32 = arith.constant 0 : i32
    %c0_i32_0 = arith.constant 0 : i32
    return %c0_i32, %arg1 : i32, i32
  }
  func.func @transform_3(%arg0: i32, %arg1: i32, %arg2: i32) -> (i32, i32) {
    %c0_i32 = arith.constant 0 : i32
    return %arg0, %arg1 : i32, i32
  }
}

module attributes {stable_mosaic.version = 11 : i64} {
  func.func @_matmul_kernel(%arg0: i32, %arg1: i32, %arg2: i32, %arg3: memref<16x32xbf16, #tpu.memory_space<vmem>>, %arg4: memref<32x32xbf16, #tpu.memory_space<vmem>>, %arg5: memref<1x32xf32, #tpu.memory_space<vmem>>, %arg6: memref<16x32xbf16, #tpu.memory_space<vmem>>, %arg7: memref<16x32xf32, #tpu.memory_space<vmem>>) attributes {dimension_semantics = [#tpu.dimension_semantics<parallel>, #tpu.dimension_semantics<parallel>, #tpu.dimension_semantics<arbitrary>], iteration_bounds = array<i64: 1, 1, 1>, scalar_prefetch = 0 : i64, scratch_operands = 1 : i64, tpu.core_type = #tpu.core_type<tc>, window_params = [{transform_indices = @transform_0, window_bounds = array<i64: 16, 32>}, {transform_indices = @transform_1, window_bounds = array<i64: 32, 32>}, {transform_indices = @transform_2, window_bounds = array<i64: 1, 32>}, {transform_indices = @transform_3, window_bounds = array<i64: 16, 32>}]} {
    %c0_i32 = arith.constant 0 : i32
    %0 = arith.cmpi eq, %arg2, %c0_i32 : i32
    %1 = arith.extui %0 : i1 to i32
    %c0_i32_0 = arith.constant 0 : i32
    %2 = arith.cmpi ne, %1, %c0_i32_0 : i32
    scf.if %2 {
      %cst_10 = arith.constant 0.000000e+00 : f32
      %12 = vector.broadcast %cst_10 : f32 to vector<16x32xf32>
      %c0_11 = arith.constant 0 : index
      %c0_12 = arith.constant 0 : index
      %13 = vector.load %arg7[%c0_11, %c0_12] : memref<16x32xf32, #tpu.memory_space<vmem>>, vector<16x32xf32>
      tpu.vector_store %arg7[%c0_11, %c0_12], %12 {strides = array<i32>} : memref<16x32xf32, #tpu.memory_space<vmem>>, vector<16x32xf32>,
    } else {
    }
    %c0 = arith.constant 0 : index
    %c0_1 = arith.constant 0 : index
    %3 = vector.load %arg7[%c0, %c0_1] : memref<16x32xf32, #tpu.memory_space<vmem>>, vector<16x32xf32>
    %c0_2 = arith.constant 0 : index
    %c0_3 = arith.constant 0 : index
    %4 = vector.load %arg3[%c0_2, %c0_3] : memref<16x32xbf16, #tpu.memory_space<vmem>>, vector<16x32xbf16>
    %c0_4 = arith.constant 0 : index
    %c0_5 = arith.constant 0 : index
    %5 = vector.load %arg4[%c0_4, %c0_5] : memref<32x32xbf16, #tpu.memory_space<vmem>>, vector<32x32xbf16>
    %cst = arith.constant dense<0.000000e+00> : vector<16x32xf32>
    %6 = tpu.matmul %4, %5, %cst {dimension_numbers = #tpu.dot_dimension_numbers<[1], [0], [0], [1], [0, 0, 1, 1], [], []>} : vector<16x32xbf16>, vector<32x32xbf16>, vector<16x32xf32> -> vector<16x32xf32>
    %7 = arith.addf %3, %6 : vector<16x32xf32>
    %c0_6 = arith.constant 0 : index
    %c0_7 = arith.constant 0 : index
    %8 = vector.load %arg7[%c0_6, %c0_7] : memref<16x32xf32, #tpu.memory_space<vmem>>, vector<16x32xf32>
    tpu.vector_store %arg7[%c0_6, %c0_7], %7 {strides = array<i32>} : memref<16x32xf32, #tpu.memory_space<vmem>>, vector<16x32xf32>,
    %c0_i32_8 = arith.constant 0 : i32
    %9 = arith.cmpi eq, %arg2, %c0_i32_8 : i32
    %10 = arith.extui %9 : i1 to i32
    %c0_i32_9 = arith.constant 0 : i32
    %11 = arith.cmpi ne, %10, %c0_i32_9 : i32
    scf.if %11 {
      %c0_10 = arith.constant 0 : index
      %c0_11 = arith.constant 0 : index
      %12 = vector.load %arg7[%c0_10, %c0_11] : memref<16x32xf32, #tpu.memory_space<vmem>>, vector<16x32xf32>
      %c0_12 = arith.constant 0 : index
      %c0_13 = arith.constant 0 : index
      %13 = vector.load %arg5[%c0_12, %c0_13] : memref<1x32xf32, #tpu.memory_space<vmem>>, vector<1x32xf32>
      %14 = vector.broadcast %13 : vector<1x32xf32> to vector<16x32xf32>
      %15 = arith.addf %12, %14 : vector<16x32xf32>
      %16 = arith.truncf %15 : vector<16x32xf32> to vector<16x32xbf16>
      %c0_14 = arith.constant 0 : index
      %c0_15 = arith.constant 0 : index
      %17 = vector.load %arg6[%c0_14, %c0_15] : memref<16x32xbf16, #tpu.memory_space<vmem>>, vector<16x32xbf16>
      tpu.vector_store %arg6[%c0_14, %c0_15], %16 {strides = array<i32>} : memref<16x32xbf16, #tpu.memory_space<vmem>>, vector<16x32xbf16>,
    } else {
    }
    return
  }
  func.func @transform_0(%arg0: i32, %arg1: i32, %arg2: i32) -> (i32, i32) {
    %c0_i32 = arith.constant 0 : i32
    return %arg0, %arg2 : i32, i32
  }
  func.func @transform_1(%arg0: i32, %arg1: i32, %arg2: i32) -> (i32, i32) {
    %c0_i32 = arith.constant 0 : i32
    return %arg2, %arg1 : i32, i32
  }
  func.func @transform_2(%arg0: i32, %arg1: i32, %arg2: i32) -> (i32, i32) {
    %c0_i32 = arith.constant 0 : i32
    %c0_i32_0 = arith.constant 0 : i32
    return %c0_i32, %arg1 : i32, i32
  }
  func.func @transform_3(%arg0: i32, %arg1: i32, %arg2: i32) -> (i32, i32) {
    %c0_i32 = arith.constant 0 : i32
    return %arg0, %arg1 : i32, i32
  }
}

module attributes {stable_mosaic.version = 11 : i64} {
  func.func @_flash_attn_kernel(%arg0: i32, %arg1: i32, %arg2: i32, %arg3: memref<1x1x8xf32, #tpu.memory_space<vmem>>, %arg4: memref<1x8x32xbf16, #tpu.memory_space<vmem>>, %arg5: memref<1x8x32xbf16, #tpu.memory_space<vmem>>, %arg6: memref<1x8x32xbf16, #tpu.memory_space<vmem>>, %arg7: memref<1x8x32xbf16, #tpu.memory_space<vmem>>, %arg8: memref<4x8x1xf32, #tpu.memory_space<vmem>>, %arg9: memref<4x8x1xf32, #tpu.memory_space<vmem>>, %arg10: memref<4x8x8xf32, #tpu.memory_space<vmem>>) attributes {dimension_semantics = [#tpu.dimension_semantics<parallel>, #tpu.dimension_semantics<parallel>, #tpu.dimension_semantics<arbitrary>], iteration_bounds = array<i64: 2, 1, 1>, scalar_prefetch = 0 : i64, scratch_operands = 3 : i64, tpu.core_type = #tpu.core_type<tc>, window_params = [{transform_indices = @transform_0, window_bounds = array<i64: 1, 1, 8>}, {transform_indices = @transform_1, window_bounds = array<i64: 1, 8, 32>}, {transform_indices = @transform_2, window_bounds = array<i64: 1, 8, 32>}, {transform_indices = @transform_3, window_bounds = array<i64: 1, 8, 32>}, {transform_indices = @transform_4, window_bounds = array<i64: 1, 8, 32>}]} {
    %c0_i32 = arith.constant 0 : i32
    %0 = arith.cmpi eq, %arg2, %c0_i32 : i32
    %1 = arith.extui %0 : i1 to i32
    %c0_i32_0 = arith.constant 0 : i32
    %2 = arith.cmpi ne, %1, %c0_i32_0 : i32
    scf.if %2 {
      %cst = arith.constant 0xFF800000 : f32
      %12 = vector.broadcast %cst : f32 to vector<4x8x1xf32>
      %c0 = arith.constant 0 : index
      %c0_5 = arith.constant 0 : index
      %c0_6 = arith.constant 0 : index
      %13 = vector.load %arg8[%c0, %c0_5, %c0_6] : memref<4x8x1xf32, #tpu.memory_space<vmem>>, vector<4x8x1xf32>
      tpu.vector_store %arg8[%c0, %c0_5, %c0_6], %12 {strides = array<i32>} : memref<4x8x1xf32, #tpu.memory_space<vmem>>, vector<4x8x1xf32>,
      %cst_7 = arith.constant 0.000000e+00 : f32
      %14 = vector.broadcast %cst_7 : f32 to vector<4x8x1xf32>
      %c0_8 = arith.constant 0 : index
      %c0_9 = arith.constant 0 : index
      %c0_10 = arith.constant 0 : index
      %15 = vector.load %arg9[%c0_8, %c0_9, %c0_10] : memref<4x8x1xf32, #tpu.memory_space<vmem>>, vector<4x8x1xf32>
      tpu.vector_store %arg9[%c0_8, %c0_9, %c0_10], %14 {strides = array<i32>} : memref<4x8x1xf32, #tpu.memory_space<vmem>>, vector<4x8x1xf32>,
      %cst_11 = arith.constant 0.000000e+00 : f32
      %16 = vector.broadcast %cst_11 : f32 to vector<4x8x8xf32>
      %c0_12 = arith.constant 0 : index
      %c0_13 = arith.constant 0 : index
      %c0_14 = arith.constant 0 : index
      %17 = vector.load %arg10[%c0_12, %c0_13, %c0_14] : memref<4x8x8xf32, #tpu.memory_space<vmem>>, vector<4x8x8xf32>
      tpu.vector_store %arg10[%c0_12, %c0_13, %c0_14], %16 {strides = array<i32>} : memref<4x8x8xf32, #tpu.memory_space<vmem>>, vector<4x8x8xf32>,
    } else {
    }
    %c8_i32 = arith.constant 8 : i32
    %3 = arith.muli %arg2, %c8_i32 : i32
    %c8_i32_1 = arith.constant 8 : i32
    %4 = arith.muli %arg1, %c8_i32_1 : i32
    %c7_i32 = arith.constant 7 : i32
    %5 = arith.addi %4, %c7_i32 : i32
    %6 = arith.cmpi sle, %3, %5 : i32
    %7 = arith.extui %6 : i1 to i32
    %c0_i32_2 = arith.constant 0 : i32
    %8 = arith.cmpi ne, %7, %c0_i32_2 : i32
    scf.if %8 {
      %c0 = arith.constant 0 : index
      %c0_5 = arith.constant 0 : index
      %c0_6 = arith.constant 0 : index
      %12 = vector.load %arg3[%c0, %c0_5, %c0_6] : memref<1x1x8xf32, #tpu.memory_space<vmem>>, vector<1x1x8xf32>
      %13 = vector.shape_cast %12 : vector<1x1x8xf32> to vector<1x8xf32>
      %c8_i32_7 = arith.constant 8 : i32
      %14 = arith.muli %arg1, %c8_i32_7 : i32
      %15 = tpu.iota {dimensions = array<i32: 0>} : vector<8x8xi32>
      %16 = vector.broadcast %14 : i32 to vector<8x8xi32>
      %17 = arith.addi %16, %15 : vector<8x8xi32>
      %c8_i32_8 = arith.constant 8 : i32
      %18 = arith.muli %arg2, %c8_i32_8 : i32
      %19 = tpu.iota {dimensions = array<i32: 1>} : vector<8x8xi32>
      %20 = vector.broadcast %18 : i32 to vector<8x8xi32>
      %21 = arith.addi %20, %19 : vector<8x8xi32>
      %22 = arith.cmpi sle, %21, %17 : vector<8x8xi32>
      %cst = arith.constant 0.000000e+00 : f32
      %cst_9 = arith.constant -1.000000e+09 : f32
      %23 = vector.broadcast %cst : f32 to vector<8x8xf32>
      %24 = vector.broadcast %cst_9 : f32 to vector<8x8xf32>
      %25 = arith.select %22, %23, %24 : vector<8x8xi1>, vector<8x8xf32>
      %26 = vector.broadcast %13 : vector<1x8xf32> to vector<8x8xf32>
      %27 = arith.addf %26, %25 : vector<8x8xf32>
      %c0_10 = arith.constant 0 : index
      %c0_11 = arith.constant 0 : index
      %c0_12 = arith.constant 0 : index
      %28 = vector.load %arg4[%c0_10, %c0_11, %c0_12] : memref<1x8x32xbf16, #tpu.memory_space<vmem>>, vector<1x8x8xbf16>
      %29 = vector.shape_cast %28 : vector<1x8x8xbf16> to vector<8x8xbf16>
      %c0_13 = arith.constant 0 : index
      %c0_14 = arith.constant 0 : index
      %c0_15 = arith.constant 0 : index
      %30 = vector.load %arg5[%c0_13, %c0_14, %c0_15] : memref<1x8x32xbf16, #tpu.memory_space<vmem>>, vector<1x8x8xbf16>
      %31 = vector.shape_cast %30 : vector<1x8x8xbf16> to vector<8x8xbf16>
      %c0_16 = arith.constant 0 : index
      %c0_17 = arith.constant 0 : index
      %c0_18 = arith.constant 0 : index
      %32 = vector.load %arg6[%c0_16, %c0_17, %c0_18] : memref<1x8x32xbf16, #tpu.memory_space<vmem>>, vector<1x8x8xbf16>
      %33 = vector.shape_cast %32 : vector<1x8x8xbf16> to vector<8x8xbf16>
      %cst_19 = arith.constant dense<0.000000e+00> : vector<8x8xf32>
      %34 = tpu.matmul %29, %31, %cst_19 {dimension_numbers = #tpu.dot_dimension_numbers<[1], [1], [0], [0], [0, 0, 1, 0], [], []>} : vector<8x8xbf16>, vector<8x8xbf16>, vector<8x8xf32> -> vector<8x8xf32>
      %35 = arith.addf %34, %27 : vector<8x8xf32>
      %c0_20 = arith.constant 0 : index
      %c0_21 = arith.constant 0 : index
      %c0_22 = arith.constant 0 : index
      %36 = vector.load %arg8[%c0_20, %c0_21, %c0_22] : memref<4x8x1xf32, #tpu.memory_space<vmem>>, vector<1x8x1xf32>
      %37 = vector.shape_cast %36 : vector<1x8x1xf32> to vector<8x1xf32>
      %cst_23 = arith.constant dense<0xFF800000> : vector<8xf32>
      %38 = vector.multi_reduction <maximumf>, %35, %cst_23 [1] : vector<8x8xf32> to vector<8xf32>
      %39 = vector.shape_cast %38 : vector<8xf32> to vector<8x1xf32>
      %40 = arith.maximumf %37, %39 : vector<8x1xf32>
      %41 = arith.subf %37, %40 : vector<8x1xf32>
      %42 = math.exp %41 : vector<8x1xf32>
      %43 = vector.broadcast %40 : vector<8x1xf32> to vector<8x8xf32>
      %44 = arith.subf %35, %43 : vector<8x8xf32>
      %45 = math.exp %44 : vector<8x8xf32>
      %c0_24 = arith.constant 0 : index
      %c0_25 = arith.constant 0 : index
      %c0_26 = arith.constant 0 : index
      %46 = vector.load %arg9[%c0_24, %c0_25, %c0_26] : memref<4x8x1xf32, #tpu.memory_space<vmem>>, vector<1x8x1xf32>
      %47 = vector.shape_cast %46 : vector<1x8x1xf32> to vector<8x1xf32>
      %48 = arith.mulf %42, %47 : vector<8x1xf32>
      %cst_27 = arith.constant dense<0.000000e+00> : vector<8xf32>
      %49 = vector.multi_reduction <add>, %45, %cst_27 [1] : vector<8x8xf32> to vector<8xf32>
      %50 = vector.shape_cast %49 : vector<8xf32> to vector<8x1xf32>
      %51 = arith.addf %48, %50 : vector<8x1xf32>
      %c0_28 = arith.constant 0 : index
      %c0_29 = arith.constant 0 : index
      %c0_30 = arith.constant 0 : index
      %52 = vector.load %arg9[%c0_28, %c0_29, %c0_30] : memref<4x8x1xf32, #tpu.memory_space<vmem>>, vector<1x8x1xf32>
      %53 = vector.shape_cast %52 : vector<1x8x1xf32> to vector<8x1xf32>
      %54 = vector.shape_cast %51 : vector<8x1xf32> to vector<1x8x1xf32>
      tpu.vector_store %arg9[%c0_28, %c0_29, %c0_30], %54 {strides = array<i32>} : memref<4x8x1xf32, #tpu.memory_space<vmem>>, vector<1x8x1xf32>,
      %55 = arith.truncf %45 : vector<8x8xf32> to vector<8x8xbf16>
      %cst_31 = arith.constant dense<0.000000e+00> : vector<8x8xf32>
      %56 = tpu.matmul %55, %33, %cst_31 {dimension_numbers = #tpu.dot_dimension_numbers<[1], [0], [0], [1], [0, 0, 1, 1], [], []>} : vector<8x8xbf16>, vector<8x8xbf16>, vector<8x8xf32> -> vector<8x8xf32>
      %c0_32 = arith.constant 0 : index
      %c0_33 = arith.constant 0 : index
      %c0_34 = arith.constant 0 : index
      %57 = vector.load %arg10[%c0_32, %c0_33, %c0_34] : memref<4x8x8xf32, #tpu.memory_space<vmem>>, vector<1x8x8xf32>
      %58 = vector.shape_cast %57 : vector<1x8x8xf32> to vector<8x8xf32>
      %59 = vector.broadcast %42 : vector<8x1xf32> to vector<8x8xf32>
      %60 = arith.mulf %59, %58 : vector<8x8xf32>
      %61 = arith.addf %60, %56 : vector<8x8xf32>
      %c0_35 = arith.constant 0 : index
      %c0_36 = arith.constant 0 : index
      %c0_37 = arith.constant 0 : index
      %62 = vector.load %arg10[%c0_35, %c0_36, %c0_37] : memref<4x8x8xf32, #tpu.memory_space<vmem>>, vector<1x8x8xf32>
      %63 = vector.shape_cast %62 : vector<1x8x8xf32> to vector<8x8xf32>
      %64 = vector.shape_cast %61 : vector<8x8xf32> to vector<1x8x8xf32>
      tpu.vector_store %arg10[%c0_35, %c0_36, %c0_37], %64 {strides = array<i32>} : memref<4x8x8xf32, #tpu.memory_space<vmem>>, vector<1x8x8xf32>,
      %c0_38 = arith.constant 0 : index
      %c0_39 = arith.constant 0 : index
      %c0_40 = arith.constant 0 : index
      %65 = vector.load %arg8[%c0_38, %c0_39, %c0_40] : memref<4x8x1xf32, #tpu.memory_space<vmem>>, vector<1x8x1xf32>
      %66 = vector.shape_cast %65 : vector<1x8x1xf32> to vector<8x1xf32>
      %67 = vector.shape_cast %40 : vector<8x1xf32> to vector<1x8x1xf32>
      tpu.vector_store %arg8[%c0_38, %c0_39, %c0_40], %67 {strides = array<i32>} : memref<4x8x1xf32, #tpu.memory_space<vmem>>, vector<1x8x1xf32>,
      %c0_41 = arith.constant 0 : index
      %c0_42 = arith.constant 0 : index
      %c8 = arith.constant 8 : index
      %68 = vector.load %arg4[%c0_41, %c0_42, %c8] : memref<1x8x32xbf16, #tpu.memory_space<vmem>>, vector<1x8x8xbf16>
      %69 = vector.shape_cast %68 : vector<1x8x8xbf16> to vector<8x8xbf16>
      %c0_43 = arith.constant 0 : index
      %c0_44 = arith.constant 0 : index
      %c8_45 = arith.constant 8 : index
      %70 = vector.load %arg5[%c0_43, %c0_44, %c8_45] : memref<1x8x32xbf16, #tpu.memory_space<vmem>>, vector<1x8x8xbf16>
      %71 = vector.shape_cast %70 : vector<1x8x8xbf16> to vector<8x8xbf16>
      %c0_46 = arith.constant 0 : index
      %c0_47 = arith.constant 0 : index
      %c8_48 = arith.constant 8 : index
      %72 = vector.load %arg6[%c0_46, %c0_47, %c8_48] : memref<1x8x32xbf16, #tpu.memory_space<vmem>>, vector<1x8x8xbf16>
      %73 = vector.shape_cast %72 : vector<1x8x8xbf16> to vector<8x8xbf16>
      %cst_49 = arith.constant dense<0.000000e+00> : vector<8x8xf32>
      %74 = tpu.matmul %69, %71, %cst_49 {dimension_numbers = #tpu.dot_dimension_numbers<[1], [1], [0], [0], [0, 0, 1, 0], [], []>} : vector<8x8xbf16>, vector<8x8xbf16>, vector<8x8xf32> -> vector<8x8xf32>
      %75 = arith.addf %74, %27 : vector<8x8xf32>
      %c1 = arith.constant 1 : index
      %c0_50 = arith.constant 0 : index
      %c0_51 = arith.constant 0 : index
      %76 = vector.load %arg8[%c1, %c0_50, %c0_51] : memref<4x8x1xf32, #tpu.memory_space<vmem>>, vector<1x8x1xf32>
      %77 = vector.shape_cast %76 : vector<1x8x1xf32> to vector<8x1xf32>
      %cst_52 = arith.constant dense<0xFF800000> : vector<8xf32>
      %78 = vector.multi_reduction <maximumf>, %75, %cst_52 [1] : vector<8x8xf32> to vector<8xf32>
      %79 = vector.shape_cast %78 : vector<8xf32> to vector<8x1xf32>
      %80 = arith.maximumf %77, %79 : vector<8x1xf32>
      %81 = arith.subf %77, %80 : vector<8x1xf32>
      %82 = math.exp %81 : vector<8x1xf32>
      %83 = vector.broadcast %80 : vector<8x1xf32> to vector<8x8xf32>
      %84 = arith.subf %75, %83 : vector<8x8xf32>
      %85 = math.exp %84 : vector<8x8xf32>
      %c1_53 = arith.constant 1 : index
      %c0_54 = arith.constant 0 : index
      %c0_55 = arith.constant 0 : index
      %86 = vector.load %arg9[%c1_53, %c0_54, %c0_55] : memref<4x8x1xf32, #tpu.memory_space<vmem>>, vector<1x8x1xf32>
      %87 = vector.shape_cast %86 : vector<1x8x1xf32> to vector<8x1xf32>
      %88 = arith.mulf %82, %87 : vector<8x1xf32>
      %cst_56 = arith.constant dense<0.000000e+00> : vector<8xf32>
      %89 = vector.multi_reduction <add>, %85, %cst_56 [1] : vector<8x8xf32> to vector<8xf32>
      %90 = vector.shape_cast %89 : vector<8xf32> to vector<8x1xf32>
      %91 = arith.addf %88, %90 : vector<8x1xf32>
      %c1_57 = arith.constant 1 : index
      %c0_58 = arith.constant 0 : index
      %c0_59 = arith.constant 0 : index
      %92 = vector.load %arg9[%c1_57, %c0_58, %c0_59] : memref<4x8x1xf32, #tpu.memory_space<vmem>>, vector<1x8x1xf32>
      %93 = vector.shape_cast %92 : vector<1x8x1xf32> to vector<8x1xf32>
      %94 = vector.shape_cast %91 : vector<8x1xf32> to vector<1x8x1xf32>
      tpu.vector_store %arg9[%c1_57, %c0_58, %c0_59], %94 {strides = array<i32>} : memref<4x8x1xf32, #tpu.memory_space<vmem>>, vector<1x8x1xf32>,
      %95 = arith.truncf %85 : vector<8x8xf32> to vector<8x8xbf16>
      %cst_60 = arith.constant dense<0.000000e+00> : vector<8x8xf32>
      %96 = tpu.matmul %95, %73, %cst_60 {dimension_numbers = #tpu.dot_dimension_numbers<[1], [0], [0], [1], [0, 0, 1, 1], [], []>} : vector<8x8xbf16>, vector<8x8xbf16>, vector<8x8xf32> -> vector<8x8xf32>
      %c1_61 = arith.constant 1 : index
      %c0_62 = arith.constant 0 : index
      %c0_63 = arith.constant 0 : index
      %97 = vector.load %arg10[%c1_61, %c0_62, %c0_63] : memref<4x8x8xf32, #tpu.memory_space<vmem>>, vector<1x8x8xf32>
      %98 = vector.shape_cast %97 : vector<1x8x8xf32> to vector<8x8xf32>
      %99 = vector.broadcast %82 : vector<8x1xf32> to vector<8x8xf32>
      %100 = arith.mulf %99, %98 : vector<8x8xf32>
      %101 = arith.addf %100, %96 : vector<8x8xf32>
      %c1_64 = arith.constant 1 : index
      %c0_65 = arith.constant 0 : index
      %c0_66 = arith.constant 0 : index
      %102 = vector.load %arg10[%c1_64, %c0_65, %c0_66] : memref<4x8x8xf32, #tpu.memory_space<vmem>>, vector<1x8x8xf32>
      %103 = vector.shape_cast %102 : vector<1x8x8xf32> to vector<8x8xf32>
      %104 = vector.shape_cast %101 : vector<8x8xf32> to vector<1x8x8xf32>
      tpu.vector_store %arg10[%c1_64, %c0_65, %c0_66], %104 {strides = array<i32>} : memref<4x8x8xf32, #tpu.memory_space<vmem>>, vector<1x8x8xf32>,
      %c1_67 = arith.constant 1 : index
      %c0_68 = arith.constant 0 : index
      %c0_69 = arith.constant 0 : index
      %105 = vector.load %arg8[%c1_67, %c0_68, %c0_69] : memref<4x8x1xf32, #tpu.memory_space<vmem>>, vector<1x8x1xf32>
      %106 = vector.shape_cast %105 : vector<1x8x1xf32> to vector<8x1xf32>
      %107 = vector.shape_cast %80 : vector<8x1xf32> to vector<1x8x1xf32>
      tpu.vector_store %arg8[%c1_67, %c0_68, %c0_69], %107 {strides = array<i32>} : memref<4x8x1xf32, #tpu.memory_space<vmem>>, vector<1x8x1xf32>,
      %c0_70 = arith.constant 0 : index
      %c0_71 = arith.constant 0 : index
      %c16 = arith.constant 16 : index
      %108 = vector.load %arg4[%c0_70, %c0_71, %c16] : memref<1x8x32xbf16, #tpu.memory_space<vmem>>, vector<1x8x8xbf16>
      %109 = vector.shape_cast %108 : vector<1x8x8xbf16> to vector<8x8xbf16>
      %c0_72 = arith.constant 0 : index
      %c0_73 = arith.constant 0 : index
      %c16_74 = arith.constant 16 : index
      %110 = vector.load %arg5[%c0_72, %c0_73, %c16_74] : memref<1x8x32xbf16, #tpu.memory_space<vmem>>, vector<1x8x8xbf16>
      %111 = vector.shape_cast %110 : vector<1x8x8xbf16> to vector<8x8xbf16>
      %c0_75 = arith.constant 0 : index
      %c0_76 = arith.constant 0 : index
      %c16_77 = arith.constant 16 : index
      %112 = vector.load %arg6[%c0_75, %c0_76, %c16_77] : memref<1x8x32xbf16, #tpu.memory_space<vmem>>, vector<1x8x8xbf16>
      %113 = vector.shape_cast %112 : vector<1x8x8xbf16> to vector<8x8xbf16>
      %cst_78 = arith.constant dense<0.000000e+00> : vector<8x8xf32>
      %114 = tpu.matmul %109, %111, %cst_78 {dimension_numbers = #tpu.dot_dimension_numbers<[1], [1], [0], [0], [0, 0, 1, 0], [], []>} : vector<8x8xbf16>, vector<8x8xbf16>, vector<8x8xf32> -> vector<8x8xf32>
      %115 = arith.addf %114, %27 : vector<8x8xf32>
      %c2 = arith.constant 2 : index
      %c0_79 = arith.constant 0 : index
      %c0_80 = arith.constant 0 : index
      %116 = vector.load %arg8[%c2, %c0_79, %c0_80] : memref<4x8x1xf32, #tpu.memory_space<vmem>>, vector<1x8x1xf32>
      %117 = vector.shape_cast %116 : vector<1x8x1xf32> to vector<8x1xf32>
      %cst_81 = arith.constant dense<0xFF800000> : vector<8xf32>
      %118 = vector.multi_reduction <maximumf>, %115, %cst_81 [1] : vector<8x8xf32> to vector<8xf32>
      %119 = vector.shape_cast %118 : vector<8xf32> to vector<8x1xf32>
      %120 = arith.maximumf %117, %119 : vector<8x1xf32>
      %121 = arith.subf %117, %120 : vector<8x1xf32>
      %122 = math.exp %121 : vector<8x1xf32>
      %123 = vector.broadcast %120 : vector<8x1xf32> to vector<8x8xf32>
      %124 = arith.subf %115, %123 : vector<8x8xf32>
      %125 = math.exp %124 : vector<8x8xf32>
      %c2_82 = arith.constant 2 : index
      %c0_83 = arith.constant 0 : index
      %c0_84 = arith.constant 0 : index
      %126 = vector.load %arg9[%c2_82, %c0_83, %c0_84] : memref<4x8x1xf32, #tpu.memory_space<vmem>>, vector<1x8x1xf32>
      %127 = vector.shape_cast %126 : vector<1x8x1xf32> to vector<8x1xf32>
      %128 = arith.mulf %122, %127 : vector<8x1xf32>
      %cst_85 = arith.constant dense<0.000000e+00> : vector<8xf32>
      %129 = vector.multi_reduction <add>, %125, %cst_85 [1] : vector<8x8xf32> to vector<8xf32>
      %130 = vector.shape_cast %129 : vector<8xf32> to vector<8x1xf32>
      %131 = arith.addf %128, %130 : vector<8x1xf32>
      %c2_86 = arith.constant 2 : index
      %c0_87 = arith.constant 0 : index
      %c0_88 = arith.constant 0 : index
      %132 = vector.load %arg9[%c2_86, %c0_87, %c0_88] : memref<4x8x1xf32, #tpu.memory_space<vmem>>, vector<1x8x1xf32>
      %133 = vector.shape_cast %132 : vector<1x8x1xf32> to vector<8x1xf32>
      %134 = vector.shape_cast %131 : vector<8x1xf32> to vector<1x8x1xf32>
      tpu.vector_store %arg9[%c2_86, %c0_87, %c0_88], %134 {strides = array<i32>} : memref<4x8x1xf32, #tpu.memory_space<vmem>>, vector<1x8x1xf32>,
      %135 = arith.truncf %125 : vector<8x8xf32> to vector<8x8xbf16>
      %cst_89 = arith.constant dense<0.000000e+00> : vector<8x8xf32>
      %136 = tpu.matmul %135, %113, %cst_89 {dimension_numbers = #tpu.dot_dimension_numbers<[1], [0], [0], [1], [0, 0, 1, 1], [], []>} : vector<8x8xbf16>, vector<8x8xbf16>, vector<8x8xf32> -> vector<8x8xf32>
      %c2_90 = arith.constant 2 : index
      %c0_91 = arith.constant 0 : index
      %c0_92 = arith.constant 0 : index
      %137 = vector.load %arg10[%c2_90, %c0_91, %c0_92] : memref<4x8x8xf32, #tpu.memory_space<vmem>>, vector<1x8x8xf32>
      %138 = vector.shape_cast %137 : vector<1x8x8xf32> to vector<8x8xf32>
      %139 = vector.broadcast %122 : vector<8x1xf32> to vector<8x8xf32>
      %140 = arith.mulf %139, %138 : vector<8x8xf32>
      %141 = arith.addf %140, %136 : vector<8x8xf32>
      %c2_93 = arith.constant 2 : index
      %c0_94 = arith.constant 0 : index
      %c0_95 = arith.constant 0 : index
      %142 = vector.load %arg10[%c2_93, %c0_94, %c0_95] : memref<4x8x8xf32, #tpu.memory_space<vmem>>, vector<1x8x8xf32>
      %143 = vector.shape_cast %142 : vector<1x8x8xf32> to vector<8x8xf32>
      %144 = vector.shape_cast %141 : vector<8x8xf32> to vector<1x8x8xf32>
      tpu.vector_store %arg10[%c2_93, %c0_94, %c0_95], %144 {strides = array<i32>} : memref<4x8x8xf32, #tpu.memory_space<vmem>>, vector<1x8x8xf32>,
      %c2_96 = arith.constant 2 : index
      %c0_97 = arith.constant 0 : index
      %c0_98 = arith.constant 0 : index
      %145 = vector.load %arg8[%c2_96, %c0_97, %c0_98] : memref<4x8x1xf32, #tpu.memory_space<vmem>>, vector<1x8x1xf32>
      %146 = vector.shape_cast %145 : vector<1x8x1xf32> to vector<8x1xf32>
      %147 = vector.shape_cast %120 : vector<8x1xf32> to vector<1x8x1xf32>
      tpu.vector_store %arg8[%c2_96, %c0_97, %c0_98], %147 {strides = array<i32>} : memref<4x8x1xf32, #tpu.memory_space<vmem>>, vector<1x8x1xf32>,
      %c0_99 = arith.constant 0 : index
      %c0_100 = arith.constant 0 : index
      %c24 = arith.constant 24 : index
      %148 = vector.load %arg4[%c0_99, %c0_100, %c24] : memref<1x8x32xbf16, #tpu.memory_space<vmem>>, vector<1x8x8xbf16>
      %149 = vector.shape_cast %148 : vector<1x8x8xbf16> to vector<8x8xbf16>
      %c0_101 = arith.constant 0 : index
      %c0_102 = arith.constant 0 : index
      %c24_103 = arith.constant 24 : index
      %150 = vector.load %arg5[%c0_101, %c0_102, %c24_103] : memref<1x8x32xbf16, #tpu.memory_space<vmem>>, vector<1x8x8xbf16>
      %151 = vector.shape_cast %150 : vector<1x8x8xbf16> to vector<8x8xbf16>
      %c0_104 = arith.constant 0 : index
      %c0_105 = arith.constant 0 : index
      %c24_106 = arith.constant 24 : index
      %152 = vector.load %arg6[%c0_104, %c0_105, %c24_106] : memref<1x8x32xbf16, #tpu.memory_space<vmem>>, vector<1x8x8xbf16>
      %153 = vector.shape_cast %152 : vector<1x8x8xbf16> to vector<8x8xbf16>
      %cst_107 = arith.constant dense<0.000000e+00> : vector<8x8xf32>
      %154 = tpu.matmul %149, %151, %cst_107 {dimension_numbers = #tpu.dot_dimension_numbers<[1], [1], [0], [0], [0, 0, 1, 0], [], []>} : vector<8x8xbf16>, vector<8x8xbf16>, vector<8x8xf32> -> vector<8x8xf32>
      %155 = arith.addf %154, %27 : vector<8x8xf32>
      %c3 = arith.constant 3 : index
      %c0_108 = arith.constant 0 : index
      %c0_109 = arith.constant 0 : index
      %156 = vector.load %arg8[%c3, %c0_108, %c0_109] : memref<4x8x1xf32, #tpu.memory_space<vmem>>, vector<1x8x1xf32>
      %157 = vector.shape_cast %156 : vector<1x8x1xf32> to vector<8x1xf32>
      %cst_110 = arith.constant dense<0xFF800000> : vector<8xf32>
      %158 = vector.multi_reduction <maximumf>, %155, %cst_110 [1] : vector<8x8xf32> to vector<8xf32>
      %159 = vector.shape_cast %158 : vector<8xf32> to vector<8x1xf32>
      %160 = arith.maximumf %157, %159 : vector<8x1xf32>
      %161 = arith.subf %157, %160 : vector<8x1xf32>
      %162 = math.exp %161 : vector<8x1xf32>
      %163 = vector.broadcast %160 : vector<8x1xf32> to vector<8x8xf32>
      %164 = arith.subf %155, %163 : vector<8x8xf32>
      %165 = math.exp %164 : vector<8x8xf32>
      %c3_111 = arith.constant 3 : index
      %c0_112 = arith.constant 0 : index
      %c0_113 = arith.constant 0 : index
      %166 = vector.load %arg9[%c3_111, %c0_112, %c0_113] : memref<4x8x1xf32, #tpu.memory_space<vmem>>, vector<1x8x1xf32>
      %167 = vector.shape_cast %166 : vector<1x8x1xf32> to vector<8x1xf32>
      %168 = arith.mulf %162, %167 : vector<8x1xf32>
      %cst_114 = arith.constant dense<0.000000e+00> : vector<8xf32>
      %169 = vector.multi_reduction <add>, %165, %cst_114 [1] : vector<8x8xf32> to vector<8xf32>
      %170 = vector.shape_cast %169 : vector<8xf32> to vector<8x1xf32>
      %171 = arith.addf %168, %170 : vector<8x1xf32>
      %c3_115 = arith.constant 3 : index
      %c0_116 = arith.constant 0 : index
      %c0_117 = arith.constant 0 : index
      %172 = vector.load %arg9[%c3_115, %c0_116, %c0_117] : memref<4x8x1xf32, #tpu.memory_space<vmem>>, vector<1x8x1xf32>
      %173 = vector.shape_cast %172 : vector<1x8x1xf32> to vector<8x1xf32>
      %174 = vector.shape_cast %171 : vector<8x1xf32> to vector<1x8x1xf32>
      tpu.vector_store %arg9[%c3_115, %c0_116, %c0_117], %174 {strides = array<i32>} : memref<4x8x1xf32, #tpu.memory_space<vmem>>, vector<1x8x1xf32>,
      %175 = arith.truncf %165 : vector<8x8xf32> to vector<8x8xbf16>
      %cst_118 = arith.constant dense<0.000000e+00> : vector<8x8xf32>
      %176 = tpu.matmul %175, %153, %cst_118 {dimension_numbers = #tpu.dot_dimension_numbers<[1], [0], [0], [1], [0, 0, 1, 1], [], []>} : vector<8x8xbf16>, vector<8x8xbf16>, vector<8x8xf32> -> vector<8x8xf32>
      %c3_119 = arith.constant 3 : index
      %c0_120 = arith.constant 0 : index
      %c0_121 = arith.constant 0 : index
      %177 = vector.load %arg10[%c3_119, %c0_120, %c0_121] : memref<4x8x8xf32, #tpu.memory_space<vmem>>, vector<1x8x8xf32>
      %178 = vector.shape_cast %177 : vector<1x8x8xf32> to vector<8x8xf32>
      %179 = vector.broadcast %162 : vector<8x1xf32> to vector<8x8xf32>
      %180 = arith.mulf %179, %178 : vector<8x8xf32>
      %181 = arith.addf %180, %176 : vector<8x8xf32>
      %c3_122 = arith.constant 3 : index
      %c0_123 = arith.constant 0 : index
      %c0_124 = arith.constant 0 : index
      %182 = vector.load %arg10[%c3_122, %c0_123, %c0_124] : memref<4x8x8xf32, #tpu.memory_space<vmem>>, vector<1x8x8xf32>
      %183 = vector.shape_cast %182 : vector<1x8x8xf32> to vector<8x8xf32>
      %184 = vector.shape_cast %181 : vector<8x8xf32> to vector<1x8x8xf32>
      tpu.vector_store %arg10[%c3_122, %c0_123, %c0_124], %184 {strides = array<i32>} : memref<4x8x8xf32, #tpu.memory_space<vmem>>, vector<1x8x8xf32>,
      %c3_125 = arith.constant 3 : index
      %c0_126 = arith.constant 0 : index
      %c0_127 = arith.constant 0 : index
      %185 = vector.load %arg8[%c3_125, %c0_126, %c0_127] : memref<4x8x1xf32, #tpu.memory_space<vmem>>, vector<1x8x1xf32>
      %186 = vector.shape_cast %185 : vector<1x8x1xf32> to vector<8x1xf32>
      %187 = vector.shape_cast %160 : vector<8x1xf32> to vector<1x8x1xf32>
      tpu.vector_store %arg8[%c3_125, %c0_126, %c0_127], %187 {strides = array<i32>} : memref<4x8x1xf32, #tpu.memory_space<vmem>>, vector<1x8x1xf32>,
    } else {
    }
    %c0_i32_3 = arith.constant 0 : i32
    %9 = arith.cmpi eq, %arg2, %c0_i32_3 : i32
    %10 = arith.extui %9 : i1 to i32
    %c0_i32_4 = arith.constant 0 : i32
    %11 = arith.cmpi ne, %10, %c0_i32_4 : i32
    scf.if %11 {
      %c0 = arith.constant 0 : index
      %c0_5 = arith.constant 0 : index
      %c0_6 = arith.constant 0 : index
      %12 = vector.load %arg9[%c0, %c0_5, %c0_6] : memref<4x8x1xf32, #tpu.memory_space<vmem>>, vector<1x8x1xf32>
      %13 = vector.shape_cast %12 : vector<1x8x1xf32> to vector<8x1xf32>
      %14 = tpu.reciprocal %13 {approx = true} : vector<8x1xf32> -> vector<8x1xf32>
      %c0_7 = arith.constant 0 : index
      %c0_8 = arith.constant 0 : index
      %c0_9 = arith.constant 0 : index
      %15 = vector.load %arg10[%c0_7, %c0_8, %c0_9] : memref<4x8x8xf32, #tpu.memory_space<vmem>>, vector<1x8x8xf32>
      %16 = vector.shape_cast %15 : vector<1x8x8xf32> to vector<8x8xf32>
      %17 = vector.broadcast %14 : vector<8x1xf32> to vector<8x8xf32>
      %18 = arith.mulf %16, %17 : vector<8x8xf32>
      %c1 = arith.constant 1 : index
      %c0_10 = arith.constant 0 : index
      %c0_11 = arith.constant 0 : index
      %19 = vector.load %arg9[%c1, %c0_10, %c0_11] : memref<4x8x1xf32, #tpu.memory_space<vmem>>, vector<1x8x1xf32>
      %20 = vector.shape_cast %19 : vector<1x8x1xf32> to vector<8x1xf32>
      %21 = tpu.reciprocal %20 {approx = true} : vector<8x1xf32> -> vector<8x1xf32>
      %c1_12 = arith.constant 1 : index
      %c0_13 = arith.constant 0 : index
      %c0_14 = arith.constant 0 : index
      %22 = vector.load %arg10[%c1_12, %c0_13, %c0_14] : memref<4x8x8xf32, #tpu.memory_space<vmem>>, vector<1x8x8xf32>
      %23 = vector.shape_cast %22 : vector<1x8x8xf32> to vector<8x8xf32>
      %24 = vector.broadcast %21 : vector<8x1xf32> to vector<8x8xf32>
      %25 = arith.mulf %23, %24 : vector<8x8xf32>
      %c2 = arith.constant 2 : index
      %c0_15 = arith.constant 0 : index
      %c0_16 = arith.constant 0 : index
      %26 = vector.load %arg9[%c2, %c0_15, %c0_16] : memref<4x8x1xf32, #tpu.memory_space<vmem>>, vector<1x8x1xf32>
      %27 = vector.shape_cast %26 : vector<1x8x1xf32> to vector<8x1xf32>
      %28 = tpu.reciprocal %27 {approx = true} : vector<8x1xf32> -> vector<8x1xf32>
      %c2_17 = arith.constant 2 : index
      %c0_18 = arith.constant 0 : index
      %c0_19 = arith.constant 0 : index
      %29 = vector.load %arg10[%c2_17, %c0_18, %c0_19] : memref<4x8x8xf32, #tpu.memory_space<vmem>>, vector<1x8x8xf32>
      %30 = vector.shape_cast %29 : vector<1x8x8xf32> to vector<8x8xf32>
      %31 = vector.broadcast %28 : vector<8x1xf32> to vector<8x8xf32>
      %32 = arith.mulf %30, %31 : vector<8x8xf32>
      %c3 = arith.constant 3 : index
      %c0_20 = arith.constant 0 : index
      %c0_21 = arith.constant 0 : index
      %33 = vector.load %arg9[%c3, %c0_20, %c0_21] : memref<4x8x1xf32, #tpu.memory_space<vmem>>, vector<1x8x1xf32>
      %34 = vector.shape_cast %33 : vector<1x8x1xf32> to vector<8x1xf32>
      %35 = tpu.reciprocal %34 {approx = true} : vector<8x1xf32> -> vector<8x1xf32>
      %c3_22 = arith.constant 3 : index
      %c0_23 = arith.constant 0 : index
      %c0_24 = arith.constant 0 : index
      %36 = vector.load %arg10[%c3_22, %c0_23, %c0_24] : memref<4x8x8xf32, #tpu.memory_space<vmem>>, vector<1x8x8xf32>
      %37 = vector.shape_cast %36 : vector<1x8x8xf32> to vector<8x8xf32>
      %38 = vector.broadcast %35 : vector<8x1xf32> to vector<8x8xf32>
      %39 = arith.mulf %37, %38 : vector<8x8xf32>
      %40 = tpu.concatenate %18, %25, %32, %39 in 1 : vector<8x8xf32>, vector<8x8xf32>, vector<8x8xf32>, vector<8x8xf32> -> vector<8x32xf32>
      %41 = arith.truncf %40 : vector<8x32xf32> to vector<8x32xbf16>
      %c0_25 = arith.constant 0 : index
      %c0_26 = arith.constant 0 : index
      %c0_27 = arith.constant 0 : index
      %42 = vector.load %arg7[%c0_25, %c0_26, %c0_27] : memref<1x8x32xbf16, #tpu.memory_space<vmem>>, vector<1x8x32xbf16>
      %43 = vector.shape_cast %42 : vector<1x8x32xbf16> to vector<8x32xbf16>
      %44 = vector.shape_cast %41 : vector<8x32xbf16> to vector<1x8x32xbf16>
      tpu.vector_store %arg7[%c0_25, %c0_26, %c0_27], %44 {strides = array<i32>} : memref<1x8x32xbf16, #tpu.memory_space<vmem>>, vector<1x8x32xbf16>,
    } else {
    }
    return
  }
  func.func @transform_0(%arg0: i32, %arg1: i32, %arg2: i32) -> (i32, i32, i32) {
    %c0_i32 = arith.constant 0 : i32
    %c0_i32_0 = arith.constant 0 : i32
    return %arg0, %c0_i32, %arg2 : i32, i32, i32
  }
  func.func @transform_1(%arg0: i32, %arg1: i32, %arg2: i32) -> (i32, i32, i32) {
    %c0_i32 = arith.constant 0 : i32
    %c0_i32_0 = arith.constant 0 : i32
    return %arg0, %arg1, %c0_i32 : i32, i32, i32
  }
  func.func @transform_2(%arg0: i32, %arg1: i32, %arg2: i32) -> (i32, i32, i32) {
    %c0_i32 = arith.constant 0 : i32
    %c0_i32_0 = arith.constant 0 : i32
    return %arg0, %arg2, %c0_i32 : i32, i32, i32
  }
  func.func @transform_3(%arg0: i32, %arg1: i32, %arg2: i32) -> (i32, i32, i32) {
    %c0_i32 = arith.constant 0 : i32
    %c0_i32_0 = arith.constant 0 : i32
    return %arg0, %arg2, %c0_i32 : i32, i32, i32
  }
  func.func @transform_4(%arg0: i32, %arg1: i32, %arg2: i32) -> (i32, i32, i32) {
    %c0_i32 = arith.constant 0 : i32
    %c0_i32_0 = arith.constant 0 : i32
    return %arg0, %arg1, %c0_i32 : i32, i32, i32
  }
}

module attributes {stable_mosaic.version = 11 : i64} {
  func.func @_outproj_kernel(%arg0: i32, %arg1: i32, %arg2: memref<16x32xbf16, #tpu.memory_space<vmem>>, %arg3: memref<32x32xbf16, #tpu.memory_space<vmem>>, %arg4: memref<16x32xbf16, #tpu.memory_space<vmem>>) attributes {dimension_semantics = [#tpu.dimension_semantics<parallel>, #tpu.dimension_semantics<parallel>], iteration_bounds = array<i64: 1, 1>, scalar_prefetch = 0 : i64, scratch_operands = 0 : i64, tpu.core_type = #tpu.core_type<tc>, window_params = [{transform_indices = @transform_0, window_bounds = array<i64: 16, 32>}, {transform_indices = @transform_1, window_bounds = array<i64: 32, 32>}, {transform_indices = @transform_2, window_bounds = array<i64: 16, 32>}]} {
    %c0 = arith.constant 0 : index
    %c0_0 = arith.constant 0 : index
    %0 = vector.load %arg2[%c0, %c0_0] : memref<16x32xbf16, #tpu.memory_space<vmem>>, vector<16x32xbf16>
    %c0_1 = arith.constant 0 : index
    %c0_2 = arith.constant 0 : index
    %1 = vector.load %arg3[%c0_1, %c0_2] : memref<32x32xbf16, #tpu.memory_space<vmem>>, vector<32x32xbf16>
    %cst = arith.constant dense<0.000000e+00> : vector<16x32xf32>
    %2 = tpu.matmul %0, %1, %cst {dimension_numbers = #tpu.dot_dimension_numbers<[1], [1], [0], [0], [0, 0, 1, 0], [], []>} : vector<16x32xbf16>, vector<32x32xbf16>, vector<16x32xf32> -> vector<16x32xf32>
    %cst_3 = arith.constant 0.176776692 : f32
    %3 = vector.broadcast %cst_3 : f32 to vector<16x32xf32>
    %4 = arith.mulf %2, %3 : vector<16x32xf32>
    %5 = arith.truncf %4 : vector<16x32xf32> to vector<16x32xbf16>
    %c0_4 = arith.constant 0 : index
    %c0_5 = arith.constant 0 : index
    %6 = vector.load %arg4[%c0_4, %c0_5] : memref<16x32xbf16, #tpu.memory_space<vmem>>, vector<16x32xbf16>
    tpu.vector_store %arg4[%c0_4, %c0_5], %5 {strides = array<i32>} : memref<16x32xbf16, #tpu.memory_space<vmem>>, vector<16x32xbf16>,
    return
  }
  func.func @transform_0(%arg0: i32, %arg1: i32) -> (i32, i32) {
    %c0_i32 = arith.constant 0 : i32
    %c0_i32_0 = arith.constant 0 : i32
    return %arg0, %c0_i32 : i32, i32
  }
  func.func @transform_1(%arg0: i32, %arg1: i32) -> (i32, i32) {
    %c0_i32 = arith.constant 0 : i32
    %c0_i32_0 = arith.constant 0 : i32
    return %arg1, %c0_i32 : i32, i32
  }
  func.func @transform_2(%arg0: i32, %arg1: i32) -> (i32, i32) {
    %c0_i32 = arith.constant 0 : i32
    return %arg0, %arg1 : i32, i32
  }
}

</mosaic_0001>

<bundles_post_ra>
// kernel: transformer_fwd.32
= control target key start
LH: loop header
LB: loop body
LE: loop exit
PB: predicated region body
PF: predicated region fallthrough
CT: control target
= control target key end

     0   :  { %vm19_vm0 = vcmask 785408   ;;  %v151_v0 = vmov 0.0   ;;  %vm152_vm1 = vmmov 0   ;;  %vm47_vm2 = vcmask 261120   ;;  %s195_s1 = inlined_call_operand.vmem [shape: bf16[32,96], index: 1, kind: input, shape index: {}]   ;;  %s196_s0 = inlined_call_operand.vmem [shape: bf16[16,32], index: 0, kind: input, shape index: {}]   ;;  %s197_s2 = inlined_call_operand.vmem [shape: f32[1,96], index: 2, kind: input, shape index: {}]   ;;  %s198_s3 = inlined_call_operand.vmem [shape: bf16[16,96], index: 3, kind: output, shape index: {}]  }
   0x1   :  { %138 = vmatprep.subr.bf16.mxu0 %v151_v0  ;;  %v148_v1 = vld [vmem:[%s195_s1] sm:$0xff]   ;;  %142 = vmatprep.mubr.msk.bf16.mxu0 %vm152_vm1, %v151_v0  ;;  %20 = vst.msk [vmem:[#allocation2] sm:$0xff] %vm19_vm0, %v151_v0  ;;  %21 = vst.msk [vmem:[#allocation2 + $0x8] sm:$0xff] %vm19_vm0, %v151_v0  ;;  %v149_v2 = vld [vmem:[%s195_s1 + $0x8] sm:$0xff]   ;;  %vm119_vm3 = vcmask 781312  }
   0x2   :  { %139 = vmatpush3.bf16.msra.mxu0 %v148_v1  ;;  %v150_v3 = vld [vmem:[%s196_s0] sm:$0xff]  }
   0x3   :  { %140 = vmatprep.subr.bf16.mxu0 %v151_v0  ;;  %v130_v12 = vld [vmem:[%s197_s2] ss:$0 sm:$0xff] }
   0x6   :  { %141 = vmatpush3.bf16.msra.mxu0 %v149_v2 }
   0x8   :  { %v22_v4 = vld [vmem:[#allocation2] sm:$0xff]  ;;  %v23_v6 = vld [vmem:[#allocation2 + $0x8] sm:$0xff] }
   0x9   :  { %143 = vmatmul.mubr.msk.bf16.vlgmr.msra.gmra.mrb[0].mxu0 %vm47_vm2, %v150_v3 }
  0xdc   :  { %v85_v5 = vpop.f32.mrb[0].mxu0 }
  0xdd   :  { %v92_v7 = vadd.f32 %v85_v5, %v22_v4  ;;  %v144_v8 = vpop.f32.mrb[1].mxu0 }
  0xde   :  { %v88_v9 = vpop.f32.mrb[2].mxu0 }
  0xdf   :  { %95 = vst.msk [vmem:[#allocation2] sm:$0xff] %vm19_vm0, %v92_v7  ;;  %v93_v10 = vadd.f32 %v88_v9, %v23_v6  ;;  %v145_v11 = vpop.f32.mrb[3].mxu0 }
  0xe1   :  { %96 = vst.msk [vmem:[#allocation2 + $0x8] sm:$0xff] %vm19_vm0, %v93_v10 }
  0xe6   :  { %v100_v13 = vld [vmem:[#allocation2] sm:$0xff] }
  0xe7   :  { %v109_v14 = vadd.f32 %v130_v12, %v100_v13 }
  0xe8   :  { %v101_v15 = vld [vmem:[#allocation2 + $0x8] sm:$0xff] }
  0xe9   :  { %v133_v16 = vpack.c.bf16 %v109_v14, %v109_v14  ;;  %v110_v17 = vadd.f32 %v130_v12, %v101_v15 }
  0xeb   :  { %120 = vst.msk [vmem:[%s198_s3] sm:$0xf] %vm119_vm3, %v133_v16  ;;  %v134_v18 = vpack.c.bf16 %v110_v17, %v110_v17 }
  0xed   :  { %121 = vst.msk [vmem:[%s198_s3 + $0x4] sm:$0xf] %vm119_vm3, %v134_v18 }

// kernel: transformer_fwd.31
= control target key start
LH: loop header
LB: loop body
LE: loop exit
PB: predicated region body
PF: predicated region fallthrough
CT: control target
= control target key end

     0   :  { %s338_s15 = smov 0   ;;  %s364_s0 = inlined_call_operand.vmem [shape: bf16[2,8,32], index: 0, kind: input, shape index: {}]   ;;  %s365_s1 = inlined_call_operand.vmem [shape: f32[1,8,32], index: 1, kind: input, shape index: {}]   ;;  %s366_s2 = inlined_call_operand.vmem [shape: f32[1,1,32], index: 2, kind: input, shape index: {}]   ;;  %s367_s3 = inlined_call_operand.vmem [shape: f32[1,1,32], index: 3, kind: input, shape index: {}]   ;;  %s368_s4 = inlined_call_operand.vmem [shape: bf16[2,8,32], index: 4, kind: output, shape index: {}]  }
   0x1 LB: > { %s284_s16 = sadd.s32 4294967295, %s311_s15   ;;  %p288_p0 = scmp.ge.s32.totalorder %s311_s15, 1  ;;  %s311_s15 = sphi %s338_s15, %s14_s15  }
   0x2   : > { %p161_p1 = scmp.lt.s32.totalorder %s311_s15, 3 }
   0x4   : > { %p162_p2 = pnand %p288_p0, %p161_p1 }
   0x5   : > { %p185_p3 = scmp.lt.s32.totalorder (!%p162_p2), %s284_s16, 1  ;;  %v195_v1 = vld [vmem:[%s365_s1] sm:$0xff] (!%p162_p2)  ;;  %vm197_vm0 = vcmask (!%p162_p2), 261120   ;;  %vm229_vm1 = vcmask (!%p162_p2), 257024  }
   0x6   : > { %165 = sbr.rel (%p162_p2) target bundleno = 337 (0x151), region = 36  ;;  %v291_v14 = vld [vmem:[%s366_s2] ss:$0 sm:$0xff] (!%p162_p2) }
   0x7   : > { %v292_v16 = vld [vmem:[%s367_s3] ss:$0 sm:$0xff] (!%p162_p2) }
   0xd   : > { %s370_s16 = smov (!%p185_p3, %s284_s16), 1 }
   0xe   : > { %s289_s17 = sshll.u32 %s370_s16, 2 }
   0xf   : > { %s188_s20 = scalar_lea.vmem %s364_s0, %s289_s17  ;;  %s192_s29 = scalar_lea.vmem %s368_s4, %s289_s17 }
  0x10   : > { %v193_v0 = vld [vmem:[%s188_s20] sm:$0xf] }
  0x11   : > { %v194_v2 = vunpack.c.l.bf16 %v193_v0 }
  0x13   : > { %v196_v3 = vadd.f32 %v195_v1, %v194_v2 }
  0x15   : > { %v198_v4 = vsel %vm197_vm0, %v196_v3, 0.0 }
  0x16   : > { %199 = vadd.xlane.f32.xlu0 %v198_v4 }
  0xa3   : > { %v200_v5 = vpop.xlane.xlu0 %199 }
  0xa4   : > { %v202_v6 = vmul.f32 0.03125, %v200_v5 }
  0xa6   : > { %v203_v7 = vsub.f32 %v196_v3, %v202_v6 }
  0xa8   : > { %v204_v8 = vmul.f32 %v203_v7, %v203_v7 }
  0xaa   : > { %v205_v9 = vsel %vm197_vm0, %v204_v8, 0.0 }
  0xab   : > { %206 = vadd.xlane.f32.xlu0 %v205_v9 }
 0x138   : > { %v207_v10 = vpop.xlane.xlu0 %206 }
 0x139   : > { %v208_v11 = vmul.f32 0.03125, %v207_v10 }
 0x13b   : > { %v209_v12 = vadd.f32 1e-06, %v208_v11 }
 0x13d   : > { %303 = vrsqrt.f32 %v209_v12 }
 0x147   : > { %v304_v13 = vpop.eup %303 }
 0x148   : > { %v211_v15 = vmul.f32 %v304_v13, %v203_v7 }
 0x14a   : > { %v219_v17 = vmul.f32 %v291_v14, %v211_v15 }
 0x14c   : > { %v227_v18 = vadd.f32 %v292_v16, %v219_v17 }
 0x14e   : > { %v228_v19 = vpack.c.bf16 %v227_v18, %v227_v18 }
 0x150   : > { %230 = vst.msk [vmem:[%s192_s29] sm:$0xf] %vm229_vm1, %v228_v19 }
 0x151 PF: > { %s14_s15 = sadd.s32 1, %s311_s15  }
 0x152   : > { %p11_p4 = scmp.ge.s32.totalorder %s14_s15, 4  }
 0x154   :  { %13 = sbr.rel (!%p11_p4) target bundleno = 1 (0x1), region = 66 }

// kernel: transformer_fwd.34
= control target key start
LH: loop header
LB: loop body
LE: loop exit
PB: predicated region body
PF: predicated region fallthrough
CT: control target
= control target key end

     0   :  { %vm28_vm0 = vcmask 261120   ;;  %v220_v0 = vmov 0.0   ;;  %vm221_vm1 = vmmov 0   ;;  %vm178_vm2 = vcmask 257024   ;;  %s293_s1 = inlined_call_operand.vmem [shape: bf16[32,32], index: 1, kind: input, shape index: {}]   ;;  %s294_s0 = inlined_call_operand.vmem [shape: bf16[16,32], index: 0, kind: input, shape index: {}]   ;;  %s295_s3 = inlined_call_operand.vmem [shape: bf16[16,32], index: 3, kind: input, shape index: {}]   ;;  %s296_s2 = inlined_call_operand.vmem [shape: f32[1,32], index: 2, kind: input, shape index: {}]   ;;  %s297_s4 = inlined_call_operand.vmem [shape: f32[1,32], index: 4, kind: input, shape index: {}]   ;;  %s298_s5 = inlined_call_operand.vmem [shape: f32[1,32], index: 5, kind: input, shape index: {}]   ;;  %s299_s6 = inlined_call_operand.vmem [shape: bf16[16,32], index: 6, kind: output, shape index: {}]  }
   0x1   :  { %203 = vmatprep.subr.bf16.mxu0 %v220_v0  ;;  %v213_v1 = vld [vmem:[%s293_s1] sm:$0xff]   ;;  %207 = vmatprep.mubr.msk.bf16.mxu0 %vm221_vm1, %v220_v0  ;;  %29 = vst.msk [vmem:[#allocation2] sm:$0xff] %vm28_vm0, %v220_v0  ;;  %30 = vst.msk [vmem:[#allocation2 + $0x8] sm:$0xff] %vm28_vm0, %v220_v0  ;;  %v214_v2 = vld [vmem:[%s293_s1 + $0x8] sm:$0xff]  }
   0x2   :  { %204 = vmatpush3.bf16.msra.mxu0 %v213_v1  ;;  %v215_v3 = vld [vmem:[%s294_s0] sm:$0xff]  }
   0x3   :  { %205 = vmatprep.subr.bf16.mxu0 %v220_v0  ;;  %v197_v12 = vld [vmem:[%s295_s3] sm:$0xff]  }
   0x4   :  { %v189_v13 = vld [vmem:[%s296_s2] ss:$0 sm:$0xff]  ;;  %v198_v14 = vunpack.c.l.bf16 %v197_v12  ;;  %v199_v17 = vunpack.c.h.bf16 %v197_v12 }
   0x5   :  { %v190_v41 = vld [vmem:[%s297_s4] ss:$0 sm:$0xff] }
   0x6   :  { %206 = vmatpush3.bf16.msra.mxu0 %v214_v2  ;;  %v191_v43 = vld [vmem:[%s298_s5] ss:$0 sm:$0xff] }
   0x8   :  { %v31_v4 = vld [vmem:[#allocation2] sm:$0xff]  ;;  %v32_v6 = vld [vmem:[#allocation2 + $0x8] sm:$0xff] }
   0x9   :  { %208 = vmatmul.mubr.msk.bf16.vlgmr.msra.gmra.mrb[0].mxu0 %vm28_vm0, %v215_v3 }
  0xdc   :  { %v94_v5 = vpop.f32.mrb[0].mxu0 }
  0xdd   :  { %v101_v7 = vadd.f32 %v94_v5, %v31_v4  ;;  %v209_v8 = vpop.f32.mrb[1].mxu0 }
  0xde   :  { %v97_v9 = vpop.f32.mrb[2].mxu0 }
  0xdf   :  { %103 = vst.msk [vmem:[#allocation2] sm:$0xff] %vm28_vm0, %v101_v7  ;;  %v102_v10 = vadd.f32 %v97_v9, %v32_v6  ;;  %v210_v11 = vpop.f32.mrb[3].mxu0 }
  0xe1   :  { %104 = vst.msk [vmem:[#allocation2 + $0x8] sm:$0xff] %vm28_vm0, %v102_v10 }
  0xe6   :  { %v108_v15 = vld [vmem:[#allocation2] sm:$0xff] }
  0xe7   :  { %v117_v16 = vadd.f32 %v189_v13, %v108_v15 }
  0xe8   :  { %v109_v18 = vld [vmem:[#allocation2 + $0x8] sm:$0xff] }
  0xe9   :  { %v123_v19 = vadd.f32 %v198_v14, %v117_v16  ;;  %v118_v20 = vadd.f32 %v189_v13, %v109_v18 }
  0xeb   :  { %v125_v21 = vsel %vm28_vm0, %v123_v19, 0.0  ;;  %v124_v22 = vadd.f32 %v199_v17, %v118_v20 }
  0xec   :  { %126 = vadd.xlane.f32.xlu0 %v125_v21 }
  0xed   :  { %v128_v23 = vsel %vm28_vm0, %v124_v22, 0.0 }
  0xf0   :  { %129 = vadd.xlane.f32.xlu0 %v128_v23 }
 0x179   :  { %v127_v24 = vpop.xlane.xlu0 %126 }
 0x17a   :  { %v132_v25 = vmul.f32 0.03125, %v127_v24 }
 0x17c   :  { %v134_v26 = vsub.f32 %v123_v19, %v132_v25 }
 0x17d   :  { %v130_v27 = vpop.xlane.xlu0 %129 }
 0x17e   :  { %v133_v28 = vmul.f32 0.03125, %v130_v27  ;;  %v136_v29 = vmul.f32 %v134_v26, %v134_v26 }
 0x180   :  { %v135_v30 = vsub.f32 %v124_v22, %v133_v28  ;;  %v138_v31 = vsel %vm28_vm0, %v136_v29, 0.0 }
 0x181   :  { %139 = vadd.xlane.f32.xlu1 %v138_v31 }
 0x182   :  { %v137_v32 = vmul.f32 %v135_v30, %v135_v30 }
 0x184   :  { %v141_v33 = vsel %vm28_vm0, %v137_v32, 0.0 }
 0x185   :  { %142 = vadd.xlane.f32.xlu1 %v141_v33 }
 0x20e   :  { %v140_v34 = vpop.xlane.xlu1 %139 }
 0x20f   :  { %v144_v35 = vmul.f32 0.03125, %v140_v34 }
 0x211   :  { %v146_v36 = vadd.f32 1e-06, %v144_v35 }
 0x212   :  { %v143_v37 = vpop.xlane.xlu1 %142 }
 0x213   :  { %216 = vrsqrt.f32 %v146_v36  ;;  %v145_v38 = vmul.f32 0.03125, %v143_v37 }
 0x215   :  { %v147_v39 = vadd.f32 1e-06, %v145_v38 }
 0x217   :  { %218 = vrsqrt.f32 %v147_v39 }
 0x21d   :  { %v217_v40 = vpop.eup %216 }
 0x21e   :  { %v150_v42 = vmul.f32 %v217_v40, %v134_v26 }
 0x220   :  { %v159_v44 = vmul.f32 %v190_v41, %v150_v42 }
 0x221   :  { %v219_v45 = vpop.eup %218 }
 0x222   :  { %v168_v46 = vadd.f32 %v191_v43, %v159_v44  ;;  %v151_v47 = vmul.f32 %v219_v45, %v135_v30 }
 0x224   :  { %v194_v48 = vpack.c.bf16 %v168_v46, %v168_v46  ;;  %v160_v49 = vmul.f32 %v190_v41, %v151_v47 }
 0x226   :  { %179 = vst.msk [vmem:[%s299_s6] sm:$0xf] %vm178_vm2, %v194_v48  ;;  %v169_v50 = vadd.f32 %v191_v43, %v160_v49 }
 0x228   :  { %v195_v51 = vpack.c.bf16 %v169_v50, %v169_v50 }
 0x22a   :  { %180 = vst.msk [vmem:[%s299_s6 + $0x4] sm:$0xf] %vm178_vm2, %v195_v51 }

// kernel: transformer_fwd.35
= control target key start
LH: loop header
LB: loop body
LE: loop exit
PB: predicated region body
PF: predicated region fallthrough
CT: control target
= control target key end

     0   :  { %vm19_vm0 = vcmask 523264   ;;  %v153_v0 = vmov 0.0   ;;  %vm154_vm1 = vmmov 0   ;;  %vm47_vm2 = vcmask 261120   ;;  %s197_s1 = inlined_call_operand.vmem [shape: bf16[32,64], index: 1, kind: input, shape index: {}]   ;;  %s198_s0 = inlined_call_operand.vmem [shape: bf16[16,32], index: 0, kind: input, shape index: {}]   ;;  %s199_s2 = inlined_call_operand.vmem [shape: f32[1,64], index: 2, kind: input, shape index: {}]   ;;  %s200_s3 = inlined_call_operand.vmem [shape: bf16[16,64], index: 3, kind: output, shape index: {}]  }
   0x1   :  { %140 = vmatprep.subr.bf16.mxu0 %v153_v0  ;;  %v150_v1 = vld [vmem:[%s197_s1] sm:$0xff]   ;;  %144 = vmatprep.mubr.msk.bf16.mxu0 %vm154_vm1, %v153_v0  ;;  %20 = vst.msk [vmem:[#allocation2] sm:$0xff] %vm19_vm0, %v153_v0  ;;  %21 = vst.msk [vmem:[#allocation2 + $0x8] sm:$0xff] %vm19_vm0, %v153_v0  ;;  %v151_v2 = vld [vmem:[%s197_s1 + $0x8] sm:$0xff]   ;;  %vm121_vm3 = vcmask 519168  }
   0x2   :  { %141 = vmatpush3.bf16.msra.mxu0 %v150_v1  ;;  %v152_v3 = vld [vmem:[%s198_s0] sm:$0xff]  }
   0x3   :  { %142 = vmatprep.subr.bf16.mxu0 %v153_v0  ;;  %v132_v12 = vld [vmem:[%s199_s2] ss:$0 sm:$0xff] }
   0x6   :  { %143 = vmatpush3.bf16.msra.mxu0 %v151_v2 }
   0x8   :  { %v22_v4 = vld [vmem:[#allocation2] sm:$0xff]  ;;  %v23_v6 = vld [vmem:[#allocation2 + $0x8] sm:$0xff] }
   0x9   :  { %145 = vmatmul.mubr.msk.bf16.vlgmr.msra.gmra.mrb[0].mxu0 %vm47_vm2, %v152_v3 }
  0xdc   :  { %v85_v5 = vpop.f32.mrb[0].mxu0 }
  0xdd   :  { %v92_v7 = vadd.f32 %v85_v5, %v22_v4  ;;  %v146_v8 = vpop.f32.mrb[1].mxu0 }
  0xde   :  { %v88_v9 = vpop.f32.mrb[2].mxu0 }
  0xdf   :  { %95 = vst.msk [vmem:[#allocation2] sm:$0xff] %vm19_vm0, %v92_v7  ;;  %v93_v10 = vadd.f32 %v88_v9, %v23_v6  ;;  %v147_v11 = vpop.f32.mrb[3].mxu0 }
  0xe1   :  { %96 = vst.msk [vmem:[#allocation2 + $0x8] sm:$0xff] %vm19_vm0, %v93_v10 }
  0xe6   :  { %v100_v13 = vld [vmem:[#allocation2] sm:$0xff] }
  0xe7   :  { %v109_v14 = vadd.f32 %v132_v12, %v100_v13 }
  0xe8   :  { %v101_v15 = vld [vmem:[#allocation2 + $0x8] sm:$0xff] }
  0xe9   :  { %v111_v16 = vmax.f32 %v109_v14, 0.0  ;;  %v110_v17 = vadd.f32 %v132_v12, %v101_v15 }
  0xeb   :  { %v135_v18 = vpack.c.bf16 %v111_v16, %v111_v16  ;;  %v112_v19 = vmax.f32 %v110_v17, 0.0 }
  0xed   :  { %122 = vst.msk [vmem:[%s200_s3] sm:$0xf] %vm121_vm3, %v135_v18  ;;  %v136_v20 = vpack.c.bf16 %v112_v19, %v112_v19 }
  0xef   :  { %123 = vst.msk [vmem:[%s200_s3 + $0x4] sm:$0xf] %vm121_vm3, %v136_v20 }

// kernel: transformer_fwd.36
= control target key start
LH: loop header
LB: loop body
LE: loop exit
PB: predicated region body
PF: predicated region fallthrough
CT: control target
= control target key end

     0   :  { %vm28_vm0 = vcmask 261120   ;;  %v247_v0 = vmov 0.0   ;;  %vm248_vm1 = vmmov 0   ;;  %vm72_vm2 = vcmask 523264   ;;  %s325_s1 = inlined_call_operand.vmem [shape: bf16[64,32], index: 1, kind: input, shape index: {}]   ;;  %s326_s0 = inlined_call_operand.vmem [shape: bf16[16,64], index: 0, kind: input, shape index: {}]   ;;  %s327_s3 = inlined_call_operand.vmem [shape: bf16[16,32], index: 3, kind: input, shape index: {}]   ;;  %s328_s2 = inlined_call_operand.vmem [shape: f32[1,32], index: 2, kind: input, shape index: {}]   ;;  %s329_s4 = inlined_call_operand.vmem [shape: f32[1,32], index: 4, kind: input, shape index: {}]   ;;  %s330_s5 = inlined_call_operand.vmem [shape: f32[1,32], index: 5, kind: input, shape index: {}]   ;;  %s331_s6 = inlined_call_operand.vmem [shape: bf16[16,32], index: 6, kind: output, shape index: {}]  }
   0x1   :  { %224 = vmatprep.subr.bf16.mxu0 %v247_v0  ;;  %v238_v1 = vld [vmem:[%s325_s1] sm:$0xff]   ;;  %232 = vmatprep.mubr.msk.bf16.mxu0 %vm248_vm1, %v247_v0  ;;  %29 = vst.msk [vmem:[#allocation2] sm:$0xff] %vm28_vm0, %v247_v0  ;;  %30 = vst.msk [vmem:[#allocation2 + $0x8] sm:$0xff] %vm28_vm0, %v247_v0  ;;  %v239_v2 = vld [vmem:[%s325_s1 + $0x8] sm:$0xff]   ;;  %vm195_vm3 = vcmask 257024  }
   0x2   :  { %225 = vmatpush3.bf16.msra.mxu0 %v238_v1  ;;  %v240_v3 = vld [vmem:[%s325_s1 + $0x10] sm:$0xff]   ;;  %v241_v4 = vld [vmem:[%s325_s1 + $0x18] sm:$0xff]   ;;  %v242_v5 = vld [vmem:[%s326_s0] sm:$0xff]  }
   0x3   :  { %226 = vmatprep.subr.bf16.mxu0 %v247_v0  ;;  %v216_v14 = vld [vmem:[%s327_s3] sm:$0xff]  }
   0x4   :  { %v208_v15 = vld [vmem:[%s328_s2] ss:$0 sm:$0xff]  ;;  %v217_v16 = vunpack.c.l.bf16 %v216_v14  ;;  %v218_v19 = vunpack.c.h.bf16 %v216_v14 }
   0x5   :  { %v209_v43 = vld [vmem:[%s329_s4] ss:$0 sm:$0xff] }
   0x6   :  { %227 = vmatpush3.bf16.msra.mxu0 %v239_v2  ;;  %v210_v45 = vld [vmem:[%s330_s5] ss:$0 sm:$0xff] }
   0x7   :  { %228 = vmatprep.subr.bf16.mxu0 %v247_v0 }
   0x8   :  { %v31_v6 = vld [vmem:[#allocation2] sm:$0xff]  ;;  %v32_v8 = vld [vmem:[#allocation2 + $0x8] sm:$0xff] }
   0xa   :  { %229 = vmatpush3.bf16.msra.mxu0 %v240_v3 }
   0xb   :  { %230 = vmatprep.subr.bf16.mxu0 %v247_v0 }
   0xe   :  { %231 = vmatpush3.bf16.msra.mxu0 %v241_v4 }
  0x11   :  { %233 = vmatmul.mubr.msk.bf16.vlgmr.msra.gmra.mrb[0].mxu0 %vm72_vm2, %v242_v5 }
  0xe4   :  { %v110_v7 = vpop.f32.mrb[0].mxu0 }
  0xe5   :  { %v117_v9 = vadd.f32 %v110_v7, %v31_v6  ;;  %v234_v10 = vpop.f32.mrb[1].mxu0 }
  0xe6   :  { %v113_v11 = vpop.f32.mrb[2].mxu0 }
  0xe7   :  { %120 = vst.msk [vmem:[#allocation2] sm:$0xff] %vm28_vm0, %v117_v9  ;;  %v118_v12 = vadd.f32 %v113_v11, %v32_v8  ;;  %v235_v13 = vpop.f32.mrb[3].mxu0 }
  0xe9   :  { %121 = vst.msk [vmem:[#allocation2 + $0x8] sm:$0xff] %vm28_vm0, %v118_v12 }
  0xee   :  { %v125_v17 = vld [vmem:[#allocation2] sm:$0xff] }
  0xef   :  { %v134_v18 = vadd.f32 %v208_v15, %v125_v17 }
  0xf0   :  { %v126_v20 = vld [vmem:[#allocation2 + $0x8] sm:$0xff] }
  0xf1   :  { %v140_v21 = vadd.f32 %v217_v16, %v134_v18  ;;  %v135_v22 = vadd.f32 %v208_v15, %v126_v20 }
  0xf3   :  { %v142_v23 = vsel %vm28_vm0, %v140_v21, 0.0  ;;  %v141_v24 = vadd.f32 %v218_v19, %v135_v22 }
  0xf4   :  { %143 = vadd.xlane.f32.xlu0 %v142_v23 }
  0xf5   :  { %v145_v25 = vsel %vm28_vm0, %v141_v24, 0.0 }
  0xf8   :  { %146 = vadd.xlane.f32.xlu0 %v145_v25 }
 0x181   :  { %v144_v26 = vpop.xlane.xlu0 %143 }
 0x182   :  { %v149_v27 = vmul.f32 0.03125, %v144_v26 }
 0x184   :  { %v151_v28 = vsub.f32 %v140_v21, %v149_v27 }
 0x185   :  { %v147_v29 = vpop.xlane.xlu0 %146 }
 0x186   :  { %v150_v30 = vmul.f32 0.03125, %v147_v29  ;;  %v153_v31 = vmul.f32 %v151_v28, %v151_v28 }
 0x188   :  { %v152_v32 = vsub.f32 %v141_v24, %v150_v30  ;;  %v155_v33 = vsel %vm28_vm0, %v153_v31, 0.0 }
 0x189   :  { %156 = vadd.xlane.f32.xlu1 %v155_v33 }
 0x18a   :  { %v154_v34 = vmul.f32 %v152_v32, %v152_v32 }
 0x18c   :  { %v158_v35 = vsel %vm28_vm0, %v154_v34, 0.0 }
 0x18d   :  { %159 = vadd.xlane.f32.xlu1 %v158_v35 }
 0x216   :  { %v157_v36 = vpop.xlane.xlu1 %156 }
 0x217   :  { %v161_v37 = vmul.f32 0.03125, %v157_v36 }
 0x219   :  { %v163_v38 = vadd.f32 1e-06, %v161_v37 }
 0x21a   :  { %v160_v39 = vpop.xlane.xlu1 %159 }
 0x21b   :  { %243 = vrsqrt.f32 %v163_v38  ;;  %v162_v40 = vmul.f32 0.03125, %v160_v39 }
 0x21d   :  { %v164_v41 = vadd.f32 1e-06, %v162_v40 }
 0x21f   :  { %245 = vrsqrt.f32 %v164_v41 }
 0x225   :  { %v244_v42 = vpop.eup %243 }
 0x226   :  { %v167_v44 = vmul.f32 %v244_v42, %v151_v28 }
 0x228   :  { %v176_v46 = vmul.f32 %v209_v43, %v167_v44 }
 0x229   :  { %v246_v47 = vpop.eup %245 }
 0x22a   :  { %v185_v48 = vadd.f32 %v210_v45, %v176_v46  ;;  %v168_v49 = vmul.f32 %v246_v47, %v152_v32 }
 0x22c   :  { %v213_v50 = vpack.c.bf16 %v185_v48, %v185_v48  ;;  %v177_v51 = vmul.f32 %v209_v43, %v168_v49 }
 0x22e   :  { %196 = vst.msk [vmem:[%s331_s6] sm:$0xf] %vm195_vm3, %v213_v50  ;;  %v186_v52 = vadd.f32 %v210_v45, %v177_v51 }
 0x230   :  { %v214_v53 = vpack.c.bf16 %v186_v52, %v186_v52 }
 0x232   :  { %197 = vst.msk [vmem:[%s331_s6 + $0x4] sm:$0xf] %vm195_vm3, %v214_v53 }

// kernel: transformer_fwd.47
= control target key start
LH: loop header
LB: loop body
LE: loop exit
PB: predicated region body
PF: predicated region fallthrough
CT: control target
= control target key end

     0   :  { %vm19_vm0 = vcmask 523264   ;;  %v151_v0 = vmov 0.0   ;;  %vm152_vm1 = vmmov 0   ;;  %vm47_vm2 = vcmask 261120   ;;  %s195_s1 = inlined_call_operand.vmem [shape: bf16[32,64], index: 1, kind: input, shape index: {}]   ;;  %s196_s0 = inlined_call_operand.vmem [shape: bf16[16,32], index: 0, kind: input, shape index: {}]   ;;  %s197_s2 = inlined_call_operand.vmem [shape: f32[1,64], index: 2, kind: input, shape index: {}]   ;;  %s198_s3 = inlined_call_operand.vmem [shape: bf16[16,64], index: 3, kind: output, shape index: {}]  }
   0x1   :  { %138 = vmatprep.subr.bf16.mxu0 %v151_v0  ;;  %v148_v1 = vld [vmem:[%s195_s1] sm:$0xff]   ;;  %142 = vmatprep.mubr.msk.bf16.mxu0 %vm152_vm1, %v151_v0  ;;  %20 = vst.msk [vmem:[#allocation2] sm:$0xff] %vm19_vm0, %v151_v0  ;;  %21 = vst.msk [vmem:[#allocation2 + $0x8] sm:$0xff] %vm19_vm0, %v151_v0  ;;  %v149_v2 = vld [vmem:[%s195_s1 + $0x8] sm:$0xff]   ;;  %vm119_vm3 = vcmask 519168  }
   0x2   :  { %139 = vmatpush3.bf16.msra.mxu0 %v148_v1  ;;  %v150_v3 = vld [vmem:[%s196_s0] sm:$0xff]  }
   0x3   :  { %140 = vmatprep.subr.bf16.mxu0 %v151_v0  ;;  %v130_v12 = vld [vmem:[%s197_s2] ss:$0 sm:$0xff] }
   0x6   :  { %141 = vmatpush3.bf16.msra.mxu0 %v149_v2 }
   0x8   :  { %v22_v4 = vld [vmem:[#allocation2] sm:$0xff]  ;;  %v23_v6 = vld [vmem:[#allocation2 + $0x8] sm:$0xff] }
   0x9   :  { %143 = vmatmul.mubr.msk.bf16.vlgmr.msra.gmra.mrb[0].mxu0 %vm47_vm2, %v150_v3 }
  0xdc   :  { %v85_v5 = vpop.f32.mrb[0].mxu0 }
  0xdd   :  { %v92_v7 = vadd.f32 %v85_v5, %v22_v4  ;;  %v144_v8 = vpop.f32.mrb[1].mxu0 }
  0xde   :  { %v88_v9 = vpop.f32.mrb[2].mxu0 }
  0xdf   :  { %95 = vst.msk [vmem:[#allocation2] sm:$0xff] %vm19_vm0, %v92_v7  ;;  %v93_v10 = vadd.f32 %v88_v9, %v23_v6  ;;  %v145_v11 = vpop.f32.mrb[3].mxu0 }
  0xe1   :  { %96 = vst.msk [vmem:[#allocation2 + $0x8] sm:$0xff] %vm19_vm0, %v93_v10 }
  0xe6   :  { %v100_v13 = vld [vmem:[#allocation2] sm:$0xff] }
  0xe7   :  { %v109_v14 = vadd.f32 %v130_v12, %v100_v13 }
  0xe8   :  { %v101_v15 = vld [vmem:[#allocation2 + $0x8] sm:$0xff] }
  0xe9   :  { %v133_v16 = vpack.c.bf16 %v109_v14, %v109_v14  ;;  %v110_v17 = vadd.f32 %v130_v12, %v101_v15 }
  0xeb   :  { %120 = vst.msk [vmem:[%s198_s3] sm:$0xf] %vm119_vm3, %v133_v16  ;;  %v134_v18 = vpack.c.bf16 %v110_v17, %v110_v17 }
  0xed   :  { %121 = vst.msk [vmem:[%s198_s3 + $0x4] sm:$0xf] %vm119_vm3, %v134_v18 }

// kernel: transformer_fwd.33
= control target key start
LH: loop header
LB: loop body
LE: loop exit
PB: predicated region body
PF: predicated region fallthrough
CT: control target
= control target key end

     0   :  { %s1310_s15 = smov 0   ;;  %s1312_s16 = smov 0   ;;  %s1496_s0 = inlined_call_operand.vmem [shape: f32[2,1,8], index: 0, kind: input, shape index: {}]   ;;  %s1497_s1 = inlined_call_operand.vmem [shape: bf16[2,8,32], index: 1, kind: input, shape index: {}]   ;;  %s1498_s2 = inlined_call_operand.vmem [shape: bf16[2,8,32], index: 2, kind: input, shape index: {}]   ;;  %s1499_s3 = inlined_call_operand.vmem [shape: bf16[2,8,32], index: 3, kind: input, shape index: {}]   ;;  %s1500_s4 = inlined_call_operand.vmem [shape: bf16[2,8,32], index: 4, kind: output, shape index: {}]  }
   0x1   :  { %s1314_s17 = smov 0  }
   0x2 LB: > { %s33_s18 = sadd.s32 1, %s1269_s16  ;;  %p1093_p0 = scmp.ge.s32.totalorder %s1273_s17, 1  ;;  %s1273_s17 = sphi %s1314_s17, %s14_s17   ;;  %s1269_s16 = sphi %s1312_s16, %s1502_s16   ;;  %s1265_s15 = sphi %s1310_s15, %s1501_s15  }
   0x3   : > { %p35_p1 = scmp.ge.s32.totalorder %s33_s18, 2  ;;  %p228_p2 = scmp.lt.s32.totalorder %s1273_s17, 3 }
   0x5   : > { %s1504_s18 = smov (%p35_p1, %s33_s18), 0  ;;  %p229_p3 = pnand %p1093_p0, %p228_p2 }
   0x6   : > { %p278_p4 = scmp.lt.s32.totalorder (!%p229_p3), %s1265_s15, 1  ;;  %vm326_vm0 = vcmask (!%p229_p3), 64512   ;;  %v1275_v0 = vmov (!%p229_p3), 0.0   ;;  %vm1276_vm1 = vmmov (!%p229_p3), 0   ;;  %vm317_vm2 = vcmask (!%p229_p3), 7168   ;;  %s1279_s29 = smov (!%p229_p3), 120  }
   0x7   : > { %232 = sbr.rel (%p229_p3) target bundleno = 1469 (0x5bd), region = 36  ;;  %1134 = vmatprep.subr.bf16.mxu0 (!%p229_p3), %v1275_v0  ;;  %327 = vst.msk [vmem:[#allocation4] sm:$0xff] (!%p229_p3), %vm326_vm0, %v1275_v0  ;;  %328 = vst.msk [vmem:[#allocation4 + $0x8] sm:$0xff] (!%p229_p3), %vm326_vm0, %v1275_v0  ;;  %1136 = vmatprep.mubr.msk.bf16.mxu0 (!%p229_p3), %vm1276_vm1, %v1275_v0  ;;  %v1277_v4 = vmov (!%p229_p3), -inf   ;;  %v1278_v12 = vmov (!%p229_p3), 0   ;;  %s1280_s30 = smov (!%p229_p3), 112  }
   0x8   : > { %329 = vst.msk [vmem:[#allocation4 + $0x10] sm:$0xff] (!%p229_p3), %vm326_vm0, %v1275_v0  ;;  %330 = vst.msk [vmem:[#allocation4 + $0x18] sm:$0xff] (!%p229_p3), %vm326_vm0, %v1275_v0  ;;  %1140 = vmatprep.subr.bf16.mxu1 (!%p229_p3), %v1275_v0  ;;  %1142 = vmatprep.mubr.msk.bf16.mxu1 (!%p229_p3), %vm1276_vm1, %v1275_v0  ;;  %s1281_s5 = smov (!%p229_p3), 104   ;;  %vm416_vm3 = vcmask (!%p229_p3), 1043456   ;;  %s1282_s9 = smov (!%p229_p3), 8   ;;  %vm963_vm4 = vcmask (!%p229_p3), 130048  }
   0x9   : > { %318 = vst.msk [vmem:[#allocation2] sm:$0xff] (!%p229_p3), %vm317_vm2, %v1277_v4  ;;  %319 = vst.msk [vmem:[#allocation2 + $0x8] sm:$0xff] (!%p229_p3), %vm317_vm2, %v1277_v4  ;;  %1216 = vset.pattern.permute.xlu0 (!%p229_p3), %v1278_v12  ;;  %1217 = vset.pattern.permute.xlu1 (!%p229_p3), %v1278_v12  ;;  %s1283_s10 = smov (!%p229_p3), 16   ;;  %s1284_s11 = smov (!%p229_p3), 24   ;;  %vm965_vm5 = vcmask (!%p229_p3), 195584   ;;  %vm968_vm6 = vcmask (!%p229_p3), 257024  }
   0xa   : > { %320 = vst.msk [vmem:[#allocation2 + $0x10] sm:$0xff] (!%p229_p3), %vm317_vm2, %v1277_v4  ;;  %321 = vst.msk [vmem:[#allocation2 + $0x18] sm:$0xff] (!%p229_p3), %vm317_vm2, %v1277_v4 }
   0xb   : > { %322 = vst.msk [vmem:[#allocation3] sm:$0xff] (!%p229_p3), %vm317_vm2, %v1275_v0  ;;  %323 = vst.msk [vmem:[#allocation3 + $0x8] sm:$0xff] (!%p229_p3), %vm317_vm2, %v1275_v0 }
   0xc   : > { %324 = vst.msk [vmem:[#allocation3 + $0x10] sm:$0xff] (!%p229_p3), %vm317_vm2, %v1275_v0  ;;  %325 = vst.msk [vmem:[#allocation3 + $0x18] sm:$0xff] (!%p229_p3), %vm317_vm2, %v1275_v0 }
   0xe   : > { %s1506_s15 = smov (!%p278_p4, %s1265_s15), 1 }
   0xf   : > { %s1342_s19 = sshll.u32 %s1506_s15, 2  ;;  %s283_s28 = scalar_lea.vmem %s1496_s0, %s1506_s15 }
  0x10   : > { %s1348_s22 = scalar_lea.vmem %s1498_s2, %s1342_s19  ;;  %s1355_s25 = scalar_lea.vmem %s1497_s1, %s1342_s19  ;;  %v1378_v5 = vld [vmem:[%s283_s28] ss:$0 sm:$0xff]  ;;  %v530_v61 = vld [vmem:[#allocation2 + $0x8] sm:$0xff] }
  0x11   : > { %v333_v1 = vld [vmem:[%s1348_s22] sm:$0xf]  ;;  %s1408_s8 = scalar_lea.vmem %s1499_s3, %s1342_s19  ;;  %s311_s14 = scalar_lea.vmem %s1500_s4, %s1342_s19 }
  0x12   : > { %v346_v2 = vsel %vm326_vm0, %v333_v1, 0  ;;  %v332_v3 = vld [vmem:[%s1355_s25] sm:$0xf] }
  0x13   : > { %1135 = vmatpush3.bf16.xpose.msra.mxu0 %v346_v2  ;;  %v1218_v13 = vld [vmem:[%s1348_s22] ss:$0 sps:$4 sm:$0xff]   ;;  %v677_v2 = vld [vmem:[#allocation2 + $0x10] sm:$0xff] }
  0x14   : > { %1152 = vmatprep.subr.bf16.mxu0 %v1275_v0  ;;  %481 = vrot.lane.b32.xlu1 %v1218_v13, %s1279_s29  ;;  %v1219_v14 = vld [vmem:[%s1355_s25] ss:$0 sps:$4 sm:$0xff]  }
  0x15   : > { %v1220_v15 = vld [vmem:[%s1348_s22] ss:$0 sps:$4 sm:$0xff]  }
  0x16   : > { %v1221_v16 = vld [vmem:[%s1355_s25] ss:$0 sps:$4 sm:$0xff]  }
  0x17   : > { %v1222_v17 = vld [vmem:[%s1348_s22] ss:$0 sps:$4 sm:$0xff]  }
  0x18   : > { %476 = vrot.lane.b32.xlu1 %v1219_v14, %s1279_s29  ;;  %v1223_v18 = vld [vmem:[%s1355_s25] ss:$0 sps:$4 sm:$0xff]  }
  0x19   : > { %v1394_v19 = vld [vmem:[#allocation2] sm:$0xff] }
  0x1a   : > { %1137 = vmatmul.mubr.msk.bf16.vlgmr.msra.gmra.mrb[0].mxu0 %vm326_vm0, %v332_v3  ;;  %v334_v23 = vld [vmem:[%s1408_s8] sm:$0xf] }
  0x1b   : > { %1154 = vmatprep.mubr.msk.bf16.mxu0 %vm1276_vm1, %v1275_v0  ;;  %v418_v24 = vsel %vm416_vm3, %v334_v23, 0  ;;  %v1226_v12 = vld [vmem:[%s1408_s8] ss:$0 sps:$4 sm:$0xff]  }
  0x1c   : > { %628 = vrot.lane.b32.xlu1 %v1220_v15, %s1280_s30  ;;  %1141 = vmatpush3.bf16.msra.mxu1 %v418_v24 }
  0x1d   : > { %1146 = vmatprep.subr.bf16.mxu1 %v1275_v0 }
  0x20   : > { %623 = vrot.lane.b32.xlu1 %v1221_v16, %s1280_s30 }
  0x24   : > { %775 = vrot.lane.b32.xlu1 %v1222_v17, %s1281_s5 }
  0x28   : > { %770 = vrot.lane.b32.xlu1 %v1223_v18, %s1281_s5 }
  0x86   : > { %v482_v28 = vpop.permute.xlu1 %481 }
  0x87   : > { %v487_v31 = vsel %vm326_vm0, %v482_v28, 0 }
  0x8a   : > { %v477_v29 = vpop.permute.xlu1 %476 }
  0x8e   : > { %v629_v33 = vpop.permute.xlu1 %628 }
  0x8f   : > { %v634_v35 = vsel %vm326_vm0, %v629_v33, 0 }
  0x92   : > { %v624_v34 = vpop.permute.xlu1 %623 }
  0x96   : > { %v776_v36 = vpop.permute.xlu1 %775 }
  0x97   : > { %v781_v37 = vsel %vm326_vm0, %v776_v36, 0 }
  0x9a   : > { %v771_v38 = vpop.permute.xlu1 %770 }
  0xed   : > { %v382_v6 = vpop.f32.mrb[0].mxu0 }
  0xee   : > { %v383_v7 = vadd.f32 %v1378_v5, %v382_v6  ;;  %v1138_v8 = vpop.f32.mrb[1].mxu0  ;;  %v1442_v6 = vld [vmem:[#allocation2 + $0x18] sm:$0xff] }
  0xef   : > { %v385_v9 = vpop.f32.mrb[2].mxu0 }
  0xf0   : > { %v1139_v10 = vpop.f32.mrb[3].mxu0  ;;  %v389_v11 = vsel %vm326_vm0, %v383_v7, -inf }
  0xf1   : > { %390 = vmax.xlane.f32.xlu0 %v389_v11  ;;  %v1224_v10 = vld [vmem:[%s1408_s8] ss:$0 sps:$4 sm:$0xff]  }
  0xf2   : > { %v1225_v11 = vld [vmem:[%s1408_s8] ss:$0 sps:$4 sm:$0xff]  }
 0x17e   : > { %v391_v20 = vpop.xlane.xlu0 %390 }
 0x17f   : > { %v1397_v21 = vmax.f32 %v1394_v19, %v391_v20 }
 0x181   : > { %v393_v22 = vsub.f32 %v1394_v19, %v1397_v21  ;;  %469 = vst.msk [vmem:[#allocation2] sm:$0xff] %vm317_vm2, %v1397_v21  ;;  %398 = vperm.xlu0 %1216, %v1397_v21  }
 0x200   : > { %v399_v25 = vpop.permute.xlu0 %398 }
 0x201   : > { %v401_v26 = vsub.f32 %v383_v7, %v399_v25 }
 0x203   : > { %v402_v27 = vmul.f32 1.442695, %v401_v26 }
 0x205   : > { %1227 = vpow2.f32 %v402_v27 }
 0x20f   : > { %v1413_v30 = vpop.eup %1227 }
 0x210   : > { %v412_v32 = vpack.c.bf16 %v1413_v30, %v1413_v30  ;;  %v406_v28 = vsel %vm326_vm0, %v1413_v30, 0.0 }
 0x212   : > { %1143 = vmatmul.mubr.msk.bf16.vlgmr.msra.gmra.mrb[0].mxu1 %vm326_vm0, %v412_v32 }
 0x213   : > { %1147 = vmatpush3.bf16.xpose.msra.mxu1 %v487_v31  ;;  %1148 = vmatprep.mubr.msk.bf16.mxu1 %vm1276_vm1, %v1275_v0 }
 0x214   : > { %1158 = vmatprep.subr.bf16.mxu1 %v1275_v0 }
 0x21a   : > { %1149 = vmatmul.mubr.msk.bf16.vlgmr.msra.gmra.mrb[4].mxu1 %vm326_vm0, %v477_v29 }
 0x21b   : > { %1159 = vmatpush3.bf16.xpose.msra.mxu1 %v634_v35  ;;  %1160 = vmatprep.mubr.msk.bf16.mxu1 %vm1276_vm1, %v1275_v0 }
 0x21c   : > { %1170 = vmatprep.subr.bf16.mxu1 %v1275_v0 }
 0x222   : > { %1161 = vmatmul.mubr.msk.bf16.vlgmr.msra.gmra.mrb[8].mxu1 %vm326_vm0, %v624_v34 }
 0x223   : > { %1171 = vmatpush3.bf16.xpose.msra.mxu1 %v781_v37  ;;  %1172 = vmatprep.mubr.msk.bf16.mxu1 %vm1276_vm1, %v1275_v0 }
 0x22a   : > { %1173 = vmatmul.mubr.msk.bf16.vlgmr.msra.gmra.mrb[12].mxu1 %vm326_vm0, %v771_v38 }
 0x2e5   : > { %v1432_v39 = vpop.f32.mrb[0].mxu1 }
 0x2e6   : > { %v1144_v40 = vpop.f32.mrb[1].mxu1 }
 0x2e7   : > { %v457_v41 = vpop.f32.mrb[2].mxu1 }
 0x2e8   : > { %v1145_v42 = vpop.f32.mrb[3].mxu1 }
 0x2ed   : > { %v523_v43 = vpop.f32.mrb[4].mxu1 }
 0x2ee   : > { %v524_v44 = vadd.f32 %v1378_v5, %v523_v43  ;;  %v1150_v45 = vpop.f32.mrb[5].mxu1 }
 0x2ef   : > { %v526_v46 = vpop.f32.mrb[6].mxu1  ;;  %v394_v45 = vmul.f32 1.442695, %v393_v22  ;;  %v694_v22 = vld [vmem:[#allocation3 + $0x10] sm:$0xff] }
 0x2f0   : > { %v1151_v47 = vpop.f32.mrb[7].mxu1  ;;  %v531_v48 = vsel %vm326_vm0, %v524_v44, -inf }
 0x2f1   : > { %532 = vmax.xlane.f32.xlu1 %v531_v48 }
 0x2f5   : > { %v670_v49 = vpop.f32.mrb[8].mxu1 }
 0x2f6   : > { %v671_v50 = vadd.f32 %v1378_v5, %v670_v49  ;;  %v1162_v51 = vpop.f32.mrb[9].mxu1 }
 0x2f7   : > { %v673_v52 = vpop.f32.mrb[10].mxu1 }
 0x2f8   : > { %v1163_v53 = vpop.f32.mrb[11].mxu1  ;;  %v678_v54 = vsel %vm326_vm0, %v671_v50, -inf  ;;  %v404_v52 = vld [vmem:[#allocation3] sm:$0xff] }
 0x2f9   : > { %679 = vmax.xlane.f32.xlu0 %v678_v54 }
 0x2fd   : > { %v817_v55 = vpop.f32.mrb[12].mxu1 }
 0x2fe   : > { %v818_v56 = vadd.f32 %v1378_v5, %v817_v55  ;;  %v1174_v57 = vpop.f32.mrb[13].mxu1 }
 0x2ff   : > { %v820_v58 = vpop.f32.mrb[14].mxu1 }
 0x300   : > { %v1175_v59 = vpop.f32.mrb[15].mxu1  ;;  %v825_v60 = vsel %vm326_vm0, %v818_v56, -inf }
 0x301   : > { %826 = vmax.xlane.f32.xlu1 %v825_v60  ;;  %v841_v59 = vld [vmem:[#allocation3 + $0x18] sm:$0xff] }
 0x37e   : > { %v533_v62 = vpop.xlane.xlu1 %532 }
 0x37f   : > { %v534_v63 = vmax.f32 %v530_v61, %v533_v62 }
 0x381   : > { %v535_v1 = vsub.f32 %v530_v61, %v534_v63  ;;  %616 = vst.msk [vmem:[#allocation2 + $0x8] sm:$0xff] %vm317_vm2, %v534_v63  ;;  %540 = vperm.xlu1 %1217, %v534_v63  }
 0x383   : > { %v536_v32 = vmul.f32 1.442695, %v535_v1 }
 0x386   : > { %v680_v3 = vpop.xlane.xlu0 %679 }
 0x387   : > { %v681_v4 = vmax.f32 %v677_v2, %v680_v3  ;;  %v460_v3 = vld [vmem:[#allocation4] sm:$0xff] }
 0x389   : > { %v682_v5 = vsub.f32 %v677_v2, %v681_v4  ;;  %763 = vst.msk [vmem:[#allocation2 + $0x10] sm:$0xff] %vm317_vm2, %v681_v4  ;;  %687 = vperm.xlu0 %1216, %v681_v4  }
 0x38b   : > { %v683_v30 = vmul.f32 1.442695, %v682_v5 }
 0x38e   : > { %v827_v7 = vpop.xlane.xlu1 %826 }
 0x38f   : > { %v828_v8 = vmax.f32 %v1442_v6, %v827_v7 }
 0x391   : > { %v829_v9 = vsub.f32 %v1442_v6, %v828_v8  ;;  %910 = vst.msk [vmem:[#allocation2 + $0x18] sm:$0xff] %vm317_vm2, %v828_v8  ;;  %834 = vperm.xlu1 %1217, %v828_v8  }
 0x393   : > { %v830_v47 = vmul.f32 1.442695, %v829_v9 }
 0x395   : > { %558 = vrot.lane.b32.xlu1 %v1224_v10, %s1279_s29 }
 0x399   : > { %705 = vrot.lane.b32.xlu1 %v1225_v11, %s1280_s30  ;;  %v607_v11 = vld [vmem:[#allocation4 + $0x8] sm:$0xff] }
 0x39d   : > { %852 = vrot.lane.b32.xlu1 %v1226_v12, %s1281_s5 }
 0x400   : > { %v541_v13 = vpop.permute.xlu1 %540 }
 0x401   : > { %v543_v14 = vsub.f32 %v524_v44, %v541_v13 }
 0x403   : > { %v544_v15 = vmul.f32 1.442695, %v543_v14 }
 0x405   : > { %1229 = vpow2.f32 %v544_v15 }
 0x408   : > { %v688_v16 = vpop.permute.xlu0 %687 }
 0x409   : > { %v690_v17 = vsub.f32 %v671_v50, %v688_v16  ;;  %v547_v50 = vld [vmem:[#allocation3 + $0x8] sm:$0xff] }
 0x40b   : > { %v691_v18 = vmul.f32 1.442695, %v690_v17 }
 0x40d   : > { %1231 = vpow2.f32 %v691_v18 }
 0x40f   : > { %v1230_v20 = vpop.eup %1229 }
 0x410   : > { %v835_v23 = vpop.permute.xlu1 %834  ;;  %v549_v24 = vsel %vm326_vm0, %v1230_v20, 0.0  ;;  %v554_v33 = vpack.c.bf16 %v1230_v20, %v1230_v20  ;;  %v754_v20 = vld [vmem:[#allocation4 + $0x10] sm:$0xff] }
 0x411   : > { %v837_v25 = vsub.f32 %v818_v56, %v835_v23  ;;  %550 = vadd.xlane.f32.xlu1 %v549_v24 }
 0x413   : > { %v838_v26 = vmul.f32 1.442695, %v837_v25 }
 0x414   : > { %v559_v27 = vpop.permute.xlu1 %558 }
 0x415   : > { %1233 = vpow2.f32 %v838_v26  ;;  %v564_v29 = vsel %vm416_vm3, %v559_v27, 0  ;;  %407 = vadd.xlane.f32.xlu1 %v406_v28 }
 0x416   : > { %1153 = vmatpush3.bf16.msra.mxu0 %v564_v29  ;;  %1235 = vpow2.f32 %v536_v32  ;;  %v901_v29 = vld [vmem:[#allocation4 + $0x18] sm:$0xff] }
 0x417   : > { %v1232_v31 = vpop.eup %1231  ;;  %1164 = vmatprep.subr.bf16.mxu0 %v1275_v0  ;;  %1237 = vpow2.f32 %v683_v30 }
 0x418   : > { %v696_v34 = vsel %vm326_vm0, %v1232_v31, 0.0  ;;  %v706_v35 = vpop.permute.xlu1 %705  ;;  %v701_v40 = vpack.c.bf16 %v1232_v31, %v1232_v31  ;;  %1239 = vpow2.f32 %v394_v45 }
 0x419   : > { %697 = vadd.xlane.f32.xlu0 %v696_v34  ;;  %1155 = vmatmul.mubr.msk.bf16.vlgmr.msra.gmra.mrb[4].mxu0 %vm326_vm0, %v554_v33  ;;  %v711_v36 = vsel %vm416_vm3, %v706_v35, 0  ;;  %1241 = vpow2.f32 %v830_v47 }
 0x41a   : > { %1165 = vmatpush3.bf16.msra.mxu0 %v711_v36  ;;  %1166 = vmatprep.mubr.msk.bf16.mxu0 %vm1276_vm1, %v1275_v0 }
 0x41b   : > { %1176 = vmatprep.subr.bf16.mxu0 %v1275_v0 }
 0x41c   : > { %v853_v37 = vpop.permute.xlu1 %852 }
 0x41d   : > { %v858_v41 = vsel %vm416_vm3, %v853_v37, 0 }
 0x41f   : > { %v1234_v38 = vpop.eup %1233 }
 0x420   : > { %v843_v42 = vsel %vm326_vm0, %v1234_v38, 0.0  ;;  %v1236_v43 = vpop.eup %1235  ;;  %v848_v44 = vpack.c.bf16 %v1234_v38, %v1234_v38 }
 0x421   : > { %844 = vadd.xlane.f32.xlu0 %v843_v42  ;;  %1167 = vmatmul.mubr.msk.bf16.vlgmr.msra.gmra.mrb[8].mxu0 %vm326_vm0, %v701_v40  ;;  %v1238_v46 = vpop.eup %1237 }
 0x422   : > { %1177 = vmatpush3.bf16.msra.mxu0 %v858_v41  ;;  %1178 = vmatprep.mubr.msk.bf16.mxu0 %vm1276_vm1, %v1275_v0  ;;  %v1240_v48 = vpop.eup %1239  ;;  %v548_v0 = vmul.f32 %v1236_v43, %v547_v50  ;;  %v695_v55 = vmul.f32 %v1238_v46, %v694_v22 }
 0x423   : > { %v1242_v49 = vpop.eup %1241  ;;  %v405_v19 = vmul.f32 %v1240_v48, %v404_v52 }
 0x424   : > { %v842_v61 = vmul.f32 %v1242_v49, %v841_v59 }
 0x426   : > { %610 = vperm.xlu1 %1217, %v1236_v43  }
 0x429   : > { %1179 = vmatmul.mubr.msk.bf16.vlgmr.msra.gmra.mrb[12].mxu0 %vm326_vm0, %v848_v44 }
 0x42a   : > { %757 = vperm.xlu1 %1217, %v1238_v46  }
 0x437   : > { %463 = vperm.xlu0 %1216, %v1240_v48  }
 0x43b   : > { %904 = vperm.xlu0 %1216, %v1242_v49  }
 0x49e   : > { %v551_v51 = vpop.xlane.xlu1 %550 }
 0x49f   : > { %v552_v53 = vadd.f32 %v551_v51, %v548_v0 }
 0x4a1   : > { %553 = vst.msk [vmem:[#allocation3 + $0x8] sm:$0xff] %vm317_vm2, %v552_v53 }
 0x4a2   : > { %v408_v21 = vpop.xlane.xlu1 %407 }
 0x4a3   : > { %v409_v54 = vadd.f32 %v408_v21, %v405_v19 }
 0x4a5   : > { %411 = vst.msk [vmem:[#allocation3] sm:$0xff] %vm317_vm2, %v409_v54 }
 0x4a6   : > { %v698_v56 = vpop.xlane.xlu0 %697  ;;  %v611_v12 = vpop.permute.xlu1 %610 }
 0x4a7   : > { %v699_v57 = vadd.f32 %v698_v56, %v695_v55  ;;  %v613_v13 = vmul.f32 %v611_v12, %v607_v11 }
 0x4a8   : > { %v923_v58 = vld [vmem:[#allocation3 + $0x8] sm:$0xff] }
 0x4a9   : > { %700 = vst.msk [vmem:[#allocation3 + $0x10] sm:$0xff] %vm317_vm2, %v699_v57  ;;  %1243 = vrcp.f32 %v923_v58 }
 0x4aa   : > { %v758_v23 = vpop.permute.xlu1 %757 }
 0x4ac   : > { %v914_v60 = vld [vmem:[#allocation3] sm:$0xff] }
 0x4ad   : > { %1245 = vrcp.f32 %v914_v60 }
 0x4ae   : > { %v845_v62 = vpop.xlane.xlu0 %844 }
 0x4af   : > { %v846_v63 = vadd.f32 %v845_v62, %v842_v61 }
 0x4b0   : > { %v932_v1 = vld [vmem:[#allocation3 + $0x10] sm:$0xff] }
 0x4b1   : > { %847 = vst.msk [vmem:[#allocation3 + $0x18] sm:$0xff] %vm317_vm2, %v846_v63  ;;  %1247 = vrcp.f32 %v932_v1 }
 0x4b3   : > { %v1244_v2 = vpop.eup %1243 }
 0x4b4   : > { %928 = vperm.xlu0 %1216, %v1244_v2  }
 0x4b6   : > { %v464_v4 = vpop.permute.xlu0 %463 }
 0x4b7   : > { %v1246_v5 = vpop.eup %1245  ;;  %v466_v6 = vmul.f32 %v464_v4, %v460_v3 }
 0x4b8   : > { %919 = vperm.xlu1 %1217, %v1246_v5   ;;  %v941_v7 = vld [vmem:[#allocation3 + $0x18] sm:$0xff] }
 0x4b9   : > { %v467_v8 = vadd.f32 %v466_v6, %v1432_v39  ;;  %1249 = vrcp.f32 %v941_v7  ;;  %v760_v39 = vmul.f32 %v758_v23, %v754_v20 }
 0x4ba   : > { %v905_v31 = vpop.permute.xlu0 %904 }
 0x4bb   : > { %v1248_v9 = vpop.eup %1247  ;;  %468 = vst.msk [vmem:[#allocation4] sm:$0xff] %vm326_vm0, %v467_v8  ;;  %v907_v32 = vmul.f32 %v905_v31, %v901_v29 }
 0x4bc   : > { %937 = vperm.xlu1 %1217, %v1248_v9  }
 0x4c2   : > { %v916_v48 = vld [vmem:[#allocation4] sm:$0xff] }
 0x4c3   : > { %v1250_v10 = vpop.eup %1249 }
 0x4c4   : > { %946 = vperm.xlu0 %1216, %v1250_v10  }
 0x4ec   : > { %v600_v14 = vpop.f32.mrb[4].mxu0 }
 0x4ed   : > { %v614_v15 = vadd.f32 %v613_v13, %v600_v14  ;;  %v1156_v16 = vpop.f32.mrb[5].mxu0 }
 0x4ee   : > { %v603_v17 = vpop.f32.mrb[6].mxu0 }
 0x4ef   : > { %615 = vst.msk [vmem:[#allocation4 + $0x8] sm:$0xff] %vm326_vm0, %v614_v15  ;;  %v1157_v18 = vpop.f32.mrb[7].mxu0 }
 0x4f4   : > { %v747_v24 = vpop.f32.mrb[8].mxu0 }
 0x4f5   : > { %v761_v25 = vadd.f32 %v760_v39, %v747_v24  ;;  %v1168_v26 = vpop.f32.mrb[9].mxu0 }
 0x4f6   : > { %v750_v27 = vpop.f32.mrb[10].mxu0  ;;  %v925_v37 = vld [vmem:[#allocation4 + $0x8] sm:$0xff] }
 0x4f7   : > { %762 = vst.msk [vmem:[#allocation4 + $0x10] sm:$0xff] %vm326_vm0, %v761_v25  ;;  %v1169_v28 = vpop.f32.mrb[11].mxu0 }
 0x4fc   : > { %v894_v33 = vpop.f32.mrb[12].mxu0 }
 0x4fd   : > { %v908_v34 = vadd.f32 %v907_v32, %v894_v33  ;;  %v1180_v35 = vpop.f32.mrb[13].mxu0 }
 0x4fe   : > { %v897_v36 = vpop.f32.mrb[14].mxu0  ;;  %v934_v42 = vld [vmem:[#allocation4 + $0x10] sm:$0xff] }
 0x4ff   : > { %909 = vst.msk [vmem:[#allocation4 + $0x18] sm:$0xff] %vm326_vm0, %v908_v34  ;;  %v1181_v30 = vpop.f32.mrb[15].mxu0 }
 0x506   : > { %v943_v45 = vld [vmem:[#allocation4 + $0x18] sm:$0xff] }
 0x533   : > { %v929_v38 = vpop.permute.xlu0 %928 }
 0x534   : > { %v931_v40 = vmul.f32 %v929_v38, %v925_v37 }
 0x536   : > { %951 = vrot.lane.b32.xlu1 %v931_v40, %s1282_s9 }
 0x537   : > { %v920_v41 = vpop.permute.xlu1 %919 }
 0x538   : > { %v922_v50 = vmul.f32 %v920_v41, %v916_v48 }
 0x53b   : > { %v938_v43 = vpop.permute.xlu1 %937 }
 0x53c   : > { %v940_v44 = vmul.f32 %v938_v43, %v934_v42 }
 0x53e   : > { %955 = vrot.lane.b32.xlu0 %v940_v44, %s1283_s10 }
 0x543   : > { %v947_v46 = vpop.permute.xlu0 %946 }
 0x544   : > { %v949_v47 = vmul.f32 %v947_v46, %v943_v45 }
 0x546   : > { %959 = vrot.lane.b32.xlu1 %v949_v47, %s1284_s11 }
 0x5a8   : > { %v952_v49 = vpop.permute.xlu1 %951 }
 0x5a9   : > { %v962_v51 = vsel %vm326_vm0, %v922_v50, %v952_v49 }
 0x5b0   : > { %v956_v0 = vpop.permute.xlu0 %955 }
 0x5b1   : > { %v964_v52 = vsel %vm963_vm4, %v962_v51, %v956_v0 }
 0x5b8   : > { %v960_v53 = vpop.permute.xlu1 %959 }
 0x5b9   : > { %v966_v19 = vsel %vm965_vm5, %v964_v52, %v960_v53 }
 0x5ba   : > { %v967_v21 = vpack.c.bf16 %v966_v19, %v966_v19 }
 0x5bc   : > { %969 = vst.msk [vmem:[%s311_s14] sm:$0xf] %vm968_vm6, %v967_v21 }
 0x5bd PF: > { %s14_s17 = sadd.s32 1, %s1273_s17   ;;  %s1501_s15 = smov %s1269_s16 }
 0x5be   : > { %p11_p5 = scmp.ge.s32.totalorder %s14_s17, 4   ;;  %s1502_s16 = smov %s1504_s18 }
 0x5c0   :  { %13 = sbr.rel (!%p11_p5) target bundleno = 2 (0x2), region = 92 }

// kernel: transformer_fwd.46
= control target key start
LH: loop header
LB: loop body
LE: loop exit
PB: predicated region body
PF: predicated region fallthrough
CT: control target
= control target key end

     0   :  { %vm19_vm0 = vcmask 261120   ;;  %v150_v0 = vmov 0.0   ;;  %vm151_vm1 = vmmov 0   ;;  %vm118_vm2 = vcmask 257024   ;;  %s195_s1 = inlined_call_operand.vmem [shape: bf16[32,32], index: 1, kind: input, shape index: {}]   ;;  %s196_s0 = inlined_call_operand.vmem [shape: bf16[16,32], index: 0, kind: input, shape index: {}]   ;;  %s197_s2 = inlined_call_operand.vmem [shape: f32[1,32], index: 2, kind: input, shape index: {}]   ;;  %s198_s3 = inlined_call_operand.vmem [shape: bf16[16,32], index: 3, kind: output, shape index: {}]  }
   0x1   :  { %137 = vmatprep.subr.bf16.mxu0 %v150_v0  ;;  %v147_v1 = vld [vmem:[%s195_s1] sm:$0xff]   ;;  %141 = vmatprep.mubr.msk.bf16.mxu0 %vm151_vm1, %v150_v0  ;;  %20 = vst.msk [vmem:[#allocation2] sm:$0xff] %vm19_vm0, %v150_v0  ;;  %21 = vst.msk [vmem:[#allocation2 + $0x8] sm:$0xff] %vm19_vm0, %v150_v0  ;;  %v148_v2 = vld [vmem:[%s195_s1 + $0x8] sm:$0xff]  }
   0x2   :  { %138 = vmatpush3.bf16.msra.mxu0 %v147_v1  ;;  %v149_v3 = vld [vmem:[%s196_s0] sm:$0xff]  }
   0x3   :  { %139 = vmatprep.subr.bf16.mxu0 %v150_v0  ;;  %v129_v12 = vld [vmem:[%s197_s2] ss:$0 sm:$0xff] }
   0x6   :  { %140 = vmatpush3.bf16.msra.mxu0 %v148_v2 }
   0x8   :  { %v22_v4 = vld [vmem:[#allocation2] sm:$0xff]  ;;  %v23_v6 = vld [vmem:[#allocation2 + $0x8] sm:$0xff] }
   0x9   :  { %142 = vmatmul.mubr.msk.bf16.vlgmr.msra.gmra.mrb[0].mxu0 %vm19_vm0, %v149_v3 }
  0xdc   :  { %v85_v5 = vpop.f32.mrb[0].mxu0 }
  0xdd   :  { %v92_v7 = vadd.f32 %v85_v5, %v22_v4  ;;  %v143_v8 = vpop.f32.mrb[1].mxu0 }
  0xde   :  { %v88_v9 = vpop.f32.mrb[2].mxu0 }
  0xdf   :  { %94 = vst.msk [vmem:[#allocation2] sm:$0xff] %vm19_vm0, %v92_v7  ;;  %v93_v10 = vadd.f32 %v88_v9, %v23_v6  ;;  %v144_v11 = vpop.f32.mrb[3].mxu0 }
  0xe1   :  { %95 = vst.msk [vmem:[#allocation2 + $0x8] sm:$0xff] %vm19_vm0, %v93_v10 }
  0xe6   :  { %v99_v13 = vld [vmem:[#allocation2] sm:$0xff] }
  0xe7   :  { %v108_v14 = vadd.f32 %v129_v12, %v99_v13 }
  0xe8   :  { %v100_v15 = vld [vmem:[#allocation2 + $0x8] sm:$0xff] }
  0xe9   :  { %v132_v16 = vpack.c.bf16 %v108_v14, %v108_v14  ;;  %v109_v17 = vadd.f32 %v129_v12, %v100_v15 }
  0xeb   :  { %119 = vst.msk [vmem:[%s198_s3] sm:$0xf] %vm118_vm2, %v132_v16  ;;  %v133_v18 = vpack.c.bf16 %v109_v17, %v109_v17 }
  0xed   :  { %120 = vst.msk [vmem:[%s198_s3 + $0x4] sm:$0xf] %vm118_vm2, %v133_v18 }

// kernel: transformer_fwd.61
= control target key start
LH: loop header
LB: loop body
LE: loop exit
PB: predicated region body
PF: predicated region fallthrough
CT: control target
= control target key end

     0   :  { %v165_v1 = vmov 0.0   ;;  %vm34_vm0 = vcmask 261120   ;;  %vm166_vm1 = vmmov 0   ;;  %s206_s0 = inlined_call_operand.vmem [shape: bf16[16,32], index: 0, kind: input, shape index: {}]   ;;  %s207_s1 = inlined_call_operand.vmem [shape: bf16[32,32], index: 1, kind: input, shape index: {}]   ;;  %s208_s2 = inlined_call_operand.hbm [shape: bf16[16,32], index: 2, kind: output, shape index: {}]  }
   0x1   :  { %v138_v0 = vld [vmem:[%s207_s1] sm:$0xff]   ;;  %125 = vmatprep.subr.bf16.mxu0 %v165_v1  ;;  %129 = vmatprep.mubr.msk.bf16.mxu0 %vm166_vm1, %v165_v1 }
   0x2   :  { %v39_v2 = vsel %vm34_vm0, %v138_v0, 0 }
   0x3   :  { %126 = vmatpush3.bf16.xpose.msra.mxu0 %v39_v2 }
   0x4   :  { %7 = vsyncpa [#allocation3], 0  ;;  %127 = vmatprep.subr.bf16.mxu0 %v165_v1  ;;  %v139_v3 = vld [vmem:[%s207_s1 + $0x8] sm:$0xff]   ;;  %v140_v5 = vld [vmem:[%s206_s0] sm:$0xff]   ;;  %s167_s15 = smov [#allocation2]   ;;  %vm95_vm2 = vcmask 257024  }
   0x5   :  { %v42_v4 = vsel %vm34_vm0, %v139_v3, 0  ;;  %s103_s16 = sshll.u32 %s167_s15, 4  ;;  %s104_s16 = int_to_ptr.vmem [resolvable:$true] %s103_s16 }
   0x6   :  { %s141_s1 = scalar_lea.vmem %s104_s16, 128  ;;  %p146_p1 = scmp.lt.s32.totalorder %s104_s16, %s104_s16 }
   0x7   :  { %p142_p0 = scmp.ne.s32.totalorder %s104_s16, %s141_s1  ;;  %p147_p2 = scmp.lt.s32.totalorder %s141_s1, %s141_s1 }
   0x9   :  { %p148_p3 = por %p147_p2, %p146_p1 }
   0xb   :  { %128 = vmatpush3.bf16.xpose.msra.mxu0 %v42_v4  ;;  %p149_p4 = pnand %p148_p3, %p142_p0 }
  0x12   :  { %130 = vmatmul.mubr.msk.bf16.vlgmr.msra.gmra.mrb[0].mxu0 %vm34_vm0, %v140_v5 }
  0xe5   :  { %v78_v6 = vpop.f32.mrb[0].mxu0 }
  0xe6   :  { %v85_v7 = vmul.f32 0.17677669, %v78_v6  ;;  %v131_v8 = vpop.f32.mrb[1].mxu0 }
  0xe7   :  { %v81_v9 = vpop.f32.mrb[2].mxu0 }
  0xe8   :  { %v120_v10 = vpack.c.bf16 %v85_v7, %v85_v7  ;;  %v86_v11 = vmul.f32 0.17677669, %v81_v9  ;;  %v132_v12 = vpop.f32.mrb[3].mxu0 }
  0xea   :  { %96 = vst.msk [vmem:[#allocation2] sm:$0xf] %vm95_vm2, %v120_v10  ;;  %v121_v13 = vpack.c.bf16 %v86_v11, %v86_v11 }
  0xec   :  { %97 = vst.msk [vmem:[#allocation2 + $0x4] sm:$0xf] %vm95_vm2, %v121_v13 }
  0xed   :  { %152 = shalt.err (!%p149_p4)
}
  0xee   :  { %s153_s18 = scalar_lea.hbm %s208_s2, 128 }
  0xef   :  { %p154_p5 = scmp.ne.s32.totalorder %s208_s2, %s153_s18  ;;  %p157_p6 = scmp.lt.u32.totalorder %s153_s18, %s208_s2 }
  0xf1   :  { %p159_p7 = pnand %p157_p6, %p154_p5 }
  0xf3   :  { %162 = shalt.err (!%p159_p7)
}
  0xf4   :  { %s168_s23 = smov 64   ;;  %s169_s24 = smov 4  }
  0xf5   :  { %109 = dma.vmem_to_hbm [thread:$0]  %s104_s16, 128, %s208_s2, [#allocation3], %s168_s23, %s168_s23, %s169_s24  }
  0xf6   :  { %163 = dma.done.wait [#allocation3], 128  }
  0xf7   :  { %164 = vsyncadd [#allocation3], 4294967168 }
  0xf8   :  { %113 = vsyncpa [#allocation3], 1 }

// kernel: transformer_fwd.44
= control target key start
LH: loop header
LB: loop body
LE: loop exit
PB: predicated region body
PF: predicated region fallthrough
CT: control target
= control target key end

     0   :  { %s1337_s15 = smov 0   ;;  %s1339_s16 = smov 0   ;;  %s1523_s0 = inlined_call_operand.vmem [shape: f32[2,1,8], index: 0, kind: input, shape index: {}]   ;;  %s1524_s1 = inlined_call_operand.vmem [shape: bf16[2,8,32], index: 1, kind: input, shape index: {}]   ;;  %s1525_s2 = inlined_call_operand.vmem [shape: bf16[2,8,32], index: 2, kind: input, shape index: {}]   ;;  %s1526_s3 = inlined_call_operand.vmem [shape: bf16[2,8,32], index: 3, kind: input, shape index: {}]   ;;  %s1527_s4 = inlined_call_operand.vmem [shape: bf16[2,8,32], index: 4, kind: output, shape index: {}]  }
   0x1   :  { %s1341_s17 = smov 0  }
   0x2 LB: > { %s33_s18 = sadd.s32 1, %s1295_s16  ;;  %p1118_p0 = scmp.ge.s32.totalorder %s1299_s17, 1  ;;  %s1299_s17 = sphi %s1341_s17, %s14_s17   ;;  %s1295_s16 = sphi %s1339_s16, %s1529_s16   ;;  %s1291_s15 = sphi %s1337_s15, %s1528_s15  }
   0x3   : > { %p35_p1 = scmp.ge.s32.totalorder %s33_s18, 2  ;;  %p228_p2 = scmp.lt.s32.totalorder %s1299_s17, 3 }
   0x5   : > { %s1531_s18 = smov (%p35_p1, %s33_s18), 0  ;;  %p229_p3 = pnand %p1118_p0, %p228_p2 }
   0x6   : > { %p278_p4 = scmp.lt.s32.totalorder (!%p229_p3), %s1291_s15, 1  ;;  %vm326_vm0 = vcmask (!%p229_p3), 64512   ;;  %v1301_v0 = vmov (!%p229_p3), 0.0   ;;  %vm1302_vm1 = vmmov (!%p229_p3), 0   ;;  %vm317_vm2 = vcmask (!%p229_p3), 7168   ;;  %s1306_s29 = smov (!%p229_p3), 120  }
   0x7   : > { %232 = sbr.rel (%p229_p3) target bundleno = 1469 (0x5bd), region = 36  ;;  %1159 = vmatprep.subr.bf16.mxu0 (!%p229_p3), %v1301_v0  ;;  %327 = vst.msk [vmem:[#allocation4] sm:$0xff] (!%p229_p3), %vm326_vm0, %v1301_v0  ;;  %328 = vst.msk [vmem:[#allocation4 + $0x8] sm:$0xff] (!%p229_p3), %vm326_vm0, %v1301_v0  ;;  %1161 = vmatprep.mubr.msk.bf16.mxu0 (!%p229_p3), %vm1302_vm1, %v1301_v0  ;;  %v1303_v4 = vmov (!%p229_p3), -inf   ;;  %v339_v5 = vlaneseq (!%p229_p3)  ;;  %v1304_v9 = vmov (!%p229_p3), -1e+09  }
   0x8   : > { %329 = vst.msk [vmem:[#allocation4 + $0x10] sm:$0xff] (!%p229_p3), %vm326_vm0, %v1301_v0  ;;  %330 = vst.msk [vmem:[#allocation4 + $0x18] sm:$0xff] (!%p229_p3), %vm326_vm0, %v1301_v0  ;;  %1165 = vmatprep.subr.bf16.mxu1 (!%p229_p3), %v1301_v0  ;;  %1167 = vmatprep.mubr.msk.bf16.mxu1 (!%p229_p3), %vm1302_vm1, %v1301_v0  ;;  %v1305_v18 = vmov (!%p229_p3), 0   ;;  %s1307_s30 = smov (!%p229_p3), 112   ;;  %s1308_s5 = smov (!%p229_p3), 104   ;;  %vm434_vm4 = vcmask (!%p229_p3), 1043456  }
   0x9   : > { %318 = vst.msk [vmem:[#allocation2] sm:$0xff] (!%p229_p3), %vm317_vm2, %v1303_v4  ;;  %319 = vst.msk [vmem:[#allocation2 + $0x8] sm:$0xff] (!%p229_p3), %vm317_vm2, %v1303_v4  ;;  %v340_v6 = vshrl.u32 (!%p229_p3), %v339_v5, 7  ;;  %v344_v7 = vand.u32 (!%p229_p3), 127, %v339_v5  ;;  %1242 = vset.pattern.permute.xlu0 (!%p229_p3), %v1305_v18  ;;  %1243 = vset.pattern.permute.xlu1 (!%p229_p3), %v1305_v18  ;;  %s1309_s9 = smov (!%p229_p3), 8   ;;  %s1310_s10 = smov (!%p229_p3), 16  }
   0xa   : > { %320 = vst.msk [vmem:[#allocation2 + $0x10] sm:$0xff] (!%p229_p3), %vm317_vm2, %v1303_v4  ;;  %321 = vst.msk [vmem:[#allocation2 + $0x18] sm:$0xff] (!%p229_p3), %vm317_vm2, %v1303_v4  ;;  %s1311_s11 = smov (!%p229_p3), 24   ;;  %vm988_vm5 = vcmask (!%p229_p3), 130048   ;;  %vm990_vm6 = vcmask (!%p229_p3), 195584   ;;  %vm993_vm7 = vcmask (!%p229_p3), 257024  }
   0xb   : > { %322 = vst.msk [vmem:[#allocation3] sm:$0xff] (!%p229_p3), %vm317_vm2, %v1301_v0  ;;  %323 = vst.msk [vmem:[#allocation3 + $0x8] sm:$0xff] (!%p229_p3), %vm317_vm2, %v1301_v0  ;;  %vm347_vm3 = vcmp.le.s32.totalorder (!%p229_p3), %v344_v7, %v340_v6 }
   0xc   : > { %324 = vst.msk [vmem:[#allocation3 + $0x10] sm:$0xff] (!%p229_p3), %vm317_vm2, %v1301_v0  ;;  %325 = vst.msk [vmem:[#allocation3 + $0x18] sm:$0xff] (!%p229_p3), %vm317_vm2, %v1301_v0  ;;  %v348_v10 = vsel (!%p229_p3), %vm347_vm3, 0.0, %v1304_v9 }
   0xe   : > { %s1533_s15 = smov (!%p278_p4, %s1291_s15), 1 }
   0xf   : > { %s1369_s19 = sshll.u32 %s1533_s15, 2  ;;  %s283_s28 = scalar_lea.vmem %s1523_s0, %s1533_s15 }
  0x10   : > { %s1375_s22 = scalar_lea.vmem %s1525_s2, %s1369_s19  ;;  %s1382_s25 = scalar_lea.vmem %s1524_s1, %s1369_s19  ;;  %v1123_v8 = vld [vmem:[%s283_s28] ss:$0 sm:$0xff]  ;;  %v548_v4 = vld [vmem:[#allocation2 + $0x8] sm:$0xff] }
  0x11   : > { %v357_v1 = vld [vmem:[%s1375_s22] sm:$0xf]  ;;  %v1405_v11 = vadd.f32 %v1123_v8, %v348_v10  ;;  %s1435_s8 = scalar_lea.vmem %s1526_s3, %s1369_s19  ;;  %v695_v8 = vld [vmem:[#allocation2 + $0x10] sm:$0xff]  ;;  %s311_s14 = scalar_lea.vmem %s1527_s4, %s1369_s19 }
  0x12   : > { %v364_v2 = vsel %vm326_vm0, %v357_v1, 0  ;;  %v356_v3 = vld [vmem:[%s1382_s25] sm:$0xf] }
  0x13   : > { %1160 = vmatpush3.bf16.xpose.msra.mxu0 %v364_v2  ;;  %v1244_v19 = vld [vmem:[%s1375_s22] ss:$0 sps:$4 sm:$0xff]  }
  0x14   : > { %1177 = vmatprep.subr.bf16.mxu0 %v1301_v0  ;;  %499 = vrot.lane.b32.xlu1 %v1244_v19, %s1306_s29  ;;  %v1245_v20 = vld [vmem:[%s1382_s25] ss:$0 sps:$4 sm:$0xff]  }
  0x15   : > { %v1246_v21 = vld [vmem:[%s1375_s22] ss:$0 sps:$4 sm:$0xff]  }
  0x16   : > { %v1247_v22 = vld [vmem:[%s1382_s25] ss:$0 sps:$4 sm:$0xff]  }
  0x17   : > { %v1248_v23 = vld [vmem:[%s1375_s22] ss:$0 sps:$4 sm:$0xff]  }
  0x18   : > { %494 = vrot.lane.b32.xlu1 %v1245_v20, %s1306_s29  ;;  %v1249_v24 = vld [vmem:[%s1382_s25] ss:$0 sps:$4 sm:$0xff]  }
  0x19   : > { %v1421_v25 = vld [vmem:[#allocation2] sm:$0xff] }
  0x1a   : > { %1162 = vmatmul.mubr.msk.bf16.vlgmr.msra.gmra.mrb[0].mxu0 %vm326_vm0, %v356_v3  ;;  %v358_v29 = vld [vmem:[%s1435_s8] sm:$0xf] }
  0x1b   : > { %1179 = vmatprep.mubr.msk.bf16.mxu0 %vm1302_vm1, %v1301_v0  ;;  %v436_v30 = vsel %vm434_vm4, %v358_v29, 0  ;;  %v1252_v18 = vld [vmem:[%s1435_s8] ss:$0 sps:$4 sm:$0xff]  }
  0x1c   : > { %646 = vrot.lane.b32.xlu1 %v1246_v21, %s1307_s30  ;;  %1166 = vmatpush3.bf16.msra.mxu1 %v436_v30 }
  0x1d   : > { %1171 = vmatprep.subr.bf16.mxu1 %v1301_v0 }
  0x20   : > { %641 = vrot.lane.b32.xlu1 %v1247_v22, %s1307_s30 }
  0x24   : > { %793 = vrot.lane.b32.xlu1 %v1248_v23, %s1308_s5 }
  0x28   : > { %788 = vrot.lane.b32.xlu1 %v1249_v24, %s1308_s5 }
  0x86   : > { %v500_v34 = vpop.permute.xlu1 %499 }
  0x87   : > { %v505_v37 = vsel %vm326_vm0, %v500_v34, 0 }
  0x8a   : > { %v495_v35 = vpop.permute.xlu1 %494 }
  0x8e   : > { %v647_v39 = vpop.permute.xlu1 %646 }
  0x8f   : > { %v652_v41 = vsel %vm326_vm0, %v647_v39, 0 }
  0x92   : > { %v642_v40 = vpop.permute.xlu1 %641 }
  0x96   : > { %v794_v42 = vpop.permute.xlu1 %793 }
  0x97   : > { %v799_v43 = vsel %vm326_vm0, %v794_v42, 0 }
  0x9a   : > { %v789_v44 = vpop.permute.xlu1 %788 }
  0xed   : > { %v400_v12 = vpop.f32.mrb[0].mxu0 }
  0xee   : > { %v401_v13 = vadd.f32 %v400_v12, %v1405_v11  ;;  %v1163_v14 = vpop.f32.mrb[1].mxu0  ;;  %v1469_v12 = vld [vmem:[#allocation2 + $0x18] sm:$0xff] }
  0xef   : > { %v403_v15 = vpop.f32.mrb[2].mxu0 }
  0xf0   : > { %v1164_v16 = vpop.f32.mrb[3].mxu0  ;;  %v407_v17 = vsel %vm326_vm0, %v401_v13, -inf }
  0xf1   : > { %408 = vmax.xlane.f32.xlu0 %v407_v17  ;;  %v1250_v16 = vld [vmem:[%s1435_s8] ss:$0 sps:$4 sm:$0xff]  }
  0xf2   : > { %v1251_v17 = vld [vmem:[%s1435_s8] ss:$0 sps:$4 sm:$0xff]  }
 0x17e   : > { %v409_v26 = vpop.xlane.xlu0 %408 }
 0x17f   : > { %v1424_v27 = vmax.f32 %v1421_v25, %v409_v26 }
 0x181   : > { %v411_v28 = vsub.f32 %v1421_v25, %v1424_v27  ;;  %487 = vst.msk [vmem:[#allocation2] sm:$0xff] %vm317_vm2, %v1424_v27  ;;  %416 = vperm.xlu0 %1242, %v1424_v27  }
 0x200   : > { %v417_v31 = vpop.permute.xlu0 %416 }
 0x201   : > { %v419_v32 = vsub.f32 %v401_v13, %v417_v31 }
 0x203   : > { %v420_v33 = vmul.f32 1.442695, %v419_v32 }
 0x205   : > { %1253 = vpow2.f32 %v420_v33 }
 0x20f   : > { %v1440_v36 = vpop.eup %1253 }
 0x210   : > { %v430_v38 = vpack.c.bf16 %v1440_v36, %v1440_v36  ;;  %v424_v34 = vsel %vm326_vm0, %v1440_v36, 0.0 }
 0x212   : > { %1168 = vmatmul.mubr.msk.bf16.vlgmr.msra.gmra.mrb[0].mxu1 %vm326_vm0, %v430_v38 }
 0x213   : > { %1172 = vmatpush3.bf16.xpose.msra.mxu1 %v505_v37  ;;  %1173 = vmatprep.mubr.msk.bf16.mxu1 %vm1302_vm1, %v1301_v0 }
 0x214   : > { %1183 = vmatprep.subr.bf16.mxu1 %v1301_v0 }
 0x21a   : > { %1174 = vmatmul.mubr.msk.bf16.vlgmr.msra.gmra.mrb[4].mxu1 %vm326_vm0, %v495_v35 }
 0x21b   : > { %1184 = vmatpush3.bf16.xpose.msra.mxu1 %v652_v41  ;;  %1185 = vmatprep.mubr.msk.bf16.mxu1 %vm1302_vm1, %v1301_v0 }
 0x21c   : > { %1195 = vmatprep.subr.bf16.mxu1 %v1301_v0 }
 0x222   : > { %1186 = vmatmul.mubr.msk.bf16.vlgmr.msra.gmra.mrb[8].mxu1 %vm326_vm0, %v642_v40 }
 0x223   : > { %1196 = vmatpush3.bf16.xpose.msra.mxu1 %v799_v43  ;;  %1197 = vmatprep.mubr.msk.bf16.mxu1 %vm1302_vm1, %v1301_v0 }
 0x22a   : > { %1198 = vmatmul.mubr.msk.bf16.vlgmr.msra.gmra.mrb[12].mxu1 %vm326_vm0, %v789_v44 }
 0x2e5   : > { %v1459_v45 = vpop.f32.mrb[0].mxu1 }
 0x2e6   : > { %v1169_v46 = vpop.f32.mrb[1].mxu1 }
 0x2e7   : > { %v475_v47 = vpop.f32.mrb[2].mxu1 }
 0x2e8   : > { %v1170_v48 = vpop.f32.mrb[3].mxu1 }
 0x2ed   : > { %v541_v49 = vpop.f32.mrb[4].mxu1 }
 0x2ee   : > { %v542_v50 = vadd.f32 %v541_v49, %v1405_v11  ;;  %v1175_v51 = vpop.f32.mrb[5].mxu1 }
 0x2ef   : > { %v544_v52 = vpop.f32.mrb[6].mxu1  ;;  %v412_v51 = vmul.f32 1.442695, %v411_v28  ;;  %v712_v28 = vld [vmem:[#allocation3 + $0x10] sm:$0xff] }
 0x2f0   : > { %v1176_v53 = vpop.f32.mrb[7].mxu1  ;;  %v549_v54 = vsel %vm326_vm0, %v542_v50, -inf }
 0x2f1   : > { %550 = vmax.xlane.f32.xlu1 %v549_v54 }
 0x2f5   : > { %v688_v55 = vpop.f32.mrb[8].mxu1 }
 0x2f6   : > { %v689_v56 = vadd.f32 %v688_v55, %v1405_v11  ;;  %v1187_v57 = vpop.f32.mrb[9].mxu1 }
 0x2f7   : > { %v691_v58 = vpop.f32.mrb[10].mxu1 }
 0x2f8   : > { %v1188_v59 = vpop.f32.mrb[11].mxu1  ;;  %v696_v60 = vsel %vm326_vm0, %v689_v56, -inf  ;;  %v422_v58 = vld [vmem:[#allocation3] sm:$0xff] }
 0x2f9   : > { %697 = vmax.xlane.f32.xlu0 %v696_v60 }
 0x2fd   : > { %v835_v61 = vpop.f32.mrb[12].mxu1 }
 0x2fe   : > { %v836_v62 = vadd.f32 %v835_v61, %v1405_v11  ;;  %v1199_v63 = vpop.f32.mrb[13].mxu1 }
 0x2ff   : > { %v838_v1 = vpop.f32.mrb[14].mxu1 }
 0x300   : > { %v1200_v2 = vpop.f32.mrb[15].mxu1  ;;  %v843_v3 = vsel %vm326_vm0, %v836_v62, -inf }
 0x301   : > { %844 = vmax.xlane.f32.xlu1 %v843_v3  ;;  %v859_v2 = vld [vmem:[#allocation3 + $0x18] sm:$0xff] }
 0x37e   : > { %v551_v5 = vpop.xlane.xlu1 %550 }
 0x37f   : > { %v552_v6 = vmax.f32 %v548_v4, %v551_v5 }
 0x381   : > { %v553_v7 = vsub.f32 %v548_v4, %v552_v6  ;;  %634 = vst.msk [vmem:[#allocation2 + $0x8] sm:$0xff] %vm317_vm2, %v552_v6  ;;  %558 = vperm.xlu1 %1243, %v552_v6  }
 0x383   : > { %v554_v38 = vmul.f32 1.442695, %v553_v7 }
 0x386   : > { %v698_v9 = vpop.xlane.xlu0 %697 }
 0x387   : > { %v699_v10 = vmax.f32 %v695_v8, %v698_v9  ;;  %v478_v9 = vld [vmem:[#allocation4] sm:$0xff] }
 0x389   : > { %v700_v11 = vsub.f32 %v695_v8, %v699_v10  ;;  %781 = vst.msk [vmem:[#allocation2 + $0x10] sm:$0xff] %vm317_vm2, %v699_v10  ;;  %705 = vperm.xlu0 %1242, %v699_v10  }
 0x38b   : > { %v701_v36 = vmul.f32 1.442695, %v700_v11 }
 0x38e   : > { %v845_v13 = vpop.xlane.xlu1 %844 }
 0x38f   : > { %v846_v14 = vmax.f32 %v1469_v12, %v845_v13 }
 0x391   : > { %v847_v15 = vsub.f32 %v1469_v12, %v846_v14  ;;  %928 = vst.msk [vmem:[#allocation2 + $0x18] sm:$0xff] %vm317_vm2, %v846_v14  ;;  %852 = vperm.xlu1 %1243, %v846_v14  }
 0x393   : > { %v848_v53 = vmul.f32 1.442695, %v847_v15 }
 0x395   : > { %576 = vrot.lane.b32.xlu1 %v1250_v16, %s1306_s29 }
 0x399   : > { %723 = vrot.lane.b32.xlu1 %v1251_v17, %s1307_s30  ;;  %v625_v17 = vld [vmem:[#allocation4 + $0x8] sm:$0xff] }
 0x39d   : > { %870 = vrot.lane.b32.xlu1 %v1252_v18, %s1308_s5 }
 0x400   : > { %v559_v19 = vpop.permute.xlu1 %558 }
 0x401   : > { %v561_v20 = vsub.f32 %v542_v50, %v559_v19 }
 0x403   : > { %v562_v21 = vmul.f32 1.442695, %v561_v20 }
 0x405   : > { %1255 = vpow2.f32 %v562_v21 }
 0x408   : > { %v706_v22 = vpop.permute.xlu0 %705 }
 0x409   : > { %v708_v23 = vsub.f32 %v689_v56, %v706_v22  ;;  %v565_v56 = vld [vmem:[#allocation3 + $0x8] sm:$0xff] }
 0x40b   : > { %v709_v24 = vmul.f32 1.442695, %v708_v23 }
 0x40d   : > { %1257 = vpow2.f32 %v709_v24 }
 0x40f   : > { %v1256_v26 = vpop.eup %1255 }
 0x410   : > { %v853_v29 = vpop.permute.xlu1 %852  ;;  %v567_v30 = vsel %vm326_vm0, %v1256_v26, 0.0  ;;  %v572_v39 = vpack.c.bf16 %v1256_v26, %v1256_v26  ;;  %v772_v26 = vld [vmem:[#allocation4 + $0x10] sm:$0xff] }
 0x411   : > { %v855_v31 = vsub.f32 %v836_v62, %v853_v29  ;;  %568 = vadd.xlane.f32.xlu1 %v567_v30 }
 0x413   : > { %v856_v32 = vmul.f32 1.442695, %v855_v31 }
 0x414   : > { %v577_v33 = vpop.permute.xlu1 %576 }
 0x415   : > { %1259 = vpow2.f32 %v856_v32  ;;  %v582_v35 = vsel %vm434_vm4, %v577_v33, 0  ;;  %425 = vadd.xlane.f32.xlu1 %v424_v34 }
 0x416   : > { %1178 = vmatpush3.bf16.msra.mxu0 %v582_v35  ;;  %1261 = vpow2.f32 %v554_v38  ;;  %v919_v35 = vld [vmem:[#allocation4 + $0x18] sm:$0xff] }
 0x417   : > { %v1258_v37 = vpop.eup %1257  ;;  %1189 = vmatprep.subr.bf16.mxu0 %v1301_v0  ;;  %1263 = vpow2.f32 %v701_v36 }
 0x418   : > { %v714_v40 = vsel %vm326_vm0, %v1258_v37, 0.0  ;;  %v724_v41 = vpop.permute.xlu1 %723  ;;  %v719_v46 = vpack.c.bf16 %v1258_v37, %v1258_v37  ;;  %1265 = vpow2.f32 %v412_v51 }
 0x419   : > { %715 = vadd.xlane.f32.xlu0 %v714_v40  ;;  %1180 = vmatmul.mubr.msk.bf16.vlgmr.msra.gmra.mrb[4].mxu0 %vm326_vm0, %v572_v39  ;;  %v729_v42 = vsel %vm434_vm4, %v724_v41, 0  ;;  %1267 = vpow2.f32 %v848_v53 }
 0x41a   : > { %1190 = vmatpush3.bf16.msra.mxu0 %v729_v42  ;;  %1191 = vmatprep.mubr.msk.bf16.mxu0 %vm1302_vm1, %v1301_v0 }
 0x41b   : > { %1201 = vmatprep.subr.bf16.mxu0 %v1301_v0 }
 0x41c   : > { %v871_v43 = vpop.permute.xlu1 %870 }
 0x41d   : > { %v876_v47 = vsel %vm434_vm4, %v871_v43, 0 }
 0x41f   : > { %v1260_v44 = vpop.eup %1259 }
 0x420   : > { %v861_v48 = vsel %vm326_vm0, %v1260_v44, 0.0  ;;  %v1262_v49 = vpop.eup %1261  ;;  %v866_v50 = vpack.c.bf16 %v1260_v44, %v1260_v44 }
 0x421   : > { %862 = vadd.xlane.f32.xlu0 %v861_v48  ;;  %1192 = vmatmul.mubr.msk.bf16.vlgmr.msra.gmra.mrb[8].mxu0 %vm326_vm0, %v719_v46  ;;  %v1264_v52 = vpop.eup %1263 }
 0x422   : > { %1202 = vmatpush3.bf16.msra.mxu0 %v876_v47  ;;  %1203 = vmatprep.mubr.msk.bf16.mxu0 %vm1302_vm1, %v1301_v0  ;;  %v1266_v54 = vpop.eup %1265  ;;  %v566_v0 = vmul.f32 %v1262_v49, %v565_v56  ;;  %v713_v61 = vmul.f32 %v1264_v52, %v712_v28 }
 0x423   : > { %v1268_v55 = vpop.eup %1267  ;;  %v423_v25 = vmul.f32 %v1266_v54, %v422_v58 }
 0x424   : > { %v860_v4 = vmul.f32 %v1268_v55, %v859_v2 }
 0x426   : > { %628 = vperm.xlu1 %1243, %v1262_v49  }
 0x429   : > { %1204 = vmatmul.mubr.msk.bf16.vlgmr.msra.gmra.mrb[12].mxu0 %vm326_vm0, %v866_v50 }
 0x42a   : > { %775 = vperm.xlu1 %1243, %v1264_v52  }
 0x437   : > { %481 = vperm.xlu0 %1242, %v1266_v54  }
 0x43b   : > { %922 = vperm.xlu0 %1242, %v1268_v55  }
 0x49e   : > { %v569_v57 = vpop.xlane.xlu1 %568 }
 0x49f   : > { %v570_v59 = vadd.f32 %v569_v57, %v566_v0 }
 0x4a1   : > { %571 = vst.msk [vmem:[#allocation3 + $0x8] sm:$0xff] %vm317_vm2, %v570_v59 }
 0x4a2   : > { %v426_v27 = vpop.xlane.xlu1 %425 }
 0x4a3   : > { %v427_v60 = vadd.f32 %v426_v27, %v423_v25 }
 0x4a5   : > { %429 = vst.msk [vmem:[#allocation3] sm:$0xff] %vm317_vm2, %v427_v60 }
 0x4a6   : > { %v716_v62 = vpop.xlane.xlu0 %715  ;;  %v629_v18 = vpop.permute.xlu1 %628 }
 0x4a7   : > { %v717_v63 = vadd.f32 %v716_v62, %v713_v61  ;;  %v631_v19 = vmul.f32 %v629_v18, %v625_v17 }
 0x4a8   : > { %v942_v1 = vld [vmem:[#allocation3 + $0x8] sm:$0xff] }
 0x4a9   : > { %718 = vst.msk [vmem:[#allocation3 + $0x10] sm:$0xff] %vm317_vm2, %v717_v63  ;;  %1269 = vrcp.f32 %v942_v1 }
 0x4aa   : > { %v776_v29 = vpop.permute.xlu1 %775 }
 0x4ac   : > { %v932_v3 = vld [vmem:[#allocation3] sm:$0xff] }
 0x4ad   : > { %1271 = vrcp.f32 %v932_v3 }
 0x4ae   : > { %v863_v5 = vpop.xlane.xlu0 %862 }
 0x4af   : > { %v864_v6 = vadd.f32 %v863_v5, %v860_v4 }
 0x4b0   : > { %v953_v7 = vld [vmem:[#allocation3 + $0x10] sm:$0xff] }
 0x4b1   : > { %865 = vst.msk [vmem:[#allocation3 + $0x18] sm:$0xff] %vm317_vm2, %v864_v6  ;;  %1273 = vrcp.f32 %v953_v7 }
 0x4b3   : > { %v1270_v8 = vpop.eup %1269 }
 0x4b4   : > { %948 = vperm.xlu0 %1242, %v1270_v8  }
 0x4b6   : > { %v482_v10 = vpop.permute.xlu0 %481 }
 0x4b7   : > { %v1272_v11 = vpop.eup %1271  ;;  %v484_v12 = vmul.f32 %v482_v10, %v478_v9 }
 0x4b8   : > { %937 = vperm.xlu1 %1243, %v1272_v11   ;;  %v964_v13 = vld [vmem:[#allocation3 + $0x18] sm:$0xff] }
 0x4b9   : > { %v485_v14 = vadd.f32 %v484_v12, %v1459_v45  ;;  %1275 = vrcp.f32 %v964_v13  ;;  %v778_v45 = vmul.f32 %v776_v29, %v772_v26 }
 0x4ba   : > { %v923_v37 = vpop.permute.xlu0 %922 }
 0x4bb   : > { %v1274_v15 = vpop.eup %1273  ;;  %486 = vst.msk [vmem:[#allocation4] sm:$0xff] %vm326_vm0, %v485_v14  ;;  %v925_v38 = vmul.f32 %v923_v37, %v919_v35 }
 0x4bc   : > { %959 = vperm.xlu1 %1243, %v1274_v15  }
 0x4c2   : > { %v934_v54 = vld [vmem:[#allocation4] sm:$0xff] }
 0x4c3   : > { %v1276_v16 = vpop.eup %1275 }
 0x4c4   : > { %970 = vperm.xlu0 %1242, %v1276_v16  }
 0x4ec   : > { %v618_v20 = vpop.f32.mrb[4].mxu0 }
 0x4ed   : > { %v632_v21 = vadd.f32 %v631_v19, %v618_v20  ;;  %v1181_v22 = vpop.f32.mrb[5].mxu0 }
 0x4ee   : > { %v621_v23 = vpop.f32.mrb[6].mxu0 }
 0x4ef   : > { %633 = vst.msk [vmem:[#allocation4 + $0x8] sm:$0xff] %vm326_vm0, %v632_v21  ;;  %v1182_v24 = vpop.f32.mrb[7].mxu0 }
 0x4f4   : > { %v765_v30 = vpop.f32.mrb[8].mxu0 }
 0x4f5   : > { %v779_v31 = vadd.f32 %v778_v45, %v765_v30  ;;  %v1193_v32 = vpop.f32.mrb[9].mxu0 }
 0x4f6   : > { %v768_v33 = vpop.f32.mrb[10].mxu0  ;;  %v945_v43 = vld [vmem:[#allocation4 + $0x8] sm:$0xff] }
 0x4f7   : > { %780 = vst.msk [vmem:[#allocation4 + $0x10] sm:$0xff] %vm326_vm0, %v779_v31  ;;  %v1194_v34 = vpop.f32.mrb[11].mxu0 }
 0x4fc   : > { %v912_v39 = vpop.f32.mrb[12].mxu0 }
 0x4fd   : > { %v926_v40 = vadd.f32 %v925_v38, %v912_v39  ;;  %v1205_v41 = vpop.f32.mrb[13].mxu0 }
 0x4fe   : > { %v915_v42 = vpop.f32.mrb[14].mxu0  ;;  %v956_v48 = vld [vmem:[#allocation4 + $0x10] sm:$0xff] }
 0x4ff   : > { %927 = vst.msk [vmem:[#allocation4 + $0x18] sm:$0xff] %vm326_vm0, %v926_v40  ;;  %v1206_v36 = vpop.f32.mrb[15].mxu0 }
 0x506   : > { %v967_v51 = vld [vmem:[#allocation4 + $0x18] sm:$0xff] }
 0x533   : > { %v949_v44 = vpop.permute.xlu0 %948 }
 0x534   : > { %v951_v46 = vmul.f32 %v949_v44, %v945_v43 }
 0x536   : > { %975 = vrot.lane.b32.xlu1 %v951_v46, %s1309_s9 }
 0x537   : > { %v938_v47 = vpop.permute.xlu1 %937 }
 0x538   : > { %v940_v56 = vmul.f32 %v938_v47, %v934_v54 }
 0x53b   : > { %v960_v49 = vpop.permute.xlu1 %959 }
 0x53c   : > { %v962_v50 = vmul.f32 %v960_v49, %v956_v48 }
 0x53e   : > { %979 = vrot.lane.b32.xlu0 %v962_v50, %s1310_s10 }
 0x543   : > { %v971_v52 = vpop.permute.xlu0 %970 }
 0x544   : > { %v973_v53 = vmul.f32 %v971_v52, %v967_v51 }
 0x546   : > { %983 = vrot.lane.b32.xlu1 %v973_v53, %s1311_s11 }
 0x5a8   : > { %v976_v55 = vpop.permute.xlu1 %975 }
 0x5a9   : > { %v987_v57 = vsel %vm326_vm0, %v940_v56, %v976_v55 }
 0x5b0   : > { %v980_v0 = vpop.permute.xlu0 %979 }
 0x5b1   : > { %v989_v58 = vsel %vm988_vm5, %v987_v57, %v980_v0 }
 0x5b8   : > { %v984_v59 = vpop.permute.xlu1 %983 }
 0x5b9   : > { %v991_v25 = vsel %vm990_vm6, %v989_v58, %v984_v59 }
 0x5ba   : > { %v992_v27 = vpack.c.bf16 %v991_v25, %v991_v25 }
 0x5bc   : > { %994 = vst.msk [vmem:[%s311_s14] sm:$0xf] %vm993_vm7, %v992_v27 }
 0x5bd PF: > { %s14_s17 = sadd.s32 1, %s1299_s17   ;;  %s1528_s15 = smov %s1295_s16 }
 0x5be   : > { %p11_p5 = scmp.ge.s32.totalorder %s14_s17, 4   ;;  %s1529_s16 = smov %s1531_s18 }
 0x5c0   :  { %13 = sbr.rel (!%p11_p5) target bundleno = 2 (0x2), region = 102 }

</bundles_post_ra>
